<compile_context>
chip_gen: v6e
topology: v6e:2x2x1
jax: 0.10.0
libtpu: 0.0.40
codegen_flags: <defaults>
</compile_context>

<pallas_src>
import functools

import jax
import jax.numpy as jnp
from jax.experimental import pallas as pl
from jax.experimental.pallas import tpu as pltpu

HEAD_N = 128  # lane-dense width for the merged V|A output (1 + n_actions <= 128)


# ----------------------------------------------------------------------------
# Pallas kernel 1: fused  out = [relu](x @ w + b)   (used for conv matmuls)
# ----------------------------------------------------------------------------
def _matmul_bias_kernel(x_ref, w_ref, b_ref, o_ref, *, relu):
    acc = jnp.dot(x_ref[...], w_ref[...], preferred_element_type=jnp.float32)
    acc = acc + b_ref[...]                      # (1, N) f32 bias, broadcasts
    if relu:
        acc = jnp.maximum(acc, 0.0)
    o_ref[...] = acc.astype(o_ref.dtype)


def fused_linear(x, w, b2, *, relu, out_dtype):
    """x: (M, K), w: (K, N) pre-transposed, b2: (1, N) f32 -> (M, N)."""
    M, K = x.shape
    K2, N = w.shape
    assert K == K2
    return pl.pallas_call(
        functools.partial(_matmul_bias_kernel, relu=relu),
        out_shape=jax.ShapeDtypeStruct((M, N), out_dtype),
        grid=(1,),
        in_specs=[
            pl.BlockSpec((M, K), lambda i: (0, 0)),
            pl.BlockSpec((K, N), lambda i: (0, 0)),
            pl.BlockSpec((1, N), lambda i: (0, 0)),
        ],
        out_specs=pl.BlockSpec((M, N), lambda i: (0, 0)),
        compiler_params=pltpu.CompilerParams(
            dimension_semantics=("arbitrary",)),
    )(x, w, b2)


# ----------------------------------------------------------------------------
# Pallas kernel 2: the entire FC head fused in one call.
#   out = relu(relu(x @ w1 + b1) @ w2 + b2) @ w_head + b_head
# All weights (~3 MiB f32 / ~1.7 MiB bf16) are VMEM-resident for the call;
# h1 / h2 never touch HBM.
# ----------------------------------------------------------------------------
def _fc_head_kernel(x_ref, w1_ref, b1_ref, w2_ref, b2_ref, wh_ref, bh_ref,
                    o_ref):
    h1 = jnp.dot(x_ref[...], w1_ref[...],
                 preferred_element_type=jnp.float32) + b1_ref[...]
    h1 = jnp.maximum(h1, 0.0).astype(w2_ref.dtype)
    h2 = jnp.dot(h1, w2_ref[...],
                 preferred_element_type=jnp.float32) + b2_ref[...]
    h2 = jnp.maximum(h2, 0.0).astype(wh_ref.dtype)
    out = jnp.dot(h2, wh_ref[...],
                  preferred_element_type=jnp.float32) + bh_ref[...]
    o_ref[...] = out.astype(o_ref.dtype)


def fc_head(flat, w1, b1, w2, b2, wh, bh):
    """flat: (M, fc_in); returns (M, HEAD_N) f32 (col 0 = V, 1.. = A)."""
    M = flat.shape[0]
    args = (flat, w1, b1, w2, b2, wh, bh)
    return pl.pallas_call(
        _fc_head_kernel,
        out_shape=jax.ShapeDtypeStruct((M, HEAD_N), jnp.float32),
        grid=(1,),
        in_specs=[pl.BlockSpec(a.shape, lambda i: (0, 0)) for a in args],
        out_specs=pl.BlockSpec((M, HEAD_N), lambda i: (0, 0)),
        compiler_params=pltpu.CompilerParams(
            dimension_semantics=("arbitrary",)),
    )(*args)


# ----------------------------------------------------------------------------
# im2col glue (plain JAX, NHWC): columns ordered (kh, kw, c), matching the
# pre-reshaped conv weight (KH, KW, IC, OC) -> (KH*KW*IC, OC).
# No per-layer layout transposes: the matmul output reshapes straight to NHWC.
# ----------------------------------------------------------------------------
def _im2col_nhwc(x, kh, kw, stride):
    n, h, w, c = x.shape
    oh = (h - kh) // stride + 1
    ow = (w - kw) // stride + 1
    patches = []
    for i in range(kh):
        for j in range(kw):
            patches.append(
                x[:, i:i + stride * oh:stride, j:j + stride * ow:stride, :])
    p = jnp.stack(patches, axis=3)               # (N, OH, OW, KH*KW, C)
    p = p.reshape(n * oh * ow, kh * kw * c)      # cols ordered (i, j, c)
    return p, oh, ow


def conv2d_relu_nhwc(x, wp, b2, *, stride, kh, kw):
    """x: (N,H,W,C); wp: (KH*KW*C, OC) pre-reshaped; b2: (1, OC) f32."""
    n = x.shape[0]
    cols, oh, ow = _im2col_nhwc(x, kh, kw, stride)
    out = fused_linear(cols, wp, b2, relu=True, out_dtype=wp.dtype)
    return out.reshape(n, oh, ow, wp.shape[1])   # already NHWC, no transpose


# ----------------------------------------------------------------------------
# Parameters: raw (PyTorch layout) + one-time prep into kernel-friendly layout
# ----------------------------------------------------------------------------
def _conv_out(n, k, s):
    return (n - k) // s + 1


def conv_output_shape(input_dims):
    _, h, w = input_dims
    h1, w1 = _conv_out(h, 8, 4), _conv_out(w, 8, 4)
    h2, w2 = _conv_out(h1, 4, 2), _conv_out(w1, 4, 2)
    h3, w3 = _conv_out(h2, 3, 1), _conv_out(w2, 3, 1)
    return 64, h3, w3


def init_params(key, input_dims, n_actions):
    c_in = input_dims[0]
    c3, h3, w3 = conv_output_shape(input_dims)
    fc_in = c3 * h3 * w3

    ks = jax.random.split(key, 14)
    s = 0.05

    def nrm(k, shape):
        return jax.random.normal(k, shape, dtype=jnp.float32) * s

    params = {
        "conv1_w": nrm(ks[0], (32, c_in, 8, 8)),
        "conv1_b": nrm(ks[1], (32,)),
        "conv2_w": nrm(ks[2], (64, 32, 4, 4)),
        "conv2_b": nrm(ks[3], (64,)),
        "conv3_w": nrm(ks[4], (64, 64, 3, 3)),
        "conv3_b": nrm(ks[5], (64,)),
        "fc1_w": nrm(ks[6], (1024, fc_in)),   # PyTorch Linear: (out, in)
        "fc1_b": nrm(ks[7], (1024,)),
        "fc2_w": nrm(ks[8], (512, 1024)),
        "fc2_b": nrm(ks[9], (512,)),
        "V_w": nrm(ks[10], (1, 512)),
        "V_b": nrm(ks[11], (1,)),
        "A_w": nrm(ks[12], (n_actions, 512)),
        "A_b": nrm(ks[13], (n_actions,)),
    }
    return params, fc_in


def prepare_params(params, input_dims, n_actions, compute_dtype):
    """One-time weight layout prep (no per-forward transposes/reshapes)."""
    c3, h3, w3 = conv_output_shape(input_dims)

    def prep_conv(w):                      # (OC, IC, KH, KW) -> (KH*KW*IC, OC)
        oc, ic, kh, kw = w.shape
        return jnp.transpose(w, (2, 3, 1, 0)).reshape(kh * kw * ic, oc)

    def prep_bias(b):                      # (N,) -> (1, N) f32
        return b.reshape(1, -1).astype(jnp.float32)

    # fc1: permute columns so the NHWC flatten matches PyTorch's NCHW flatten.
    fc1_w = params["fc1_w"].reshape(-1, c3, h3, w3)
    fc1_w = jnp.transpose(fc1_w, (0, 2, 3, 1)).reshape(fc1_w.shape[0], -1).T

    # Merge V and A into one lane-dense (512, HEAD_N) head (zero-padded).
    n_out = 1 + n_actions
    assert n_out <= HEAD_N
    head_w = jnp.zeros((512, HEAD_N), jnp.float32)
    head_w = head_w.at[:, 0:1].set(params["V_w"].T)
    head_w = head_w.at[:, 1:n_out].set(params["A_w"].T)
    head_b = jnp.zeros((1, HEAD_N), jnp.float32)
    head_b = head_b.at[0, 0].set(params["V_b"][0])
    head_b = head_b.at[0, 1:n_out].set(params["A_b"])

    cd = compute_dtype
    return {
        "conv1_w": prep_conv(params["conv1_w"]).astype(cd),
        "conv1_b": prep_bias(params["conv1_b"]),
        "conv2_w": prep_conv(params["conv2_w"]).astype(cd),
        "conv2_b": prep_bias(params["conv2_b"]),
        "conv3_w": prep_conv(params["conv3_w"]).astype(cd),
        "conv3_b": prep_bias(params["conv3_b"]),
        "fc1_w": fc1_w.astype(cd),
        "fc1_b": prep_bias(params["fc1_b"]),
        "fc2_w": params["fc2_w"].T.astype(cd),
        "fc2_b": prep_bias(params["fc2_b"]),
        "head_w": head_w.astype(cd),
        "head_b": head_b,
    }


# ----------------------------------------------------------------------------
# Forward pass (matches DuelingDeepQNetwork.forward; returns (V, A))
# ----------------------------------------------------------------------------
def forward(pp, state, *, n_actions):
    cd = pp["conv1_w"].dtype
    x = jnp.transpose(state, (0, 2, 3, 1)).astype(cd)   # NCHW -> NHWC, once
    x = conv2d_relu_nhwc(x, pp["conv1_w"], pp["conv1_b"], stride=4, kh=8, kw=8)
    x = conv2d_relu_nhwc(x, pp["conv2_w"], pp["conv2_b"], stride=2, kh=4, kw=4)
    x = conv2d_relu_nhwc(x, pp["conv3_w"], pp["conv3_b"], stride=1, kh=3, kw=3)
    flat = x.reshape(x.shape[0], -1)        # NHWC flatten (fc1_w pre-permuted)
    out = fc_head(flat, pp["fc1_w"], pp["fc1_b"],
                  pp["fc2_w"], pp["fc2_b"],
                  pp["head_w"], pp["head_b"])
    V = out[:, :1]
    A = out[:, 1:1 + n_actions]
    return V, A


# Pure-JAX f32 reference (no Pallas) for correctness checking.
def forward_ref(params, state):
    def conv(x, w, b, stride):
        y = jax.lax.conv_general_dilated(
            x, w, window_strides=(stride, stride), padding="VALID",
            dimension_numbers=("NCHW", "OIHW", "NCHW"))
        return jnp.maximum(y + b[None, :, None, None], 0.0)

    x = conv(state, params["conv1_w"], params["conv1_b"], 4)
    x = conv(x, params["conv2_w"], params["conv2_b"], 2)
    x = conv(x, params["conv3_w"], params["conv3_b"], 1)
    flat = x.reshape(x.shape[0], -1)
    h1 = jnp.maximum(flat @ params["fc1_w"].T + params["fc1_b"], 0.0)
    h2 = jnp.maximum(h1 @ params["fc2_w"].T + params["fc2_b"], 0.0)
    V = h2 @ params["V_w"].T + params["V_b"]
    A = h2 @ params["A_w"].T + params["A_b"]
    return V, A


if __name__ == "__main__":
    key = jax.random.PRNGKey(0)
    k_param, k_state = jax.random.split(key)

    # Small shapes: batch=2, input_dims=(4, 44, 44), n_actions=6.
    # Conv chain: 44 -> 10 -> 4 -> 2  =>  fc_input_dims = 64*2*2 = 256.
    batch = 2
    input_dims = (4, 44, 44)
    n_actions = 6

    params, fc_in = init_params(k_param, input_dims, n_actions)
    state = jax.random.normal(k_state, (batch,) + input_dims, dtype=jnp.float32)

    V_ref, A_ref = forward_ref(params, state)

    fwd = jax.jit(functools.partial(forward, n_actions=n_actions))

    # 1) Structural correctness: f32 compute path vs. XLA reference (tight).
    pp_f32 = prepare_params(params, input_dims, n_actions, jnp.float32)
    V32, A32 = jax.block_until_ready(fwd(pp_f32, state))
    assert V32.shape == (batch, 1), V32.shape
    assert A32.shape == (batch, n_actions), A32.shape
    assert jnp.allclose(V32, V_ref, atol=1e-3, rtol=1e-3)
    assert jnp.allclose(A32, A_ref, atol=1e-3, rtol=1e-3)

    # 2) Performance path: bf16 operands on the MXU, f32 accumulation (loose).
    pp_bf16 = prepare_params(params, input_dims, n_actions, jnp.bfloat16)
    V, A = jax.block_until_ready(fwd(pp_bf16, state))
    assert V.shape == (batch, 1), V.shape
    assert A.shape == (batch, n_actions), A.shape
    assert jnp.allclose(V, V_ref, atol=5e-2, rtol=5e-2)
    assert jnp.allclose(A, A_ref, atol=5e-2, rtol=5e-2)

    print("KERNEL_OK")
</pallas_src>

<mosaic_0001>
module attributes {stable_mosaic.version = 11 : i64} {
  func.func @_matmul_bias_kernel(%arg0: i32, %arg1: memref<200x256xf32, #tpu.memory_space<vmem>>, %arg2: memref<256x32xf32, #tpu.memory_space<vmem>>, %arg3: memref<1x32xf32, #tpu.memory_space<vmem>>, %arg4: memref<200x32xf32, #tpu.memory_space<vmem>>) attributes {dimension_semantics = [#tpu.dimension_semantics<arbitrary>], iteration_bounds = array<i64: 1>, scalar_prefetch = 0 : i64, scratch_operands = 0 : i64, tpu.core_type = #tpu.core_type<tc>, window_params = [{pipeline_mode = #tpu.pipeline_mode<synchronous>, transform_indices = @transform_0, window_bounds = array<i64: 200, 256>}, {pipeline_mode = #tpu.pipeline_mode<synchronous>, transform_indices = @transform_1, window_bounds = array<i64: 256, 32>}, {pipeline_mode = #tpu.pipeline_mode<synchronous>, transform_indices = @transform_2, window_bounds = array<i64: 1, 32>}, {pipeline_mode = #tpu.pipeline_mode<synchronous>, transform_indices = @transform_3, window_bounds = array<i64: 200, 32>}]} {
    %c0 = arith.constant 0 : index
    %c0_0 = arith.constant 0 : index
    %0 = vector.load %arg1[%c0, %c0_0] : memref<200x256xf32, #tpu.memory_space<vmem>>, vector<200x256xf32>
    %c0_1 = arith.constant 0 : index
    %c0_2 = arith.constant 0 : index
    %1 = vector.load %arg2[%c0_1, %c0_2] : memref<256x32xf32, #tpu.memory_space<vmem>>, vector<256x32xf32>
    %cst = arith.constant dense<0.000000e+00> : vector<200x32xf32>
    %2 = tpu.matmul %0, %1, %cst {dimension_numbers = #tpu.dot_dimension_numbers<[1], [0], [0], [1], [0, 0, 1, 1], [], []>} : vector<200x256xf32>, vector<256x32xf32>, vector<200x32xf32> -> vector<200x32xf32>
    %c0_3 = arith.constant 0 : index
    %c0_4 = arith.constant 0 : index
    %3 = vector.load %arg3[%c0_3, %c0_4] : memref<1x32xf32, #tpu.memory_space<vmem>>, vector<1x32xf32>
    %4 = vector.broadcast %3 : vector<1x32xf32> to vector<200x32xf32>
    %5 = arith.addf %2, %4 : vector<200x32xf32>
    %cst_5 = arith.constant 0.000000e+00 : f32
    %6 = vector.broadcast %cst_5 : f32 to vector<200x32xf32>
    %7 = arith.maximumf %5, %6 : vector<200x32xf32>
    %c0_6 = arith.constant 0 : index
    %c0_7 = arith.constant 0 : index
    %8 = vector.load %arg4[%c0_6, %c0_7] : memref<200x32xf32, #tpu.memory_space<vmem>>, vector<200x32xf32>
    tpu.vector_store %arg4[%c0_6, %c0_7], %7 {strides = array<i32>} : memref<200x32xf32, #tpu.memory_space<vmem>>, vector<200x32xf32>,
    return
  }
  func.func @transform_0(%arg0: i32) -> (i32, i32) {
    %c0_i32 = arith.constant 0 : i32
    %c0_i32_0 = arith.constant 0 : i32
    %c0_i32_1 = arith.constant 0 : i32
    return %c0_i32, %c0_i32_0 : i32, i32
  }
  func.func @transform_1(%arg0: i32) -> (i32, i32) {
    %c0_i32 = arith.constant 0 : i32
    %c0_i32_0 = arith.constant 0 : i32
    %c0_i32_1 = arith.constant 0 : i32
    return %c0_i32, %c0_i32_0 : i32, i32
  }
  func.func @transform_2(%arg0: i32) -> (i32, i32) {
    %c0_i32 = arith.constant 0 : i32
    %c0_i32_0 = arith.constant 0 : i32
    %c0_i32_1 = arith.constant 0 : i32
    return %c0_i32, %c0_i32_0 : i32, i32
  }
  func.func @transform_3(%arg0: i32) -> (i32, i32) {
    %c0_i32 = arith.constant 0 : i32
    %c0_i32_0 = arith.constant 0 : i32
    %c0_i32_1 = arith.constant 0 : i32
    return %c0_i32, %c0_i32_0 : i32, i32
  }
}

module attributes {stable_mosaic.version = 11 : i64} {
  func.func @_matmul_bias_kernel(%arg0: i32, %arg1: memref<32x512xf32, #tpu.memory_space<vmem>>, %arg2: memref<512x64xf32, #tpu.memory_space<vmem>>, %arg3: memref<1x64xf32, #tpu.memory_space<vmem>>, %arg4: memref<32x64xf32, #tpu.memory_space<vmem>>) attributes {dimension_semantics = [#tpu.dimension_semantics<arbitrary>], iteration_bounds = array<i64: 1>, scalar_prefetch = 0 : i64, scratch_operands = 0 : i64, tpu.core_type = #tpu.core_type<tc>, window_params = [{pipeline_mode = #tpu.pipeline_mode<synchronous>, transform_indices = @transform_0, window_bounds = array<i64: 32, 512>}, {pipeline_mode = #tpu.pipeline_mode<synchronous>, transform_indices = @transform_1, window_bounds = array<i64: 512, 64>}, {pipeline_mode = #tpu.pipeline_mode<synchronous>, transform_indices = @transform_2, window_bounds = array<i64: 1, 64>}, {pipeline_mode = #tpu.pipeline_mode<synchronous>, transform_indices = @transform_3, window_bounds = array<i64: 32, 64>}]} {
    %c0 = arith.constant 0 : index
    %c0_0 = arith.constant 0 : index
    %0 = vector.load %arg1[%c0, %c0_0] : memref<32x512xf32, #tpu.memory_space<vmem>>, vector<32x512xf32>
    %c0_1 = arith.constant 0 : index
    %c0_2 = arith.constant 0 : index
    %1 = vector.load %arg2[%c0_1, %c0_2] : memref<512x64xf32, #tpu.memory_space<vmem>>, vector<512x64xf32>
    %cst = arith.constant dense<0.000000e+00> : vector<32x64xf32>
    %2 = tpu.matmul %0, %1, %cst {dimension_numbers = #tpu.dot_dimension_numbers<[1], [0], [0], [1], [0, 0, 1, 1], [], []>} : vector<32x512xf32>, vector<512x64xf32>, vector<32x64xf32> -> vector<32x64xf32>
    %c0_3 = arith.constant 0 : index
    %c0_4 = arith.constant 0 : index
    %3 = vector.load %arg3[%c0_3, %c0_4] : memref<1x64xf32, #tpu.memory_space<vmem>>, vector<1x64xf32>
    %4 = vector.broadcast %3 : vector<1x64xf32> to vector<32x64xf32>
    %5 = arith.addf %2, %4 : vector<32x64xf32>
    %cst_5 = arith.constant 0.000000e+00 : f32
    %6 = vector.broadcast %cst_5 : f32 to vector<32x64xf32>
    %7 = arith.maximumf %5, %6 : vector<32x64xf32>
    %c0_6 = arith.constant 0 : index
    %c0_7 = arith.constant 0 : index
    %8 = vector.load %arg4[%c0_6, %c0_7] : memref<32x64xf32, #tpu.memory_space<vmem>>, vector<32x64xf32>
    tpu.vector_store %arg4[%c0_6, %c0_7], %7 {strides = array<i32>} : memref<32x64xf32, #tpu.memory_space<vmem>>, vector<32x64xf32>,
    return
  }
  func.func @transform_0(%arg0: i32) -> (i32, i32) {
    %c0_i32 = arith.constant 0 : i32
    %c0_i32_0 = arith.constant 0 : i32
    %c0_i32_1 = arith.constant 0 : i32
    return %c0_i32, %c0_i32_0 : i32, i32
  }
  func.func @transform_1(%arg0: i32) -> (i32, i32) {
    %c0_i32 = arith.constant 0 : i32
    %c0_i32_0 = arith.constant 0 : i32
    %c0_i32_1 = arith.constant 0 : i32
    return %c0_i32, %c0_i32_0 : i32, i32
  }
  func.func @transform_2(%arg0: i32) -> (i32, i32) {
    %c0_i32 = arith.constant 0 : i32
    %c0_i32_0 = arith.constant 0 : i32
    %c0_i32_1 = arith.constant 0 : i32
    return %c0_i32, %c0_i32_0 : i32, i32
  }
  func.func @transform_3(%arg0: i32) -> (i32, i32) {
    %c0_i32 = arith.constant 0 : i32
    %c0_i32_0 = arith.constant 0 : i32
    %c0_i32_1 = arith.constant 0 : i32
    return %c0_i32, %c0_i32_0 : i32, i32
  }
}

module attributes {stable_mosaic.version = 11 : i64} {
  func.func @_matmul_bias_kernel(%arg0: i32, %arg1: memref<8x576xf32, #tpu.memory_space<vmem>>, %arg2: memref<576x64xf32, #tpu.memory_space<vmem>>, %arg3: memref<1x64xf32, #tpu.memory_space<vmem>>, %arg4: memref<8x64xf32, #tpu.memory_space<vmem>>) attributes {dimension_semantics = [#tpu.dimension_semantics<arbitrary>], iteration_bounds = array<i64: 1>, scalar_prefetch = 0 : i64, scratch_operands = 0 : i64, tpu.core_type = #tpu.core_type<tc>, window_params = [{pipeline_mode = #tpu.pipeline_mode<synchronous>, transform_indices = @transform_0, window_bounds = array<i64: 8, 576>}, {pipeline_mode = #tpu.pipeline_mode<synchronous>, transform_indices = @transform_1, window_bounds = array<i64: 576, 64>}, {pipeline_mode = #tpu.pipeline_mode<synchronous>, transform_indices = @transform_2, window_bounds = array<i64: 1, 64>}, {pipeline_mode = #tpu.pipeline_mode<synchronous>, transform_indices = @transform_3, window_bounds = array<i64: 8, 64>}]} {
    %c0 = arith.constant 0 : index
    %c0_0 = arith.constant 0 : index
    %0 = vector.load %arg1[%c0, %c0_0] : memref<8x576xf32, #tpu.memory_space<vmem>>, vector<8x576xf32>
    %c0_1 = arith.constant 0 : index
    %c0_2 = arith.constant 0 : index
    %1 = vector.load %arg2[%c0_1, %c0_2] : memref<576x64xf32, #tpu.memory_space<vmem>>, vector<576x64xf32>
    %cst = arith.constant dense<0.000000e+00> : vector<8x64xf32>
    %2 = tpu.matmul %0, %1, %cst {dimension_numbers = #tpu.dot_dimension_numbers<[1], [0], [0], [1], [0, 0, 1, 1], [], []>} : vector<8x576xf32>, vector<576x64xf32>, vector<8x64xf32> -> vector<8x64xf32>
    %c0_3 = arith.constant 0 : index
    %c0_4 = arith.constant 0 : index
    %3 = vector.load %arg3[%c0_3, %c0_4] : memref<1x64xf32, #tpu.memory_space<vmem>>, vector<1x64xf32>
    %4 = vector.broadcast %3 : vector<1x64xf32> to vector<8x64xf32>
    %5 = arith.addf %2, %4 : vector<8x64xf32>
    %cst_5 = arith.constant 0.000000e+00 : f32
    %6 = vector.broadcast %cst_5 : f32 to vector<8x64xf32>
    %7 = arith.maximumf %5, %6 : vector<8x64xf32>
    %c0_6 = arith.constant 0 : index
    %c0_7 = arith.constant 0 : index
    %8 = vector.load %arg4[%c0_6, %c0_7] : memref<8x64xf32, #tpu.memory_space<vmem>>, vector<8x64xf32>
    tpu.vector_store %arg4[%c0_6, %c0_7], %7 {strides = array<i32>} : memref<8x64xf32, #tpu.memory_space<vmem>>, vector<8x64xf32>,
    return
  }
  func.func @transform_0(%arg0: i32) -> (i32, i32) {
    %c0_i32 = arith.constant 0 : i32
    %c0_i32_0 = arith.constant 0 : i32
    %c0_i32_1 = arith.constant 0 : i32
    return %c0_i32, %c0_i32_0 : i32, i32
  }
  func.func @transform_1(%arg0: i32) -> (i32, i32) {
    %c0_i32 = arith.constant 0 : i32
    %c0_i32_0 = arith.constant 0 : i32
    %c0_i32_1 = arith.constant 0 : i32
    return %c0_i32, %c0_i32_0 : i32, i32
  }
  func.func @transform_2(%arg0: i32) -> (i32, i32) {
    %c0_i32 = arith.constant 0 : i32
    %c0_i32_0 = arith.constant 0 : i32
    %c0_i32_1 = arith.constant 0 : i32
    return %c0_i32, %c0_i32_0 : i32, i32
  }
  func.func @transform_3(%arg0: i32) -> (i32, i32) {
    %c0_i32 = arith.constant 0 : i32
    %c0_i32_0 = arith.constant 0 : i32
    %c0_i32_1 = arith.constant 0 : i32
    return %c0_i32, %c0_i32_0 : i32, i32
  }
}

module attributes {stable_mosaic.version = 11 : i64} {
  func.func @_fc_head_kernel(%arg0: i32, %arg1: memref<2x256xf32, #tpu.memory_space<vmem>>, %arg2: memref<256x1024xf32, #tpu.memory_space<vmem>>, %arg3: memref<1x1024xf32, #tpu.memory_space<vmem>>, %arg4: memref<1024x512xf32, #tpu.memory_space<vmem>>, %arg5: memref<1x512xf32, #tpu.memory_space<vmem>>, %arg6: memref<512x128xf32, #tpu.memory_space<vmem>>, %arg7: memref<1x128xf32, #tpu.memory_space<vmem>>, %arg8: memref<2x128xf32, #tpu.memory_space<vmem>>) attributes {dimension_semantics = [#tpu.dimension_semantics<arbitrary>], iteration_bounds = array<i64: 1>, scalar_prefetch = 0 : i64, scratch_operands = 0 : i64, tpu.core_type = #tpu.core_type<tc>, window_params = [{pipeline_mode = #tpu.pipeline_mode<synchronous>, transform_indices = @transform_0, window_bounds = array<i64: 2, 256>}, {pipeline_mode = #tpu.pipeline_mode<synchronous>, transform_indices = @transform_1, window_bounds = array<i64: 256, 1024>}, {pipeline_mode = #tpu.pipeline_mode<synchronous>, transform_indices = @transform_2, window_bounds = array<i64: 1, 1024>}, {pipeline_mode = #tpu.pipeline_mode<synchronous>, transform_indices = @transform_3, window_bounds = array<i64: 1024, 512>}, {pipeline_mode = #tpu.pipeline_mode<synchronous>, transform_indices = @transform_4, window_bounds = array<i64: 1, 512>}, {pipeline_mode = #tpu.pipeline_mode<synchronous>, transform_indices = @transform_5, window_bounds = array<i64: 512, 128>}, {pipeline_mode = #tpu.pipeline_mode<synchronous>, transform_indices = @transform_6, window_bounds = array<i64: 1, 128>}, {pipeline_mode = #tpu.pipeline_mode<synchronous>, transform_indices = @transform_7, window_bounds = array<i64: 2, 128>}]} {
    %c0 = arith.constant 0 : index
    %c0_0 = arith.constant 0 : index
    %0 = vector.load %arg1[%c0, %c0_0] : memref<2x256xf32, #tpu.memory_space<vmem>>, vector<2x256xf32>
    %c0_1 = arith.constant 0 : index
    %c0_2 = arith.constant 0 : index
    %1 = vector.load %arg2[%c0_1, %c0_2] : memref<256x1024xf32, #tpu.memory_space<vmem>>, vector<256x1024xf32>
    %cst = arith.constant dense<0.000000e+00> : vector<2x1024xf32>
    %2 = tpu.matmul %0, %1, %cst {dimension_numbers = #tpu.dot_dimension_numbers<[1], [0], [0], [1], [0, 0, 1, 1], [], []>} : vector<2x256xf32>, vector<256x1024xf32>, vector<2x1024xf32> -> vector<2x1024xf32>
    %c0_3 = arith.constant 0 : index
    %c0_4 = arith.constant 0 : index
    %3 = vector.load %arg3[%c0_3, %c0_4] : memref<1x1024xf32, #tpu.memory_space<vmem>>, vector<1x1024xf32>
    %4 = vector.broadcast %3 : vector<1x1024xf32> to vector<2x1024xf32>
    %5 = arith.addf %2, %4 : vector<2x1024xf32>
    %cst_5 = arith.constant 0.000000e+00 : f32
    %6 = vector.broadcast %cst_5 : f32 to vector<2x1024xf32>
    %7 = arith.maximumf %5, %6 : vector<2x1024xf32>
    %c0_6 = arith.constant 0 : index
    %c0_7 = arith.constant 0 : index
    %8 = vector.load %arg4[%c0_6, %c0_7] : memref<1024x512xf32, #tpu.memory_space<vmem>>, vector<1024x512xf32>
    %cst_8 = arith.constant dense<0.000000e+00> : vector<2x512xf32>
    %9 = tpu.matmul %7, %8, %cst_8 {dimension_numbers = #tpu.dot_dimension_numbers<[1], [0], [0], [1], [0, 0, 1, 1], [], []>} : vector<2x1024xf32>, vector<1024x512xf32>, vector<2x512xf32> -> vector<2x512xf32>
    %c0_9 = arith.constant 0 : index
    %c0_10 = arith.constant 0 : index
    %10 = vector.load %arg5[%c0_9, %c0_10] : memref<1x512xf32, #tpu.memory_space<vmem>>, vector<1x512xf32>
    %11 = vector.broadcast %10 : vector<1x512xf32> to vector<2x512xf32>
    %12 = arith.addf %9, %11 : vector<2x512xf32>
    %cst_11 = arith.constant 0.000000e+00 : f32
    %13 = vector.broadcast %cst_11 : f32 to vector<2x512xf32>
    %14 = arith.maximumf %12, %13 : vector<2x512xf32>
    %c0_12 = arith.constant 0 : index
    %c0_13 = arith.constant 0 : index
    %15 = vector.load %arg6[%c0_12, %c0_13] : memref<512x128xf32, #tpu.memory_space<vmem>>, vector<512x128xf32>
    %cst_14 = arith.constant dense<0.000000e+00> : vector<2x128xf32>
    %16 = tpu.matmul %14, %15, %cst_14 {dimension_numbers = #tpu.dot_dimension_numbers<[1], [0], [0], [1], [0, 0, 1, 1], [], []>} : vector<2x512xf32>, vector<512x128xf32>, vector<2x128xf32> -> vector<2x128xf32>
    %c0_15 = arith.constant 0 : index
    %c0_16 = arith.constant 0 : index
    %17 = vector.load %arg7[%c0_15, %c0_16] : memref<1x128xf32, #tpu.memory_space<vmem>>, vector<1x128xf32>
    %18 = vector.broadcast %17 : vector<1x128xf32> to vector<2x128xf32>
    %19 = arith.addf %16, %18 : vector<2x128xf32>
    %c0_17 = arith.constant 0 : index
    %c0_18 = arith.constant 0 : index
    %20 = vector.load %arg8[%c0_17, %c0_18] : memref<2x128xf32, #tpu.memory_space<vmem>>, vector<2x128xf32>
    tpu.vector_store %arg8[%c0_17, %c0_18], %19 {strides = array<i32>} : memref<2x128xf32, #tpu.memory_space<vmem>>, vector<2x128xf32>,
    return
  }
  func.func @transform_0(%arg0: i32) -> (i32, i32) {
    %c0_i32 = arith.constant 0 : i32
    %c0_i32_0 = arith.constant 0 : i32
    %c0_i32_1 = arith.constant 0 : i32
    return %c0_i32, %c0_i32_0 : i32, i32
  }
  func.func @transform_1(%arg0: i32) -> (i32, i32) {
    %c0_i32 = arith.constant 0 : i32
    %c0_i32_0 = arith.constant 0 : i32
    %c0_i32_1 = arith.constant 0 : i32
    return %c0_i32, %c0_i32_0 : i32, i32
  }
  func.func @transform_2(%arg0: i32) -> (i32, i32) {
    %c0_i32 = arith.constant 0 : i32
    %c0_i32_0 = arith.constant 0 : i32
    %c0_i32_1 = arith.constant 0 : i32
    return %c0_i32, %c0_i32_0 : i32, i32
  }
  func.func @transform_3(%arg0: i32) -> (i32, i32) {
    %c0_i32 = arith.constant 0 : i32
    %c0_i32_0 = arith.constant 0 : i32
    %c0_i32_1 = arith.constant 0 : i32
    return %c0_i32, %c0_i32_0 : i32, i32
  }
  func.func @transform_4(%arg0: i32) -> (i32, i32) {
    %c0_i32 = arith.constant 0 : i32
    %c0_i32_0 = arith.constant 0 : i32
    %c0_i32_1 = arith.constant 0 : i32
    return %c0_i32, %c0_i32_0 : i32, i32
  }
  func.func @transform_5(%arg0: i32) -> (i32, i32) {
    %c0_i32 = arith.constant 0 : i32
    %c0_i32_0 = arith.constant 0 : i32
    %c0_i32_1 = arith.constant 0 : i32
    return %c0_i32, %c0_i32_0 : i32, i32
  }
  func.func @transform_6(%arg0: i32) -> (i32, i32) {
    %c0_i32 = arith.constant 0 : i32
    %c0_i32_0 = arith.constant 0 : i32
    %c0_i32_1 = arith.constant 0 : i32
    return %c0_i32, %c0_i32_0 : i32, i32
  }
  func.func @transform_7(%arg0: i32) -> (i32, i32) {
    %c0_i32 = arith.constant 0 : i32
    %c0_i32_0 = arith.constant 0 : i32
    %c0_i32_1 = arith.constant 0 : i32
    return %c0_i32, %c0_i32_0 : i32, i32
  }
}

</mosaic_0001>

<bundles_post_ra>
// kernel: forward.4
= control target key start
LH: loop header
LB: loop body
LE: loop exit
PB: predicated region body
PF: predicated region fallthrough
CT: control target
= control target key end

     0   :  { %v414_v0 = vmov 0.0   ;;  %vm318_vm0 = vcmask 261120   ;;  %s875_s1 = inlined_call_operand.vmem [shape: f32[256,32], index: 1, kind: input, shape index: {}]   ;;  %s876_s0 = inlined_call_operand.vmem [shape: f32[200,256], index: 0, kind: input, shape index: {}]   ;;  %s877_s2 = inlined_call_operand.vmem [shape: f32[1,32], index: 2, kind: input, shape index: {}]   ;;  %s878_s3 = inlined_call_operand.vmem [shape: f32[200,32], index: 3, kind: output, shape index: {}]  }
   0x1   :  { %103 = vmatprep.subr.mxu0 %v414_v0  ;;  %v79_v1 = vld [vmem:[%s875_s1 + $0x78] sm:$0xff]  ;;  %349 = vmatprep.subr.mxu1 %v414_v0  ;;  %v78_v2 = vld [vmem:[%s875_s1 + $0x70] sm:$0xff]  ;;  %v77_v3 = vld [vmem:[%s875_s1 + $0x68] sm:$0xff] }
   0x2   :  { %104 = vmatpush1.msra.mxu0 %v79_v1  ;;  %381 = vmatpush1.msra.mxu1 %v79_v1  ;;  %v76_v4 = vld [vmem:[%s875_s1 + $0x60] sm:$0xff]  ;;  %v75_v5 = vld [vmem:[%s875_s1 + $0x58] sm:$0xff]  ;;  %v74_v6 = vld [vmem:[%s875_s1 + $0x50] sm:$0xff] }
   0x3   :  { %105 = vmatprep.subr.mxu0 %v414_v0  ;;  %350 = vmatprep.subr.mxu1 %v414_v0  ;;  %v73_v7 = vld [vmem:[%s875_s1 + $0x48] sm:$0xff]  ;;  %v72_v8 = vld [vmem:[%s875_s1 + $0x40] sm:$0xff]  ;;  %v71_v9 = vld [vmem:[%s875_s1 + $0x38] sm:$0xff] }
   0x4   :  { %106 = vmatpush1.msra.mxu0 %v78_v2  ;;  %382 = vmatpush1.msra.mxu1 %v78_v2  ;;  %v70_v10 = vld [vmem:[%s875_s1 + $0x30] sm:$0xff]  ;;  %v69_v11 = vld [vmem:[%s875_s1 + $0x28] sm:$0xff]  ;;  %v68_v12 = vld [vmem:[%s875_s1 + $0x20] sm:$0xff] }
   0x5   :  { %107 = vmatprep.subr.mxu0 %v414_v0  ;;  %351 = vmatprep.subr.mxu1 %v414_v0  ;;  %v67_v13 = vld [vmem:[%s875_s1 + $0x18] sm:$0xff]  ;;  %v66_v14 = vld [vmem:[%s875_s1 + $0x10] sm:$0xff]  ;;  %v65_v15 = vld [vmem:[%s875_s1 + $0x8] sm:$0xff] }
   0x6   :  { %108 = vmatpush1.msra.mxu0 %v77_v3  ;;  %383 = vmatpush1.msra.mxu1 %v77_v3  ;;  %v64_v16 = vld [vmem:[%s875_s1] sm:$0xff]  ;;  %v95_v17 = vld [vmem:[%s875_s1 + $0xf8] sm:$0xff]  ;;  %v94_v18 = vld [vmem:[%s875_s1 + $0xf0] sm:$0xff] }
   0x7   :  { %109 = vmatprep.subr.mxu0 %v414_v0  ;;  %352 = vmatprep.subr.mxu1 %v414_v0  ;;  %v93_v19 = vld [vmem:[%s875_s1 + $0xe8] sm:$0xff]  ;;  %v92_v20 = vld [vmem:[%s875_s1 + $0xe0] sm:$0xff]  ;;  %v91_v21 = vld [vmem:[%s875_s1 + $0xd8] sm:$0xff] }
   0x8   :  { %110 = vmatpush1.msra.mxu0 %v76_v4  ;;  %384 = vmatpush1.msra.mxu1 %v76_v4  ;;  %v90_v22 = vld [vmem:[%s875_s1 + $0xd0] sm:$0xff]  ;;  %v89_v23 = vld [vmem:[%s875_s1 + $0xc8] sm:$0xff]  ;;  %v88_v24 = vld [vmem:[%s875_s1 + $0xc0] sm:$0xff] }
   0x9   :  { %111 = vmatprep.subr.mxu0 %v414_v0  ;;  %353 = vmatprep.subr.mxu1 %v414_v0  ;;  %v87_v25 = vld [vmem:[%s875_s1 + $0xb8] sm:$0xff]  ;;  %v86_v26 = vld [vmem:[%s875_s1 + $0xb0] sm:$0xff]  ;;  %v85_v27 = vld [vmem:[%s875_s1 + $0xa8] sm:$0xff] }
   0xa   :  { %112 = vmatpush1.msra.mxu0 %v75_v5  ;;  %385 = vmatpush1.msra.mxu1 %v75_v5  ;;  %v84_v28 = vld [vmem:[%s875_s1 + $0xa0] sm:$0xff]  ;;  %v83_v29 = vld [vmem:[%s875_s1 + $0x98] sm:$0xff]  ;;  %v82_v30 = vld [vmem:[%s875_s1 + $0x90] sm:$0xff] }
   0xb   :  { %113 = vmatprep.subr.mxu0 %v414_v0  ;;  %354 = vmatprep.subr.mxu1 %v414_v0  ;;  %v81_v31 = vld [vmem:[%s875_s1 + $0x88] sm:$0xff]  ;;  %v80_v33 = vld [vmem:[%s875_s1 + $0x80] sm:$0xff]  ;;  %v41_v35 = vld [vmem:[%s876_s0 + $0xd8] sm:$0xff] }
   0xc   :  { %114 = vmatpush1.msra.mxu0 %v74_v6  ;;  %386 = vmatpush1.msra.mxu1 %v74_v6  ;;  %v15_v32 = vld [vmem:[%s876_s0 + $0x8] sm:$0xff]  ;;  %v14_v34 = vld [vmem:[%s876_s0] sm:$0xff]  ;;  %v17_v36 = vld [vmem:[%s876_s0 + $0x18] sm:$0xff] }
   0xd   :  { %115 = vmatprep.subr.mxu0 %v414_v0  ;;  %355 = vmatprep.subr.mxu1 %v414_v0  ;;  %v40_v37 = vld [vmem:[%s876_s0 + $0xd0] sm:$0xff]  ;;  %v43_v38 = vld [vmem:[%s876_s0 + $0xe8] sm:$0xff]  ;;  %v42_v41 = vld [vmem:[%s876_s0 + $0xe0] sm:$0xff] }
   0xe   :  { %116 = vmatpush1.msra.mxu0 %v73_v7  ;;  %387 = vmatpush1.msra.mxu1 %v73_v7  ;;  %v16_v39 = vld [vmem:[%s876_s0 + $0x10] sm:$0xff]  ;;  %v19_v40 = vld [vmem:[%s876_s0 + $0x28] sm:$0xff]  ;;  %v45_v42 = vld [vmem:[%s876_s0 + $0xf8] sm:$0xff] }
   0xf   :  { %117 = vmatprep.subr.mxu0 %v414_v0  ;;  %356 = vmatprep.subr.mxu1 %v414_v0  ;;  %v18_v43 = vld [vmem:[%s876_s0 + $0x20] sm:$0xff]  ;;  %v21_v44 = vld [vmem:[%s876_s0 + $0x38] sm:$0xff]  ;;  %v44_v45 = vld [vmem:[%s876_s0 + $0xf0] sm:$0xff] }
  0x10   :  { %118 = vmatpush1.msra.mxu0 %v72_v8  ;;  %388 = vmatpush1.msra.mxu1 %v72_v8  ;;  %v47_v46 = vld [vmem:[%s876_s0 + $0x108] sm:$0xff]  ;;  %v20_v47 = vld [vmem:[%s876_s0 + $0x30] sm:$0xff]  ;;  %v46_v49 = vld [vmem:[%s876_s0 + $0x100] sm:$0xff] }
  0x11   :  { %119 = vmatprep.subr.mxu0 %v414_v0  ;;  %357 = vmatprep.subr.mxu1 %v414_v0  ;;  %v23_v48 = vld [vmem:[%s876_s0 + $0x48] sm:$0xff]  ;;  %v49_v50 = vld [vmem:[%s876_s0 + $0x118] sm:$0xff]  ;;  %v22_v51 = vld [vmem:[%s876_s0 + $0x40] sm:$0xff] }
  0x12   :  { %120 = vmatpush1.msra.mxu0 %v71_v9  ;;  %389 = vmatpush1.msra.mxu1 %v71_v9  ;;  %v25_v52 = vld [vmem:[%s876_s0 + $0x58] sm:$0xff]  ;;  %v48_v53 = vld [vmem:[%s876_s0 + $0x110] sm:$0xff]  ;;  %v51_v54 = vld [vmem:[%s876_s0 + $0x128] sm:$0xff] }
  0x13   :  { %121 = vmatprep.subr.mxu0 %v414_v0  ;;  %358 = vmatprep.subr.mxu1 %v414_v0  ;;  %v24_v55 = vld [vmem:[%s876_s0 + $0x50] sm:$0xff]  ;;  %v27_v56 = vld [vmem:[%s876_s0 + $0x68] sm:$0xff]  ;;  %v50_v57 = vld [vmem:[%s876_s0 + $0x120] sm:$0xff] }
  0x14   :  { %122 = vmatpush1.msra.mxu0 %v70_v10  ;;  %390 = vmatpush1.msra.mxu1 %v70_v10  ;;  %v53_v58 = vld [vmem:[%s876_s0 + $0x138] sm:$0xff]  ;;  %v26_v59 = vld [vmem:[%s876_s0 + $0x60] sm:$0xff]  ;;  %v52_v61 = vld [vmem:[%s876_s0 + $0x130] sm:$0xff] }
  0x15   :  { %123 = vmatprep.subr.mxu0 %v414_v0  ;;  %359 = vmatprep.subr.mxu1 %v414_v0  ;;  %v29_v60 = vld [vmem:[%s876_s0 + $0x78] sm:$0xff]  ;;  %v55_v62 = vld [vmem:[%s876_s0 + $0x148] sm:$0xff]  ;;  %v28_v63 = vld [vmem:[%s876_s0 + $0x70] sm:$0xff] }
  0x16   :  { %124 = vmatpush1.msra.mxu0 %v69_v11  ;;  %391 = vmatpush1.msra.mxu1 %v69_v11  ;;  %v54_v1 = vld [vmem:[%s876_s0 + $0x140] sm:$0xff]  ;;  %v57_v2 = vld [vmem:[%s876_s0 + $0x158] sm:$0xff]  ;;  %v56_v5 = vld [vmem:[%s876_s0 + $0x150] sm:$0xff] }
  0x17   :  { %125 = vmatprep.subr.mxu0 %v414_v0  ;;  %360 = vmatprep.subr.mxu1 %v414_v0  ;;  %v30_v3 = vld [vmem:[%s876_s0 + $0x80] sm:$0xff]  ;;  %v33_v4 = vld [vmem:[%s876_s0 + $0x98] sm:$0xff]  ;;  %v59_v6 = vld [vmem:[%s876_s0 + $0x168] sm:$0xff] }
  0x18   :  { %126 = vmatpush1.msra.mxu0 %v68_v12  ;;  %392 = vmatpush1.msra.mxu1 %v68_v12  ;;  %v32_v7 = vld [vmem:[%s876_s0 + $0x90] sm:$0xff]  ;;  %v35_v8 = vld [vmem:[%s876_s0 + $0xa8] sm:$0xff]  ;;  %v58_v9 = vld [vmem:[%s876_s0 + $0x160] sm:$0xff] }
  0x19   :  { %127 = vmatprep.subr.mxu0 %v414_v0  ;;  %361 = vmatprep.subr.mxu1 %v414_v0  ;;  %v61_v10 = vld [vmem:[%s876_s0 + $0x178] sm:$0xff]  ;;  %v34_v11 = vld [vmem:[%s876_s0 + $0xa0] sm:$0xff] }
  0x1a   :  { %128 = vmatpush1.msra.mxu0 %v67_v13  ;;  %393 = vmatpush1.msra.mxu1 %v67_v13  ;;  %v37_v12 = vld [vmem:[%s876_s0 + $0xb8] sm:$0xff]  ;;  %v60_v13 = vld [vmem:[%s876_s0 + $0x170] sm:$0xff] }
  0x1b   :  { %129 = vmatprep.subr.mxu0 %v414_v0  ;;  %362 = vmatprep.subr.mxu1 %v414_v0 }
  0x1c   :  { %130 = vmatpush1.msra.mxu0 %v66_v14  ;;  %394 = vmatpush1.msra.mxu1 %v66_v14  ;;  %v63_v14 = vld [vmem:[%s876_s0 + $0x188] sm:$0xff] }
  0x1d   :  { %131 = vmatprep.subr.mxu0 %v414_v0  ;;  %363 = vmatprep.subr.mxu1 %v414_v0 }
  0x1e   :  { %132 = vmatpush1.msra.mxu0 %v65_v15  ;;  %395 = vmatpush1.msra.mxu1 %v65_v15  ;;  %v36_v15 = vld [vmem:[%s876_s0 + $0xb0] sm:$0xff] }
  0x1f   :  { %133 = vmatprep.subr.mxu0 %v414_v0  ;;  %364 = vmatprep.subr.mxu1 %v414_v0 }
  0x20   :  { %134 = vmatpush1.msra.mxu0 %v64_v16  ;;  %396 = vmatpush1.msra.mxu1 %v64_v16  ;;  %v39_v16 = vld [vmem:[%s876_s0 + $0xc8] sm:$0xff] }
  0x21   :  { %135 = vmatprep.subr.mxu0 %v414_v0  ;;  %365 = vmatprep.subr.mxu1 %v414_v0 }
  0x22   :  { %136 = vmatpush2.msra.mxu0 %v95_v17  ;;  %397 = vmatpush2.msra.mxu1 %v95_v17  ;;  %v62_v17 = vld [vmem:[%s876_s0 + $0x180] sm:$0xff] }
  0x23   :  { %137 = vmatprep.subr.mxu0 %v414_v0  ;;  %366 = vmatprep.subr.mxu1 %v414_v0 }
  0x24   :  { %138 = vmatpush2.msra.mxu0 %v94_v18  ;;  %398 = vmatpush2.msra.mxu1 %v94_v18  ;;  %v38_v18 = vld [vmem:[%s876_s0 + $0xc0] sm:$0xff] }
  0x25   :  { %139 = vmatprep.subr.mxu0 %v414_v0  ;;  %367 = vmatprep.subr.mxu1 %v414_v0 }
  0x26   :  { %140 = vmatpush2.msra.mxu0 %v93_v19  ;;  %399 = vmatpush2.msra.mxu1 %v93_v19  ;;  %v748_v19 = vld [vmem:[%s877_s2] ss:$0 sm:$0xff] }
  0x27   :  { %141 = vmatprep.subr.mxu0 %v414_v0  ;;  %368 = vmatprep.subr.mxu1 %v414_v0 }
  0x28   :  { %142 = vmatpush2.msra.mxu0 %v92_v20  ;;  %400 = vmatpush2.msra.mxu1 %v92_v20 }
  0x29   :  { %143 = vmatprep.subr.mxu0 %v414_v0  ;;  %369 = vmatprep.subr.mxu1 %v414_v0 }
  0x2a   :  { %144 = vmatpush2.msra.mxu0 %v91_v21  ;;  %401 = vmatpush2.msra.mxu1 %v91_v21 }
  0x2b   :  { %145 = vmatprep.subr.mxu0 %v414_v0  ;;  %370 = vmatprep.subr.mxu1 %v414_v0 }
  0x2c   :  { %146 = vmatpush2.msra.mxu0 %v90_v22  ;;  %402 = vmatpush2.msra.mxu1 %v90_v22 }
  0x2d   :  { %147 = vmatprep.subr.mxu0 %v414_v0  ;;  %371 = vmatprep.subr.mxu1 %v414_v0 }
  0x2e   :  { %148 = vmatpush2.msra.mxu0 %v89_v23  ;;  %403 = vmatpush2.msra.mxu1 %v89_v23 }
  0x2f   :  { %149 = vmatprep.subr.mxu0 %v414_v0  ;;  %372 = vmatprep.subr.mxu1 %v414_v0 }
  0x30   :  { %150 = vmatpush2.msra.mxu0 %v88_v24  ;;  %404 = vmatpush2.msra.mxu1 %v88_v24 }
  0x31   :  { %151 = vmatprep.subr.mxu0 %v414_v0  ;;  %373 = vmatprep.subr.mxu1 %v414_v0 }
  0x32   :  { %152 = vmatpush2.msra.mxu0 %v87_v25  ;;  %405 = vmatpush2.msra.mxu1 %v87_v25 }
  0x33   :  { %153 = vmatprep.subr.mxu0 %v414_v0  ;;  %374 = vmatprep.subr.mxu1 %v414_v0 }
  0x34   :  { %154 = vmatpush2.msra.mxu0 %v86_v26  ;;  %406 = vmatpush2.msra.mxu1 %v86_v26 }
  0x35   :  { %155 = vmatprep.subr.mxu0 %v414_v0  ;;  %375 = vmatprep.subr.mxu1 %v414_v0 }
  0x36   :  { %156 = vmatpush2.msra.mxu0 %v85_v27  ;;  %407 = vmatpush2.msra.mxu1 %v85_v27 }
  0x37   :  { %157 = vmatprep.subr.mxu0 %v414_v0  ;;  %376 = vmatprep.subr.mxu1 %v414_v0 }
  0x38   :  { %158 = vmatpush2.msra.mxu0 %v84_v28  ;;  %408 = vmatpush2.msra.mxu1 %v84_v28 }
  0x39   :  { %159 = vmatprep.subr.mxu0 %v414_v0  ;;  %377 = vmatprep.subr.mxu1 %v414_v0 }
  0x3a   :  { %160 = vmatpush2.msra.mxu0 %v83_v29  ;;  %409 = vmatpush2.msra.mxu1 %v83_v29 }
  0x3b   :  { %161 = vmatprep.subr.mxu0 %v414_v0  ;;  %378 = vmatprep.subr.mxu1 %v414_v0 }
  0x3c   :  { %162 = vmatpush2.msra.mxu0 %v82_v30  ;;  %410 = vmatpush2.msra.mxu1 %v82_v30 }
  0x3d   :  { %163 = vmatprep.subr.mxu0 %v414_v0  ;;  %379 = vmatprep.subr.mxu1 %v414_v0 }
  0x3e   :  { %164 = vmatpush2.msra.mxu0 %v81_v31  ;;  %411 = vmatpush2.msra.mxu1 %v81_v31 }
  0x3f   :  { %165 = vmatprep.subr.mxu0 %v414_v0  ;;  %167 = vmatprep.mubr.f32.mxu0 %v15_v32 }
  0x40   :  { %166 = vmatpush2.msra.mxu0 %v80_v33  ;;  %380 = vmatprep.subr.mxu1 %v414_v0  ;;  %v31_v0 = vld [vmem:[%s876_s0 + $0x88] sm:$0xff] }
  0x41   :  { %168 = vmatmul.mubr.f32.vlgmr.msra.gmra.mxu0 %v14_v34  ;;  %412 = vmatpush2.msra.mxu1 %v80_v33 }
  0x42   :  { %232 = vmatprep.mubr.f32.mxu1 %v41_v35  ;;  %172 = vmatprep.mubr.f32.mxu0 %v17_v36 }
  0x43   :  { %233 = vmatmul.mubr.f32.vlgmr.msra.gmra.mxu1 %v40_v37 }
  0x44   :  { %237 = vmatprep.mubr.f32.mxu1 %v43_v38 }
  0x45   :  { %173 = vmatmul.mubr.f32.gmra.mxu0 %v16_v39 }
  0x46   :  { %177 = vmatprep.mubr.f32.mxu0 %v19_v40 }
  0x47   :  { %238 = vmatmul.mubr.f32.gmra.mxu1 %v42_v41 }
  0x48   :  { %242 = vmatprep.mubr.f32.mxu1 %v45_v42 }
  0x49   :  { %178 = vmatmul.mubr.f32.gmra.mxu0 %v18_v43 }
  0x4a   :  { %182 = vmatprep.mubr.f32.mxu0 %v21_v44 }
  0x4b   :  { %243 = vmatmul.mubr.f32.gmra.mxu1 %v44_v45 }
  0x4c   :  { %247 = vmatprep.mubr.f32.mxu1 %v47_v46 }
  0x4d   :  { %183 = vmatmul.mubr.f32.gmra.mxu0 %v20_v47 }
  0x4e   :  { %187 = vmatprep.mubr.f32.mxu0 %v23_v48 }
  0x4f   :  { %248 = vmatmul.mubr.f32.gmra.mxu1 %v46_v49 }
  0x50   :  { %252 = vmatprep.mubr.f32.mxu1 %v49_v50 }
  0x51   :  { %188 = vmatmul.mubr.f32.gmra.mxu0 %v22_v51 }
  0x52   :  { %192 = vmatprep.mubr.f32.mxu0 %v25_v52 }
  0x53   :  { %253 = vmatmul.mubr.f32.gmra.mxu1 %v48_v53 }
  0x54   :  { %257 = vmatprep.mubr.f32.mxu1 %v51_v54 }
  0x55   :  { %193 = vmatmul.mubr.f32.gmra.mxu0 %v24_v55 }
  0x56   :  { %197 = vmatprep.mubr.f32.mxu0 %v27_v56 }
  0x57   :  { %258 = vmatmul.mubr.f32.gmra.mxu1 %v50_v57 }
  0x58   :  { %262 = vmatprep.mubr.f32.mxu1 %v53_v58 }
  0x59   :  { %198 = vmatmul.mubr.f32.gmra.mxu0 %v26_v59 }
  0x5a   :  { %202 = vmatprep.mubr.f32.mxu0 %v29_v60 }
  0x5b   :  { %263 = vmatmul.mubr.f32.gmra.mxu1 %v52_v61 }
  0x5c   :  { %267 = vmatprep.mubr.f32.mxu1 %v55_v62 }
  0x5d   :  { %203 = vmatmul.mubr.f32.gmra.mxu0 %v28_v63 }
  0x5e   :  { %207 = vmatprep.mubr.f32.mxu0 %v31_v0 }
  0x5f   :  { %268 = vmatmul.mubr.f32.gmra.mxu1 %v54_v1 }
  0x60   :  { %272 = vmatprep.mubr.f32.mxu1 %v57_v2 }
  0x61   :  { %208 = vmatmul.mubr.f32.gmra.mxu0 %v30_v3 }
  0x62   :  { %212 = vmatprep.mubr.f32.mxu0 %v33_v4 }
  0x63   :  { %273 = vmatmul.mubr.f32.gmra.mxu1 %v56_v5 }
  0x64   :  { %277 = vmatprep.mubr.f32.mxu1 %v59_v6 }
  0x65   :  { %213 = vmatmul.mubr.f32.gmra.mxu0 %v32_v7 }
  0x66   :  { %217 = vmatprep.mubr.f32.mxu0 %v35_v8 }
  0x67   :  { %278 = vmatmul.mubr.f32.gmra.mxu1 %v58_v9 }
  0x68   :  { %282 = vmatprep.mubr.f32.mxu1 %v61_v10 }
  0x69   :  { %218 = vmatmul.mubr.f32.gmra.mxu0 %v34_v11 }
  0x6a   :  { %222 = vmatprep.mubr.f32.mxu0 %v37_v12 }
  0x6b   :  { %283 = vmatmul.mubr.f32.gmra.mxu1 %v60_v13 }
  0x6c   :  { %287 = vmatprep.mubr.f32.mxu1 %v63_v14 }
  0x6d   :  { %223 = vmatmul.mubr.f32.gmra.mxu0 %v36_v15 }
  0x6e   :  { %227 = vmatprep.mubr.f32.mxu0 %v39_v16 }
  0x6f   :  { %288 = vmatmul.mubr.f32.gmra.mxu1 %v62_v17 }
  0x71   :  { %228 = vmatmul.mubr.f32.gmra.mxu0 %v38_v18 }
 0x101   :  { %v169_v20 = vpop.f32.mrf.mxu0 }
 0x102   :  { %v170_v21 = vadd.f32 %v748_v19, %v169_v20 }
 0x103   :  { %v171_v22 = vpop.f32.mrf.mxu0  ;;  %v234_v23 = vpop.f32.mrf.mxu1 }
 0x104   :  { %v293_v24 = vmax.f32 %v170_v21, 0.0  ;;  %v235_v25 = vadd.f32 %v748_v19, %v234_v23 }
 0x105   :  { %v174_v26 = vpop.f32.mrf.mxu0  ;;  %v236_v27 = vpop.f32.mrf.mxu1 }
 0x106   :  { %319 = vst.msk [vmem:[%s878_s3] sm:$0xff] %vm318_vm0, %v293_v24  ;;  %v306_v28 = vmax.f32 %v235_v25, 0.0  ;;  %v175_v29 = vadd.f32 %v748_v19, %v174_v26 }
 0x107   :  { %v176_v30 = vpop.f32.mrf.mxu0  ;;  %v239_v31 = vpop.f32.mrf.mxu1 }
 0x108   :  { %332 = vst.msk [vmem:[%s878_s3 + $0x68] sm:$0xff] %vm318_vm0, %v306_v28  ;;  %v294_v32 = vmax.f32 %v175_v29, 0.0  ;;  %v240_v33 = vadd.f32 %v748_v19, %v239_v31 }
 0x109   :  { %v179_v34 = vpop.f32.mrf.mxu0  ;;  %v241_v35 = vpop.f32.mrf.mxu1 }
 0x10a   :  { %320 = vst.msk [vmem:[%s878_s3 + $0x8] sm:$0xff] %vm318_vm0, %v294_v32  ;;  %v307_v36 = vmax.f32 %v240_v33, 0.0  ;;  %v180_v37 = vadd.f32 %v748_v19, %v179_v34 }
 0x10b   :  { %v181_v38 = vpop.f32.mrf.mxu0  ;;  %v244_v39 = vpop.f32.mrf.mxu1 }
 0x10c   :  { %333 = vst.msk [vmem:[%s878_s3 + $0x70] sm:$0xff] %vm318_vm0, %v307_v36  ;;  %v295_v40 = vmax.f32 %v180_v37, 0.0  ;;  %v245_v41 = vadd.f32 %v748_v19, %v244_v39 }
 0x10d   :  { %v184_v42 = vpop.f32.mrf.mxu0  ;;  %v246_v43 = vpop.f32.mrf.mxu1 }
 0x10e   :  { %321 = vst.msk [vmem:[%s878_s3 + $0x10] sm:$0xff] %vm318_vm0, %v295_v40  ;;  %v308_v44 = vmax.f32 %v245_v41, 0.0  ;;  %v185_v45 = vadd.f32 %v748_v19, %v184_v42 }
 0x10f   :  { %v186_v46 = vpop.f32.mrf.mxu0  ;;  %v249_v47 = vpop.f32.mrf.mxu1 }
 0x110   :  { %334 = vst.msk [vmem:[%s878_s3 + $0x78] sm:$0xff] %vm318_vm0, %v308_v44  ;;  %v296_v48 = vmax.f32 %v185_v45, 0.0  ;;  %v250_v49 = vadd.f32 %v748_v19, %v249_v47 }
 0x111   :  { %v189_v50 = vpop.f32.mrf.mxu0  ;;  %v251_v51 = vpop.f32.mrf.mxu1 }
 0x112   :  { %322 = vst.msk [vmem:[%s878_s3 + $0x18] sm:$0xff] %vm318_vm0, %v296_v48  ;;  %v309_v52 = vmax.f32 %v250_v49, 0.0  ;;  %v190_v53 = vadd.f32 %v748_v19, %v189_v50 }
 0x113   :  { %v191_v54 = vpop.f32.mrf.mxu0  ;;  %v254_v55 = vpop.f32.mrf.mxu1 }
 0x114   :  { %335 = vst.msk [vmem:[%s878_s3 + $0x80] sm:$0xff] %vm318_vm0, %v309_v52  ;;  %v297_v56 = vmax.f32 %v190_v53, 0.0  ;;  %v255_v57 = vadd.f32 %v748_v19, %v254_v55 }
 0x115   :  { %v194_v58 = vpop.f32.mrf.mxu0  ;;  %v256_v59 = vpop.f32.mrf.mxu1 }
 0x116   :  { %323 = vst.msk [vmem:[%s878_s3 + $0x20] sm:$0xff] %vm318_vm0, %v297_v56  ;;  %v310_v60 = vmax.f32 %v255_v57, 0.0  ;;  %v195_v61 = vadd.f32 %v748_v19, %v194_v58 }
 0x117   :  { %v196_v62 = vpop.f32.mrf.mxu0  ;;  %v259_v63 = vpop.f32.mrf.mxu1 }
 0x118   :  { %336 = vst.msk [vmem:[%s878_s3 + $0x88] sm:$0xff] %vm318_vm0, %v310_v60  ;;  %v298_v0 = vmax.f32 %v195_v61, 0.0  ;;  %v260_v1 = vadd.f32 %v748_v19, %v259_v63 }
 0x119   :  { %v199_v2 = vpop.f32.mrf.mxu0  ;;  %v261_v3 = vpop.f32.mrf.mxu1 }
 0x11a   :  { %324 = vst.msk [vmem:[%s878_s3 + $0x28] sm:$0xff] %vm318_vm0, %v298_v0  ;;  %v311_v4 = vmax.f32 %v260_v1, 0.0  ;;  %v200_v5 = vadd.f32 %v748_v19, %v199_v2 }
 0x11b   :  { %v201_v6 = vpop.f32.mrf.mxu0  ;;  %v264_v7 = vpop.f32.mrf.mxu1 }
 0x11c   :  { %337 = vst.msk [vmem:[%s878_s3 + $0x90] sm:$0xff] %vm318_vm0, %v311_v4  ;;  %v299_v8 = vmax.f32 %v200_v5, 0.0  ;;  %v265_v9 = vadd.f32 %v748_v19, %v264_v7 }
 0x11d   :  { %v204_v10 = vpop.f32.mrf.mxu0  ;;  %v266_v11 = vpop.f32.mrf.mxu1 }
 0x11e   :  { %325 = vst.msk [vmem:[%s878_s3 + $0x30] sm:$0xff] %vm318_vm0, %v299_v8  ;;  %v312_v12 = vmax.f32 %v265_v9, 0.0  ;;  %v205_v13 = vadd.f32 %v748_v19, %v204_v10 }
 0x11f   :  { %v206_v14 = vpop.f32.mrf.mxu0  ;;  %v269_v15 = vpop.f32.mrf.mxu1 }
 0x120   :  { %338 = vst.msk [vmem:[%s878_s3 + $0x98] sm:$0xff] %vm318_vm0, %v312_v12  ;;  %v300_v16 = vmax.f32 %v205_v13, 0.0  ;;  %v270_v17 = vadd.f32 %v748_v19, %v269_v15 }
 0x121   :  { %v209_v18 = vpop.f32.mrf.mxu0  ;;  %v271_v20 = vpop.f32.mrf.mxu1 }
 0x122   :  { %326 = vst.msk [vmem:[%s878_s3 + $0x38] sm:$0xff] %vm318_vm0, %v300_v16  ;;  %v313_v21 = vmax.f32 %v270_v17, 0.0  ;;  %v210_v22 = vadd.f32 %v748_v19, %v209_v18 }
 0x123   :  { %v211_v23 = vpop.f32.mrf.mxu0  ;;  %v274_v24 = vpop.f32.mrf.mxu1 }
 0x124   :  { %339 = vst.msk [vmem:[%s878_s3 + $0xa0] sm:$0xff] %vm318_vm0, %v313_v21  ;;  %v301_v25 = vmax.f32 %v210_v22, 0.0  ;;  %v275_v26 = vadd.f32 %v748_v19, %v274_v24 }
 0x125   :  { %v214_v27 = vpop.f32.mrf.mxu0  ;;  %v276_v28 = vpop.f32.mrf.mxu1 }
 0x126   :  { %327 = vst.msk [vmem:[%s878_s3 + $0x40] sm:$0xff] %vm318_vm0, %v301_v25  ;;  %v314_v29 = vmax.f32 %v275_v26, 0.0  ;;  %v215_v30 = vadd.f32 %v748_v19, %v214_v27 }
 0x127   :  { %v216_v31 = vpop.f32.mrf.mxu0  ;;  %v279_v32 = vpop.f32.mrf.mxu1 }
 0x128   :  { %340 = vst.msk [vmem:[%s878_s3 + $0xa8] sm:$0xff] %vm318_vm0, %v314_v29  ;;  %v302_v33 = vmax.f32 %v215_v30, 0.0  ;;  %v280_v34 = vadd.f32 %v748_v19, %v279_v32 }
 0x129   :  { %v219_v35 = vpop.f32.mrf.mxu0  ;;  %v281_v36 = vpop.f32.mrf.mxu1 }
 0x12a   :  { %328 = vst.msk [vmem:[%s878_s3 + $0x48] sm:$0xff] %vm318_vm0, %v302_v33  ;;  %v315_v37 = vmax.f32 %v280_v34, 0.0  ;;  %v220_v38 = vadd.f32 %v748_v19, %v219_v35 }
 0x12b   :  { %v221_v39 = vpop.f32.mrf.mxu0  ;;  %v284_v40 = vpop.f32.mrf.mxu1 }
 0x12c   :  { %341 = vst.msk [vmem:[%s878_s3 + $0xb0] sm:$0xff] %vm318_vm0, %v315_v37  ;;  %v303_v41 = vmax.f32 %v220_v38, 0.0  ;;  %v285_v42 = vadd.f32 %v748_v19, %v284_v40 }
 0x12d   :  { %v224_v43 = vpop.f32.mrf.mxu0  ;;  %v286_v44 = vpop.f32.mrf.mxu1 }
 0x12e   :  { %329 = vst.msk [vmem:[%s878_s3 + $0x50] sm:$0xff] %vm318_vm0, %v303_v41  ;;  %v316_v45 = vmax.f32 %v285_v42, 0.0  ;;  %v225_v46 = vadd.f32 %v748_v19, %v224_v43 }
 0x12f   :  { %v226_v47 = vpop.f32.mrf.mxu0  ;;  %v289_v48 = vpop.f32.mrf.mxu1 }
 0x130   :  { %342 = vst.msk [vmem:[%s878_s3 + $0xb8] sm:$0xff] %vm318_vm0, %v316_v45  ;;  %v304_v49 = vmax.f32 %v225_v46, 0.0  ;;  %v290_v50 = vadd.f32 %v748_v19, %v289_v48 }
 0x131   :  { %v229_v51 = vpop.f32.mrf.mxu0  ;;  %v291_v52 = vpop.f32.mrf.mxu1 }
 0x132   :  { %330 = vst.msk [vmem:[%s878_s3 + $0x58] sm:$0xff] %vm318_vm0, %v304_v49  ;;  %v317_v53 = vmax.f32 %v290_v50, 0.0  ;;  %v230_v54 = vadd.f32 %v748_v19, %v229_v51 }
 0x133   :  { %v231_v55 = vpop.f32.mrf.mxu0 }
 0x134   :  { %343 = vst.msk [vmem:[%s878_s3 + $0xc0] sm:$0xff] %vm318_vm0, %v317_v53  ;;  %v305_v56 = vmax.f32 %v230_v54, 0.0 }
 0x136   :  { %331 = vst.msk [vmem:[%s878_s3 + $0x60] sm:$0xff] %vm318_vm0, %v305_v56 }

// kernel: forward.5
= control target key start
LH: loop header
LB: loop body
LE: loop exit
PB: predicated region body
PF: predicated region fallthrough
CT: control target
= control target key end

     0   :  { %vm275_vm0 = vcmask 523264   ;;  %s652_s1 = inlined_call_operand.vmem [shape: f32[512,64], index: 1, kind: input, shape index: {}]   ;;  %s653_s0 = inlined_call_operand.vmem [shape: f32[32,512], index: 0, kind: input, shape index: {}]   ;;  %s654_s2 = inlined_call_operand.vmem [shape: f32[1,64], index: 2, kind: input, shape index: {}]   ;;  %s655_s3 = inlined_call_operand.vmem [shape: f32[32,64], index: 3, kind: output, shape index: {}]  }
   0x1   :  { %v61_v0 = vld [vmem:[%s652_s1 + $0xf8] sm:$0xff]  ;;  %v60_v4 = vld [vmem:[%s652_s1 + $0xf0] sm:$0xff]  ;;  %v59_v8 = vld [vmem:[%s652_s1 + $0xe8] sm:$0xff] }
   0x2   :  { %v93_v1 = vld [vmem:[%s652_s1 + $0x1f8] sm:$0xff]  ;;  %285 = vmatprep.subr.mxu0 %v61_v0  ;;  %v92_v5 = vld [vmem:[%s652_s1 + $0x1f0] sm:$0xff]  ;;  %v91_v9 = vld [vmem:[%s652_s1 + $0x1e8] sm:$0xff] }
   0x3   :  { %v45_v2 = vld [vmem:[%s652_s1 + $0x78] sm:$0xff]  ;;  %329 = vmatprep.subr.mxu1 %v93_v1  ;;  %v44_v6 = vld [vmem:[%s652_s1 + $0x70] sm:$0xff]  ;;  %v43_v10 = vld [vmem:[%s652_s1 + $0x68] sm:$0xff] }
   0x4   :  { %v77_v3 = vld [vmem:[%s652_s1 + $0x178] sm:$0xff]  ;;  %286 = vmatpush3.msra.mxu0 %v45_v2  ;;  %v76_v7 = vld [vmem:[%s652_s1 + $0x170] sm:$0xff]  ;;  %v75_v11 = vld [vmem:[%s652_s1 + $0x168] sm:$0xff] }
   0x5   :  { %330 = vmatpush3.msra.mxu1 %v77_v3  ;;  %287 = vmatprep.subr.mxu0 %v60_v4  ;;  %v58_v12 = vld [vmem:[%s652_s1 + $0xe0] sm:$0xff]  ;;  %v57_v16 = vld [vmem:[%s652_s1 + $0xd8] sm:$0xff]  ;;  %v56_v20 = vld [vmem:[%s652_s1 + $0xd0] sm:$0xff] }
   0x6   :  { %331 = vmatprep.subr.mxu1 %v92_v5  ;;  %288 = vmatpush3.msra.mxu0 %v44_v6  ;;  %v90_v13 = vld [vmem:[%s652_s1 + $0x1e0] sm:$0xff]  ;;  %v89_v17 = vld [vmem:[%s652_s1 + $0x1d8] sm:$0xff]  ;;  %v88_v21 = vld [vmem:[%s652_s1 + $0x1d0] sm:$0xff] }
   0x7   :  { %332 = vmatpush3.msra.mxu1 %v76_v7  ;;  %289 = vmatprep.subr.mxu0 %v59_v8  ;;  %v42_v14 = vld [vmem:[%s652_s1 + $0x60] sm:$0xff]  ;;  %v41_v18 = vld [vmem:[%s652_s1 + $0x58] sm:$0xff]  ;;  %v40_v22 = vld [vmem:[%s652_s1 + $0x50] sm:$0xff] }
   0x8   :  { %333 = vmatprep.subr.mxu1 %v91_v9  ;;  %v74_v15 = vld [vmem:[%s652_s1 + $0x160] sm:$0xff]  ;;  %290 = vmatpush3.msra.mxu0 %v43_v10  ;;  %v73_v19 = vld [vmem:[%s652_s1 + $0x158] sm:$0xff]  ;;  %v72_v23 = vld [vmem:[%s652_s1 + $0x150] sm:$0xff] }
   0x9   :  { %334 = vmatpush3.msra.mxu1 %v75_v11  ;;  %291 = vmatprep.subr.mxu0 %v58_v12  ;;  %v55_v24 = vld [vmem:[%s652_s1 + $0xc8] sm:$0xff]  ;;  %v54_v28 = vld [vmem:[%s652_s1 + $0xc0] sm:$0xff]  ;;  %v53_v32 = vld [vmem:[%s652_s1 + $0xb8] sm:$0xff] }
   0xa   :  { %335 = vmatprep.subr.mxu1 %v90_v13  ;;  %292 = vmatpush3.msra.mxu0 %v42_v14  ;;  %v87_v25 = vld [vmem:[%s652_s1 + $0x1c8] sm:$0xff]  ;;  %v86_v29 = vld [vmem:[%s652_s1 + $0x1c0] sm:$0xff]  ;;  %v85_v33 = vld [vmem:[%s652_s1 + $0x1b8] sm:$0xff] }
   0xb   :  { %336 = vmatpush3.msra.mxu1 %v74_v15  ;;  %293 = vmatprep.subr.mxu0 %v57_v16  ;;  %v39_v26 = vld [vmem:[%s652_s1 + $0x48] sm:$0xff]  ;;  %v38_v30 = vld [vmem:[%s652_s1 + $0x40] sm:$0xff]  ;;  %v37_v34 = vld [vmem:[%s652_s1 + $0x38] sm:$0xff] }
   0xc   :  { %337 = vmatprep.subr.mxu1 %v89_v17  ;;  %294 = vmatpush3.msra.mxu0 %v41_v18  ;;  %v71_v27 = vld [vmem:[%s652_s1 + $0x148] sm:$0xff]  ;;  %v70_v31 = vld [vmem:[%s652_s1 + $0x140] sm:$0xff]  ;;  %v69_v35 = vld [vmem:[%s652_s1 + $0x138] sm:$0xff] }
   0xd   :  { %338 = vmatpush3.msra.mxu1 %v73_v19  ;;  %295 = vmatprep.subr.mxu0 %v56_v20  ;;  %v52_v36 = vld [vmem:[%s652_s1 + $0xb0] sm:$0xff]  ;;  %v51_v40 = vld [vmem:[%s652_s1 + $0xa8] sm:$0xff]  ;;  %v50_v44 = vld [vmem:[%s652_s1 + $0xa0] sm:$0xff] }
   0xe   :  { %339 = vmatprep.subr.mxu1 %v88_v21  ;;  %296 = vmatpush3.msra.mxu0 %v40_v22  ;;  %v84_v37 = vld [vmem:[%s652_s1 + $0x1b0] sm:$0xff]  ;;  %v83_v41 = vld [vmem:[%s652_s1 + $0x1a8] sm:$0xff]  ;;  %v82_v45 = vld [vmem:[%s652_s1 + $0x1a0] sm:$0xff] }
   0xf   :  { %340 = vmatpush3.msra.mxu1 %v72_v23  ;;  %297 = vmatprep.subr.mxu0 %v55_v24  ;;  %v36_v38 = vld [vmem:[%s652_s1 + $0x30] sm:$0xff]  ;;  %v35_v42 = vld [vmem:[%s652_s1 + $0x28] sm:$0xff]  ;;  %v34_v46 = vld [vmem:[%s652_s1 + $0x20] sm:$0xff] }
  0x10   :  { %341 = vmatprep.subr.mxu1 %v87_v25  ;;  %298 = vmatpush3.msra.mxu0 %v39_v26  ;;  %v68_v39 = vld [vmem:[%s652_s1 + $0x130] sm:$0xff]  ;;  %v67_v43 = vld [vmem:[%s652_s1 + $0x128] sm:$0xff]  ;;  %v66_v47 = vld [vmem:[%s652_s1 + $0x120] sm:$0xff] }
  0x11   :  { %342 = vmatpush3.msra.mxu1 %v71_v27  ;;  %299 = vmatprep.subr.mxu0 %v54_v28  ;;  %v49_v48 = vld [vmem:[%s652_s1 + $0x98] sm:$0xff]  ;;  %v48_v52 = vld [vmem:[%s652_s1 + $0x90] sm:$0xff]  ;;  %v47_v56 = vld [vmem:[%s652_s1 + $0x88] sm:$0xff] }
  0x12   :  { %343 = vmatprep.subr.mxu1 %v86_v29  ;;  %300 = vmatpush3.msra.mxu0 %v38_v30  ;;  %v81_v49 = vld [vmem:[%s652_s1 + $0x198] sm:$0xff]  ;;  %v80_v53 = vld [vmem:[%s652_s1 + $0x190] sm:$0xff]  ;;  %v79_v57 = vld [vmem:[%s652_s1 + $0x188] sm:$0xff] }
  0x13   :  { %344 = vmatpush3.msra.mxu1 %v70_v31  ;;  %301 = vmatprep.subr.mxu0 %v53_v32  ;;  %v33_v50 = vld [vmem:[%s652_s1 + $0x18] sm:$0xff]  ;;  %v32_v54 = vld [vmem:[%s652_s1 + $0x10] sm:$0xff]  ;;  %v31_v58 = vld [vmem:[%s652_s1 + $0x8] sm:$0xff] }
  0x14   :  { %345 = vmatprep.subr.mxu1 %v85_v33  ;;  %302 = vmatpush3.msra.mxu0 %v37_v34  ;;  %v65_v51 = vld [vmem:[%s652_s1 + $0x118] sm:$0xff]  ;;  %v64_v55 = vld [vmem:[%s652_s1 + $0x110] sm:$0xff]  ;;  %v63_v59 = vld [vmem:[%s652_s1 + $0x108] sm:$0xff] }
  0x15   :  { %346 = vmatpush3.msra.mxu1 %v69_v35  ;;  %303 = vmatprep.subr.mxu0 %v52_v36  ;;  %v46_v60 = vld [vmem:[%s652_s1 + $0x80] sm:$0xff]  ;;  %v15_v63 = vld [vmem:[%s653_s0 + $0x8] sm:$0xff]  ;;  %v17_v1 = vld [vmem:[%s653_s0 + $0x18] sm:$0xff] }
  0x16   :  { %347 = vmatprep.subr.mxu1 %v84_v37  ;;  %304 = vmatpush3.msra.mxu0 %v36_v38  ;;  %v78_v61 = vld [vmem:[%s652_s1 + $0x180] sm:$0xff]  ;;  %v16_v3 = vld [vmem:[%s653_s0 + $0x10] sm:$0xff]  ;;  %v19_v4 = vld [vmem:[%s653_s0 + $0x28] sm:$0xff] }
  0x17   :  { %348 = vmatpush3.msra.mxu1 %v68_v39  ;;  %305 = vmatprep.subr.mxu0 %v51_v40  ;;  %v30_v62 = vld [vmem:[%s652_s1] sm:$0xff]  ;;  %v21_v5 = vld [vmem:[%s653_s0 + $0x38] sm:$0xff]  ;;  %v20_v7 = vld [vmem:[%s653_s0 + $0x30] sm:$0xff] }
  0x18   :  { %349 = vmatprep.subr.mxu1 %v83_v41  ;;  %306 = vmatpush3.msra.mxu0 %v35_v42  ;;  %v62_v0 = vld [vmem:[%s652_s1 + $0x100] sm:$0xff]  ;;  %v23_v8 = vld [vmem:[%s653_s0 + $0x48] sm:$0xff]  ;;  %v25_v9 = vld [vmem:[%s653_s0 + $0x58] sm:$0xff] }
  0x19   :  { %350 = vmatpush3.msra.mxu1 %v67_v43  ;;  %307 = vmatprep.subr.mxu0 %v50_v44  ;;  %v14_v2 = vld [vmem:[%s653_s0] sm:$0xff]  ;;  %v24_v11 = vld [vmem:[%s653_s0 + $0x50] sm:$0xff]  ;;  %v27_v12 = vld [vmem:[%s653_s0 + $0x68] sm:$0xff] }
  0x1a   :  { %351 = vmatprep.subr.mxu1 %v82_v45  ;;  %308 = vmatpush3.msra.mxu0 %v34_v46  ;;  %v18_v6 = vld [vmem:[%s653_s0 + $0x20] sm:$0xff]  ;;  %v29_v13 = vld [vmem:[%s653_s0 + $0x78] sm:$0xff]  ;;  %v28_v15 = vld [vmem:[%s653_s0 + $0x70] sm:$0xff] }
  0x1b   :  { %352 = vmatpush3.msra.mxu1 %v66_v47  ;;  %309 = vmatprep.subr.mxu0 %v49_v48  ;;  %v22_v10 = vld [vmem:[%s653_s0 + $0x40] sm:$0xff] }
  0x1c   :  { %353 = vmatprep.subr.mxu1 %v81_v49  ;;  %310 = vmatpush3.msra.mxu0 %v33_v50  ;;  %v26_v14 = vld [vmem:[%s653_s0 + $0x60] sm:$0xff] }
  0x1d   :  { %354 = vmatpush3.msra.mxu1 %v65_v51  ;;  %311 = vmatprep.subr.mxu0 %v48_v52  ;;  %v284_v18 = vld [vmem:[%s654_s2] ss:$0 sm:$0xff] }
  0x1e   :  { %355 = vmatprep.subr.mxu1 %v80_v53  ;;  %312 = vmatpush3.msra.mxu0 %v32_v54 }
  0x1f   :  { %356 = vmatpush3.msra.mxu1 %v64_v55  ;;  %313 = vmatprep.subr.mxu0 %v47_v56 }
  0x20   :  { %357 = vmatprep.subr.mxu1 %v79_v57  ;;  %314 = vmatpush3.msra.mxu0 %v31_v58 }
  0x21   :  { %358 = vmatpush3.msra.mxu1 %v63_v59  ;;  %315 = vmatprep.subr.mxu0 %v46_v60 }
  0x22   :  { %359 = vmatprep.subr.mxu1 %v78_v61  ;;  %316 = vmatpush3.msra.mxu0 %v30_v62 }
  0x23   :  { %165 = vmatprep.mubr.f32.mxu0 %v15_v63  ;;  %360 = vmatpush3.msra.mxu1 %v62_v0 }
  0x24   :  { %250 = vmatprep.mubr.f32.mxu1 %v17_v1  ;;  %166 = vmatmul.mubr.f32.vlgmr.msra.gmra.mxu0 %v14_v2 }
  0x25   :  { %251 = vmatmul.mubr.f32.vlgmr.msra.gmra.mxu1 %v16_v3  ;;  %170 = vmatprep.mubr.f32.mxu0 %v19_v4 }
  0x26   :  { %255 = vmatprep.mubr.f32.mxu1 %v21_v5 }
  0x28   :  { %171 = vmatmul.mubr.f32.gmra.mxu0 %v18_v6 }
  0x29   :  { %256 = vmatmul.mubr.f32.gmra.mxu1 %v20_v7  ;;  %175 = vmatprep.mubr.f32.mxu0 %v23_v8 }
  0x2a   :  { %260 = vmatprep.mubr.f32.mxu1 %v25_v9 }
  0x2c   :  { %176 = vmatmul.mubr.f32.gmra.mxu0 %v22_v10 }
  0x2d   :  { %261 = vmatmul.mubr.f32.gmra.mxu1 %v24_v11  ;;  %180 = vmatprep.mubr.f32.mxu0 %v27_v12 }
  0x2e   :  { %265 = vmatprep.mubr.f32.mxu1 %v29_v13 }
  0x30   :  { %181 = vmatmul.mubr.f32.gmra.mxu0 %v26_v14 }
  0x31   :  { %266 = vmatmul.mubr.f32.gmra.mxu1 %v28_v15 }
  0xe4   :  { %v317_v16 = vpop.f32.mrf.mxu0 }
  0xe5   :  { %v361_v17 = vpop.f32.mrf.mxu1 }
  0xe6   :  { %v318_v19 = vpop.f32.mrf.mxu0 }
  0xe7   :  { %v362_v20 = vpop.f32.mrf.mxu1  ;;  %v319_v21 = vadd.f32 %v318_v19, %v317_v16 }
  0xe8   :  { %v320_v22 = vpop.f32.mrf.mxu0  ;;  %v363_v25 = vadd.f32 %v362_v20, %v361_v17 }
  0xe9   :  { %v364_v23 = vpop.f32.mrf.mxu1  ;;  %v168_v24 = vadd.f32 %v319_v21, %v284_v18 }
  0xea   :  { %v321_v26 = vpop.f32.mrf.mxu0 }
  0xeb   :  { %v365_v27 = vpop.f32.mrf.mxu1  ;;  %v253_v28 = vadd.f32 %v363_v25, %v168_v24  ;;  %v322_v29 = vadd.f32 %v321_v26, %v320_v22 }
  0xec   :  { %v323_v30 = vpop.f32.mrf.mxu0  ;;  %v366_v34 = vadd.f32 %v365_v27, %v364_v23 }
  0xed   :  { %v367_v31 = vpop.f32.mrf.mxu1  ;;  %v271_v32 = vmax.f32 %v253_v28, 0.0  ;;  %v173_v33 = vadd.f32 %v322_v29, %v284_v18 }
  0xee   :  { %v324_v35 = vpop.f32.mrf.mxu0 }
  0xef   :  { %v368_v36 = vpop.f32.mrf.mxu1  ;;  %276 = vst.msk [vmem:[%s655_s3] sm:$0xff] %vm275_vm0, %v271_v32  ;;  %v258_v37 = vadd.f32 %v366_v34, %v173_v33  ;;  %v325_v38 = vadd.f32 %v324_v35, %v323_v30 }
  0xf0   :  { %v326_v39 = vpop.f32.mrf.mxu0  ;;  %v369_v43 = vadd.f32 %v368_v36, %v367_v31 }
  0xf1   :  { %v370_v40 = vpop.f32.mrf.mxu1  ;;  %v272_v41 = vmax.f32 %v258_v37, 0.0  ;;  %v178_v42 = vadd.f32 %v325_v38, %v284_v18 }
  0xf2   :  { %v327_v44 = vpop.f32.mrf.mxu0 }
  0xf3   :  { %v371_v45 = vpop.f32.mrf.mxu1  ;;  %277 = vst.msk [vmem:[%s655_s3 + $0x8] sm:$0xff] %vm275_vm0, %v272_v41  ;;  %v263_v46 = vadd.f32 %v369_v43, %v178_v42  ;;  %v328_v47 = vadd.f32 %v327_v44, %v326_v39 }
  0xf4   :  { %v372_v50 = vadd.f32 %v371_v45, %v370_v40 }
  0xf5   :  { %v273_v48 = vmax.f32 %v263_v46, 0.0  ;;  %v183_v49 = vadd.f32 %v328_v47, %v284_v18 }
  0xf7   :  { %278 = vst.msk [vmem:[%s655_s3 + $0x10] sm:$0xff] %vm275_vm0, %v273_v48  ;;  %v268_v51 = vadd.f32 %v372_v50, %v183_v49 }
  0xf9   :  { %v274_v52 = vmax.f32 %v268_v51, 0.0 }
  0xfb   :  { %279 = vst.msk [vmem:[%s655_s3 + $0x18] sm:$0xff] %vm275_vm0, %v274_v52 }

// kernel: forward.6
= control target key start
LH: loop header
LB: loop body
LE: loop exit
PB: predicated region body
PF: predicated region fallthrough
CT: control target
= control target key end

     0   :  { %vm421_vm0 = vmmov 0   ;;  %vm98_vm1 = vcmask 523264   ;;  %s681_s1 = inlined_call_operand.vmem [shape: f32[576,64], index: 1, kind: input, shape index: {}]   ;;  %s682_s0 = inlined_call_operand.vmem [shape: f32[8,576], index: 0, kind: input, shape index: {}]   ;;  %s683_s2 = inlined_call_operand.vmem [shape: f32[1,64], index: 2, kind: input, shape index: {}]   ;;  %s684_s3 = inlined_call_operand.vmem [shape: f32[8,64], index: 3, kind: output, shape index: {}]  }
   0x1   :  { %v50_v0 = vld [vmem:[%s681_s1 + $0xf8] sm:$0xff]  ;;  %v49_v2 = vld [vmem:[%s681_s1 + $0xf0] sm:$0xff]  ;;  %v48_v6 = vld [vmem:[%s681_s1 + $0xe8] sm:$0xff] }
   0x2   :  { %v34_v1 = vld [vmem:[%s681_s1 + $0x78] sm:$0xff]  ;;  %320 = vmatprep.subr.mxu0 %v50_v0  ;;  %v33_v4 = vld [vmem:[%s681_s1 + $0x70] sm:$0xff]  ;;  %v32_v8 = vld [vmem:[%s681_s1 + $0x68] sm:$0xff] }
   0x3   :  { %v82_v3 = vld [vmem:[%s681_s1 + $0x1f8] sm:$0xff]  ;;  %321 = vmatpush3.msra.mxu0 %v34_v1  ;;  %v81_v7 = vld [vmem:[%s681_s1 + $0x1f0] sm:$0xff]  ;;  %v80_v10 = vld [vmem:[%s681_s1 + $0x1e8] sm:$0xff] }
   0x4   :  { %v66_v5 = vld [vmem:[%s681_s1 + $0x178] sm:$0xff]  ;;  %355 = vmatprep.subr.mxu1 %v82_v3  ;;  %322 = vmatprep.subr.mxu0 %v49_v2  ;;  %v65_v9 = vld [vmem:[%s681_s1 + $0x170] sm:$0xff]  ;;  %v47_v11 = vld [vmem:[%s681_s1 + $0xe0] sm:$0xff] }
   0x5   :  { %356 = vmatpush3.msra.mxu1 %v66_v5  ;;  %323 = vmatpush3.msra.mxu0 %v33_v4  ;;  %v64_v12 = vld [vmem:[%s681_s1 + $0x168] sm:$0xff]  ;;  %v31_v13 = vld [vmem:[%s681_s1 + $0x60] sm:$0xff]  ;;  %v46_v15 = vld [vmem:[%s681_s1 + $0xd8] sm:$0xff]  ;;  %v420_v5 = vmov 0.0  }
   0x6   :  { %357 = vmatprep.subr.mxu1 %v81_v7  ;;  %324 = vmatprep.subr.mxu0 %v48_v6  ;;  %v79_v14 = vld [vmem:[%s681_s1 + $0x1e0] sm:$0xff]  ;;  %v30_v17 = vld [vmem:[%s681_s1 + $0x58] sm:$0xff]  ;;  %v45_v19 = vld [vmem:[%s681_s1 + $0xd0] sm:$0xff] }
   0x7   :  { %358 = vmatpush3.msra.mxu1 %v65_v9  ;;  %325 = vmatpush3.msra.mxu0 %v32_v8  ;;  %v63_v16 = vld [vmem:[%s681_s1 + $0x160] sm:$0xff]  ;;  %v78_v18 = vld [vmem:[%s681_s1 + $0x1d8] sm:$0xff]  ;;  %v29_v21 = vld [vmem:[%s681_s1 + $0x50] sm:$0xff] }
   0x8   :  { %359 = vmatprep.subr.mxu1 %v80_v10  ;;  %326 = vmatprep.subr.mxu0 %v47_v11  ;;  %v62_v20 = vld [vmem:[%s681_s1 + $0x158] sm:$0xff]  ;;  %v77_v22 = vld [vmem:[%s681_s1 + $0x1d0] sm:$0xff]  ;;  %v44_v23 = vld [vmem:[%s681_s1 + $0xc8] sm:$0xff] }
   0x9   :  { %360 = vmatpush3.msra.mxu1 %v64_v12  ;;  %327 = vmatpush3.msra.mxu0 %v31_v13  ;;  %v61_v24 = vld [vmem:[%s681_s1 + $0x150] sm:$0xff]  ;;  %v28_v25 = vld [vmem:[%s681_s1 + $0x48] sm:$0xff]  ;;  %v43_v27 = vld [vmem:[%s681_s1 + $0xc0] sm:$0xff] }
   0xa   :  { %361 = vmatprep.subr.mxu1 %v79_v14  ;;  %328 = vmatprep.subr.mxu0 %v46_v15  ;;  %v76_v26 = vld [vmem:[%s681_s1 + $0x1c8] sm:$0xff]  ;;  %v27_v29 = vld [vmem:[%s681_s1 + $0x40] sm:$0xff]  ;;  %v42_v31 = vld [vmem:[%s681_s1 + $0xb8] sm:$0xff] }
   0xb   :  { %362 = vmatpush3.msra.mxu1 %v63_v16  ;;  %329 = vmatpush3.msra.mxu0 %v30_v17  ;;  %v60_v28 = vld [vmem:[%s681_s1 + $0x148] sm:$0xff]  ;;  %v75_v30 = vld [vmem:[%s681_s1 + $0x1c0] sm:$0xff]  ;;  %v26_v33 = vld [vmem:[%s681_s1 + $0x38] sm:$0xff] }
   0xc   :  { %363 = vmatprep.subr.mxu1 %v78_v18  ;;  %330 = vmatprep.subr.mxu0 %v45_v19  ;;  %v59_v32 = vld [vmem:[%s681_s1 + $0x140] sm:$0xff]  ;;  %v74_v34 = vld [vmem:[%s681_s1 + $0x1b8] sm:$0xff]  ;;  %v41_v35 = vld [vmem:[%s681_s1 + $0xb0] sm:$0xff] }
   0xd   :  { %364 = vmatpush3.msra.mxu1 %v62_v20  ;;  %331 = vmatpush3.msra.mxu0 %v29_v21  ;;  %v58_v36 = vld [vmem:[%s681_s1 + $0x138] sm:$0xff]  ;;  %v25_v37 = vld [vmem:[%s681_s1 + $0x30] sm:$0xff]  ;;  %v40_v39 = vld [vmem:[%s681_s1 + $0xa8] sm:$0xff] }
   0xe   :  { %365 = vmatprep.subr.mxu1 %v77_v22  ;;  %332 = vmatprep.subr.mxu0 %v44_v23  ;;  %v73_v38 = vld [vmem:[%s681_s1 + $0x1b0] sm:$0xff]  ;;  %v24_v41 = vld [vmem:[%s681_s1 + $0x28] sm:$0xff]  ;;  %v39_v43 = vld [vmem:[%s681_s1 + $0xa0] sm:$0xff] }
   0xf   :  { %366 = vmatpush3.msra.mxu1 %v61_v24  ;;  %333 = vmatpush3.msra.mxu0 %v28_v25  ;;  %v57_v40 = vld [vmem:[%s681_s1 + $0x130] sm:$0xff]  ;;  %v72_v42 = vld [vmem:[%s681_s1 + $0x1a8] sm:$0xff]  ;;  %v23_v45 = vld [vmem:[%s681_s1 + $0x20] sm:$0xff] }
  0x10   :  { %367 = vmatprep.subr.mxu1 %v76_v26  ;;  %334 = vmatprep.subr.mxu0 %v43_v27  ;;  %v56_v44 = vld [vmem:[%s681_s1 + $0x128] sm:$0xff]  ;;  %v71_v46 = vld [vmem:[%s681_s1 + $0x1a0] sm:$0xff]  ;;  %v38_v47 = vld [vmem:[%s681_s1 + $0x98] sm:$0xff] }
  0x11   :  { %368 = vmatpush3.msra.mxu1 %v60_v28  ;;  %335 = vmatpush3.msra.mxu0 %v27_v29  ;;  %v55_v48 = vld [vmem:[%s681_s1 + $0x120] sm:$0xff]  ;;  %v22_v49 = vld [vmem:[%s681_s1 + $0x18] sm:$0xff]  ;;  %v37_v51 = vld [vmem:[%s681_s1 + $0x90] sm:$0xff] }
  0x12   :  { %369 = vmatprep.subr.mxu1 %v75_v30  ;;  %336 = vmatprep.subr.mxu0 %v42_v31  ;;  %v70_v50 = vld [vmem:[%s681_s1 + $0x198] sm:$0xff]  ;;  %v21_v53 = vld [vmem:[%s681_s1 + $0x10] sm:$0xff]  ;;  %v36_v55 = vld [vmem:[%s681_s1 + $0x88] sm:$0xff] }
  0x13   :  { %370 = vmatpush3.msra.mxu1 %v59_v32  ;;  %337 = vmatpush3.msra.mxu0 %v26_v33  ;;  %v54_v52 = vld [vmem:[%s681_s1 + $0x118] sm:$0xff]  ;;  %v69_v54 = vld [vmem:[%s681_s1 + $0x190] sm:$0xff]  ;;  %v20_v57 = vld [vmem:[%s681_s1 + $0x8] sm:$0xff] }
  0x14   :  { %371 = vmatprep.subr.mxu1 %v74_v34  ;;  %338 = vmatprep.subr.mxu0 %v41_v35  ;;  %v53_v56 = vld [vmem:[%s681_s1 + $0x110] sm:$0xff]  ;;  %v68_v58 = vld [vmem:[%s681_s1 + $0x188] sm:$0xff]  ;;  %v35_v59 = vld [vmem:[%s681_s1 + $0x80] sm:$0xff] }
  0x15   :  { %372 = vmatpush3.msra.mxu1 %v58_v36  ;;  %339 = vmatpush3.msra.mxu0 %v25_v37  ;;  %v15_v60 = vld [vmem:[%s682_s0 + $0x8] sm:$0xff]  ;;  %v19_v61 = vld [vmem:[%s681_s1] sm:$0xff]  ;;  %v17_v2 = vld [vmem:[%s682_s0 + $0x18] sm:$0xff] }
  0x16   :  { %373 = vmatprep.subr.mxu1 %v73_v38  ;;  %340 = vmatprep.subr.mxu0 %v40_v39  ;;  %v52_v62 = vld [vmem:[%s681_s1 + $0x108] sm:$0xff]  ;;  %v14_v63 = vld [vmem:[%s682_s0] sm:$0xff]  ;;  %v90_v3 = vld [vmem:[%s681_s1 + $0x238] sm:$0xff] }
  0x17   :  { %374 = vmatpush3.msra.mxu1 %v57_v40  ;;  %341 = vmatpush3.msra.mxu0 %v24_v41  ;;  %v67_v0 = vld [vmem:[%s681_s1 + $0x180] sm:$0xff]  ;;  %v16_v4 = vld [vmem:[%s682_s0 + $0x10] sm:$0xff]  ;;  %v88_v7 = vld [vmem:[%s681_s1 + $0x228] sm:$0xff] }
  0x18   :  { %375 = vmatprep.subr.mxu1 %v72_v42  ;;  %342 = vmatprep.subr.mxu0 %v39_v43  ;;  %v51_v1 = vld [vmem:[%s681_s1 + $0x100] sm:$0xff]  ;;  %v89_v6 = vld [vmem:[%s681_s1 + $0x230] sm:$0xff]  ;;  %v86_v9 = vld [vmem:[%s681_s1 + $0x218] sm:$0xff] }
  0x19   :  { %376 = vmatpush3.msra.mxu1 %v56_v44  ;;  %343 = vmatpush3.msra.mxu0 %v23_v45  ;;  %v87_v8 = vld [vmem:[%s681_s1 + $0x220] sm:$0xff]  ;;  %v85_v10 = vld [vmem:[%s681_s1 + $0x210] sm:$0xff]  ;;  %v84_v11 = vld [vmem:[%s681_s1 + $0x208] sm:$0xff] }
  0x1a   :  { %377 = vmatprep.subr.mxu1 %v71_v46  ;;  %344 = vmatprep.subr.mxu0 %v38_v47  ;;  %v83_v12 = vld [vmem:[%s681_s1 + $0x200] sm:$0xff] }
  0x1b   :  { %378 = vmatpush3.msra.mxu1 %v55_v48  ;;  %345 = vmatpush3.msra.mxu0 %v22_v49  ;;  %v18_v13 = vld [vmem:[%s682_s0 + $0x20] sm:$0xff] }
  0x1c   :  { %379 = vmatprep.subr.mxu1 %v70_v50  ;;  %346 = vmatprep.subr.mxu0 %v37_v51  ;;  %v318_v18 = vld [vmem:[%s683_s2] ss:$0 sm:$0xff] }
  0x1d   :  { %380 = vmatpush3.msra.mxu1 %v54_v52  ;;  %347 = vmatpush3.msra.mxu0 %v21_v53 }
  0x1e   :  { %381 = vmatprep.subr.mxu1 %v69_v54  ;;  %348 = vmatprep.subr.mxu0 %v36_v55 }
  0x1f   :  { %382 = vmatpush3.msra.mxu1 %v53_v56  ;;  %349 = vmatpush3.msra.mxu0 %v20_v57 }
  0x20   :  { %383 = vmatprep.subr.mxu1 %v68_v58  ;;  %350 = vmatprep.subr.mxu0 %v35_v59 }
  0x21   :  { %166 = vmatprep.mubr.f32.mxu0 %v15_v60  ;;  %351 = vmatpush3.msra.mxu0 %v19_v61 }
  0x22   :  { %384 = vmatpush3.msra.mxu1 %v52_v62  ;;  %167 = vmatmul.mubr.f32.vlgmr.msra.gmra.mxu0 %v14_v63 }
  0x23   :  { %385 = vmatprep.subr.mxu1 %v67_v0  ;;  %399 = vmatprep.subr.mxu0 %v420_v5 }
  0x24   :  { %386 = vmatpush3.msra.mxu1 %v51_v1  ;;  %236 = vmatprep.mubr.f32.mxu1 %v17_v2 }
  0x25   :  { %400 = vmatpush3.msra.mxu0 %v90_v3  ;;  %237 = vmatmul.mubr.f32.vlgmr.msra.gmra.mxu1 %v16_v4 }
  0x26   :  { %401 = vmatprep.subr.mxu0 %v420_v5  ;;  %415 = vmatprep.mubr.msk.f32.mxu0 %vm421_vm0, %v420_v5 }
  0x27   :  { %402 = vmatpush3.msra.mxu0 %v89_v6 }
  0x28   :  { %403 = vmatprep.subr.mxu0 %v420_v5 }
  0x29   :  { %404 = vmatpush3.msra.mxu0 %v88_v7 }
  0x2a   :  { %405 = vmatprep.subr.mxu0 %v420_v5 }
  0x2b   :  { %406 = vmatpush3.msra.mxu0 %v87_v8 }
  0x2c   :  { %407 = vmatprep.subr.mxu0 %v420_v5 }
  0x2d   :  { %408 = vmatpush3.msra.mxu0 %v86_v9 }
  0x2e   :  { %409 = vmatprep.subr.mxu0 %v420_v5 }
  0x2f   :  { %410 = vmatpush3.msra.mxu0 %v85_v10 }
  0x30   :  { %411 = vmatprep.subr.mxu0 %v420_v5 }
  0x31   :  { %412 = vmatpush3.msra.mxu0 %v84_v11 }
  0x32   :  { %413 = vmatprep.subr.mxu0 %v420_v5 }
  0x33   :  { %414 = vmatpush3.msra.mxu0 %v83_v12 }
  0x34   :  { %416 = vmatmul.mubr.msk.f32.vlgmr.msra.gmra.mxu0 %vm98_vm1, %v18_v13 }
  0xe2   :  { %v352_v14 = vpop.f32.mrf.mxu0 }
  0xe4   :  { %v353_v15 = vpop.f32.mrf.mxu0 }
  0xe5   :  { %v387_v16 = vpop.f32.mrf.mxu1  ;;  %v354_v17 = vadd.f32 %v353_v15, %v352_v14 }
  0xe7   :  { %v388_v19 = vpop.f32.mrf.mxu1  ;;  %v169_v20 = vadd.f32 %v354_v17, %v318_v18 }
  0xe8   :  { %v389_v21 = vadd.f32 %v388_v19, %v387_v16 }
  0xea   :  { %v239_v22 = vadd.f32 %v389_v21, %v169_v20 }
  0xf4   :  { %v308_v23 = vpop.f32.mrf.mxu0 }
  0xf5   :  { %v309_v24 = vadd.f32 %v308_v23, %v239_v22 }
  0xf6   :  { %v417_v25 = vpop.f32.mrf.mxu0 }
  0xf7   :  { %v312_v26 = vmax.f32 %v309_v24, 0.0 }
  0xf9   :  { %313 = vst.msk [vmem:[%s684_s3] sm:$0xff] %vm98_vm1, %v312_v26 }

// kernel: forward.7
= control target key start
LH: loop header
LB: loop body
LE: loop exit
PB: predicated region body
PF: predicated region fallthrough
CT: control target
= control target key end

     0   :  { %s4679_s1 = inlined_call_operand.vmem [shape: f32[256,1024], index: 1, kind: input, shape index: {}]   ;;  %s4680_s0 = inlined_call_operand.vmem [shape: f32[2,256], index: 0, kind: input, shape index: {}]   ;;  %s4681_s3 = inlined_call_operand.vmem [shape: f32[1024,512], index: 3, kind: input, shape index: {}]   ;;  %s4682_s2 = inlined_call_operand.vmem [shape: f32[1,1024], index: 2, kind: input, shape index: {}]   ;;  %s4683_s5 = inlined_call_operand.vmem [shape: f32[512,128], index: 5, kind: input, shape index: {}]   ;;  %s4684_s4 = inlined_call_operand.vmem [shape: f32[1,512], index: 4, kind: input, shape index: {}]   ;;  %s4685_s6 = inlined_call_operand.vmem [shape: f32[1,128], index: 6, kind: input, shape index: {}]   ;;  %s4686_s7 = inlined_call_operand.vmem [shape: f32[2,128], index: 7, kind: output, shape index: {}]  }
   0x1   :  { %v148_v0 = vld [vmem:[%s4679_s1 + $0x3c8] sm:$0xff]  ;;  %v150_v1 = vld [vmem:[%s4679_s1 + $0x3d8] sm:$0xff]  ;;  %v147_v2 = vld [vmem:[%s4679_s1 + $0x3c0] sm:$0xff] }
   0x2   :  { %336 = vmatprep.subr.mxu0 %v148_v0  ;;  %407 = vmatprep.subr.mxu1 %v150_v1  ;;  %v149_v3 = vld [vmem:[%s4679_s1 + $0x3d0] sm:$0xff]  ;;  %v140_v4 = vld [vmem:[%s4679_s1 + $0x388] sm:$0xff]  ;;  %v142_v5 = vld [vmem:[%s4679_s1 + $0x398] sm:$0xff] }
   0x3   :  { %337 = vmatpush1.msra.mxu0 %v147_v2  ;;  %408 = vmatpush1.msra.mxu1 %v149_v3  ;;  %v139_v6 = vld [vmem:[%s4679_s1 + $0x380] sm:$0xff]  ;;  %v141_v7 = vld [vmem:[%s4679_s1 + $0x390] sm:$0xff]  ;;  %v132_v8 = vld [vmem:[%s4679_s1 + $0x348] sm:$0xff] }
   0x4   :  { %338 = vmatprep.subr.mxu0 %v140_v4  ;;  %409 = vmatprep.subr.mxu1 %v142_v5  ;;  %v134_v9 = vld [vmem:[%s4679_s1 + $0x358] sm:$0xff]  ;;  %v131_v10 = vld [vmem:[%s4679_s1 + $0x340] sm:$0xff]  ;;  %v133_v11 = vld [vmem:[%s4679_s1 + $0x350] sm:$0xff] }
   0x5   :  { %339 = vmatpush1.msra.mxu0 %v139_v6  ;;  %410 = vmatpush1.msra.mxu1 %v141_v7  ;;  %v124_v12 = vld [vmem:[%s4679_s1 + $0x308] sm:$0xff]  ;;  %v126_v13 = vld [vmem:[%s4679_s1 + $0x318] sm:$0xff]  ;;  %v123_v14 = vld [vmem:[%s4679_s1 + $0x300] sm:$0xff] }
   0x6   :  { %340 = vmatprep.subr.mxu0 %v132_v8  ;;  %411 = vmatprep.subr.mxu1 %v134_v9  ;;  %v125_v15 = vld [vmem:[%s4679_s1 + $0x310] sm:$0xff]  ;;  %v116_v16 = vld [vmem:[%s4679_s1 + $0x2c8] sm:$0xff]  ;;  %v118_v17 = vld [vmem:[%s4679_s1 + $0x2d8] sm:$0xff] }
   0x7   :  { %341 = vmatpush1.msra.mxu0 %v131_v10  ;;  %412 = vmatpush1.msra.mxu1 %v133_v11  ;;  %v115_v18 = vld [vmem:[%s4679_s1 + $0x2c0] sm:$0xff]  ;;  %v117_v19 = vld [vmem:[%s4679_s1 + $0x2d0] sm:$0xff]  ;;  %v108_v20 = vld [vmem:[%s4679_s1 + $0x288] sm:$0xff] }
   0x8   :  { %342 = vmatprep.subr.mxu0 %v124_v12  ;;  %413 = vmatprep.subr.mxu1 %v126_v13  ;;  %v110_v21 = vld [vmem:[%s4679_s1 + $0x298] sm:$0xff]  ;;  %v107_v22 = vld [vmem:[%s4679_s1 + $0x280] sm:$0xff]  ;;  %v109_v23 = vld [vmem:[%s4679_s1 + $0x290] sm:$0xff] }
   0x9   :  { %343 = vmatpush1.msra.mxu0 %v123_v14  ;;  %414 = vmatpush1.msra.mxu1 %v125_v15  ;;  %v100_v24 = vld [vmem:[%s4679_s1 + $0x248] sm:$0xff]  ;;  %v102_v25 = vld [vmem:[%s4679_s1 + $0x258] sm:$0xff]  ;;  %v99_v26 = vld [vmem:[%s4679_s1 + $0x240] sm:$0xff] }
   0xa   :  { %344 = vmatprep.subr.mxu0 %v116_v16  ;;  %415 = vmatprep.subr.mxu1 %v118_v17  ;;  %v101_v27 = vld [vmem:[%s4679_s1 + $0x250] sm:$0xff]  ;;  %v92_v28 = vld [vmem:[%s4679_s1 + $0x208] sm:$0xff]  ;;  %v94_v29 = vld [vmem:[%s4679_s1 + $0x218] sm:$0xff] }
   0xb   :  { %345 = vmatpush1.msra.mxu0 %v115_v18  ;;  %416 = vmatpush1.msra.mxu1 %v117_v19  ;;  %v91_v30 = vld [vmem:[%s4679_s1 + $0x200] sm:$0xff]  ;;  %v93_v31 = vld [vmem:[%s4679_s1 + $0x210] sm:$0xff]  ;;  %v84_v32 = vld [vmem:[%s4679_s1 + $0x1c8] sm:$0xff] }
   0xc   :  { %346 = vmatprep.subr.mxu0 %v108_v20  ;;  %417 = vmatprep.subr.mxu1 %v110_v21  ;;  %v86_v33 = vld [vmem:[%s4679_s1 + $0x1d8] sm:$0xff]  ;;  %v83_v34 = vld [vmem:[%s4679_s1 + $0x1c0] sm:$0xff]  ;;  %v85_v35 = vld [vmem:[%s4679_s1 + $0x1d0] sm:$0xff] }
   0xd   :  { %347 = vmatpush1.msra.mxu0 %v107_v22  ;;  %418 = vmatpush1.msra.mxu1 %v109_v23  ;;  %v76_v36 = vld [vmem:[%s4679_s1 + $0x188] sm:$0xff]  ;;  %v78_v37 = vld [vmem:[%s4679_s1 + $0x198] sm:$0xff]  ;;  %v75_v38 = vld [vmem:[%s4679_s1 + $0x180] sm:$0xff] }
   0xe   :  { %348 = vmatprep.subr.mxu0 %v100_v24  ;;  %419 = vmatprep.subr.mxu1 %v102_v25  ;;  %v77_v39 = vld [vmem:[%s4679_s1 + $0x190] sm:$0xff]  ;;  %v68_v40 = vld [vmem:[%s4679_s1 + $0x148] sm:$0xff]  ;;  %v70_v41 = vld [vmem:[%s4679_s1 + $0x158] sm:$0xff] }
   0xf   :  { %349 = vmatpush1.msra.mxu0 %v99_v26  ;;  %420 = vmatpush1.msra.mxu1 %v101_v27  ;;  %v67_v42 = vld [vmem:[%s4679_s1 + $0x140] sm:$0xff]  ;;  %v69_v43 = vld [vmem:[%s4679_s1 + $0x150] sm:$0xff]  ;;  %v60_v44 = vld [vmem:[%s4679_s1 + $0x108] sm:$0xff] }
  0x10   :  { %350 = vmatprep.subr.mxu0 %v92_v28  ;;  %421 = vmatprep.subr.mxu1 %v94_v29  ;;  %v62_v45 = vld [vmem:[%s4679_s1 + $0x118] sm:$0xff]  ;;  %v59_v46 = vld [vmem:[%s4679_s1 + $0x100] sm:$0xff]  ;;  %v61_v47 = vld [vmem:[%s4679_s1 + $0x110] sm:$0xff] }
  0x11   :  { %351 = vmatpush1.msra.mxu0 %v91_v30  ;;  %422 = vmatpush1.msra.mxu1 %v93_v31  ;;  %v52_v48 = vld [vmem:[%s4679_s1 + $0xc8] sm:$0xff]  ;;  %v54_v49 = vld [vmem:[%s4679_s1 + $0xd8] sm:$0xff]  ;;  %v51_v50 = vld [vmem:[%s4679_s1 + $0xc0] sm:$0xff] }
  0x12   :  { %352 = vmatprep.subr.mxu0 %v84_v32  ;;  %423 = vmatprep.subr.mxu1 %v86_v33  ;;  %v53_v51 = vld [vmem:[%s4679_s1 + $0xd0] sm:$0xff]  ;;  %v44_v52 = vld [vmem:[%s4679_s1 + $0x88] sm:$0xff]  ;;  %v46_v53 = vld [vmem:[%s4679_s1 + $0x98] sm:$0xff] }
  0x13   :  { %353 = vmatpush1.msra.mxu0 %v83_v34  ;;  %424 = vmatpush1.msra.mxu1 %v85_v35  ;;  %v43_v54 = vld [vmem:[%s4679_s1 + $0x80] sm:$0xff]  ;;  %v45_v55 = vld [vmem:[%s4679_s1 + $0x90] sm:$0xff]  ;;  %v36_v56 = vld [vmem:[%s4679_s1 + $0x48] sm:$0xff] }
  0x14   :  { %354 = vmatprep.subr.mxu0 %v76_v36  ;;  %425 = vmatprep.subr.mxu1 %v78_v37  ;;  %v38_v57 = vld [vmem:[%s4679_s1 + $0x58] sm:$0xff]  ;;  %v35_v58 = vld [vmem:[%s4679_s1 + $0x40] sm:$0xff]  ;;  %v37_v59 = vld [vmem:[%s4679_s1 + $0x50] sm:$0xff] }
  0x15   :  { %355 = vmatpush1.msra.mxu0 %v75_v38  ;;  %426 = vmatpush1.msra.mxu1 %v77_v39  ;;  %v28_v60 = vld [vmem:[%s4679_s1 + $0x8] sm:$0xff]  ;;  %v30_v61 = vld [vmem:[%s4679_s1 + $0x18] sm:$0xff]  ;;  %v27_v62 = vld [vmem:[%s4679_s1] sm:$0xff] }
  0x16   :  { %356 = vmatprep.subr.mxu0 %v68_v40  ;;  %427 = vmatprep.subr.mxu1 %v70_v41  ;;  %v29_v63 = vld [vmem:[%s4679_s1 + $0x10] sm:$0xff]  ;;  %v276_v0 = vld [vmem:[%s4679_s1 + $0x7c8] sm:$0xff]  ;;  %v278_v1 = vld [vmem:[%s4679_s1 + $0x7d8] sm:$0xff] }
  0x17   :  { %357 = vmatpush1.msra.mxu0 %v67_v42  ;;  %428 = vmatpush1.msra.mxu1 %v69_v43  ;;  %v275_v2 = vld [vmem:[%s4679_s1 + $0x7c0] sm:$0xff]  ;;  %v277_v3 = vld [vmem:[%s4679_s1 + $0x7d0] sm:$0xff]  ;;  %v268_v4 = vld [vmem:[%s4679_s1 + $0x788] sm:$0xff] }
  0x18   :  { %358 = vmatprep.subr.mxu0 %v60_v44  ;;  %429 = vmatprep.subr.mxu1 %v62_v45  ;;  %v270_v5 = vld [vmem:[%s4679_s1 + $0x798] sm:$0xff]  ;;  %v267_v6 = vld [vmem:[%s4679_s1 + $0x780] sm:$0xff]  ;;  %v269_v7 = vld [vmem:[%s4679_s1 + $0x790] sm:$0xff] }
  0x19   :  { %359 = vmatpush1.msra.mxu0 %v59_v46  ;;  %430 = vmatpush1.msra.mxu1 %v61_v47  ;;  %v260_v8 = vld [vmem:[%s4679_s1 + $0x748] sm:$0xff]  ;;  %v262_v9 = vld [vmem:[%s4679_s1 + $0x758] sm:$0xff]  ;;  %v259_v10 = vld [vmem:[%s4679_s1 + $0x740] sm:$0xff] }
  0x1a   :  { %360 = vmatprep.subr.mxu0 %v52_v48  ;;  %431 = vmatprep.subr.mxu1 %v54_v49  ;;  %v261_v11 = vld [vmem:[%s4679_s1 + $0x750] sm:$0xff]  ;;  %v252_v12 = vld [vmem:[%s4679_s1 + $0x708] sm:$0xff]  ;;  %v254_v13 = vld [vmem:[%s4679_s1 + $0x718] sm:$0xff] }
  0x1b   :  { %361 = vmatpush1.msra.mxu0 %v51_v50  ;;  %432 = vmatpush1.msra.mxu1 %v53_v51  ;;  %v251_v14 = vld [vmem:[%s4679_s1 + $0x700] sm:$0xff]  ;;  %v253_v15 = vld [vmem:[%s4679_s1 + $0x710] sm:$0xff]  ;;  %v244_v16 = vld [vmem:[%s4679_s1 + $0x6c8] sm:$0xff] }
  0x1c   :  { %362 = vmatprep.subr.mxu0 %v44_v52  ;;  %433 = vmatprep.subr.mxu1 %v46_v53  ;;  %v246_v17 = vld [vmem:[%s4679_s1 + $0x6d8] sm:$0xff]  ;;  %v243_v18 = vld [vmem:[%s4679_s1 + $0x6c0] sm:$0xff]  ;;  %v245_v19 = vld [vmem:[%s4679_s1 + $0x6d0] sm:$0xff] }
  0x1d   :  { %363 = vmatpush1.msra.mxu0 %v43_v54  ;;  %434 = vmatpush1.msra.mxu1 %v45_v55  ;;  %v236_v20 = vld [vmem:[%s4679_s1 + $0x688] sm:$0xff]  ;;  %v238_v21 = vld [vmem:[%s4679_s1 + $0x698] sm:$0xff]  ;;  %v235_v22 = vld [vmem:[%s4679_s1 + $0x680] sm:$0xff] }
  0x1e   :  { %364 = vmatprep.subr.mxu0 %v36_v56  ;;  %435 = vmatprep.subr.mxu1 %v38_v57  ;;  %v237_v23 = vld [vmem:[%s4679_s1 + $0x690] sm:$0xff]  ;;  %v228_v24 = vld [vmem:[%s4679_s1 + $0x648] sm:$0xff]  ;;  %v230_v25 = vld [vmem:[%s4679_s1 + $0x658] sm:$0xff] }
  0x1f   :  { %365 = vmatpush1.msra.mxu0 %v35_v58  ;;  %436 = vmatpush1.msra.mxu1 %v37_v59  ;;  %v227_v26 = vld [vmem:[%s4679_s1 + $0x640] sm:$0xff]  ;;  %v229_v27 = vld [vmem:[%s4679_s1 + $0x650] sm:$0xff]  ;;  %v220_v28 = vld [vmem:[%s4679_s1 + $0x608] sm:$0xff] }
  0x20   :  { %366 = vmatprep.subr.mxu0 %v28_v60  ;;  %437 = vmatprep.subr.mxu1 %v30_v61  ;;  %v222_v29 = vld [vmem:[%s4679_s1 + $0x618] sm:$0xff]  ;;  %v219_v30 = vld [vmem:[%s4679_s1 + $0x600] sm:$0xff]  ;;  %v221_v31 = vld [vmem:[%s4679_s1 + $0x610] sm:$0xff] }
  0x21   :  { %367 = vmatpush1.msra.mxu0 %v27_v62  ;;  %438 = vmatpush1.msra.mxu1 %v29_v63  ;;  %v212_v32 = vld [vmem:[%s4679_s1 + $0x5c8] sm:$0xff]  ;;  %v214_v33 = vld [vmem:[%s4679_s1 + $0x5d8] sm:$0xff]  ;;  %v211_v34 = vld [vmem:[%s4679_s1 + $0x5c0] sm:$0xff] }
  0x22   :  { %368 = vmatprep.subr.mxu0 %v276_v0  ;;  %439 = vmatprep.subr.mxu1 %v278_v1  ;;  %v213_v35 = vld [vmem:[%s4679_s1 + $0x5d0] sm:$0xff]  ;;  %v204_v36 = vld [vmem:[%s4679_s1 + $0x588] sm:$0xff]  ;;  %v206_v37 = vld [vmem:[%s4679_s1 + $0x598] sm:$0xff] }
  0x23   :  { %369 = vmatpush2.msra.mxu0 %v275_v2  ;;  %440 = vmatpush2.msra.mxu1 %v277_v3  ;;  %v203_v38 = vld [vmem:[%s4679_s1 + $0x580] sm:$0xff]  ;;  %v205_v39 = vld [vmem:[%s4679_s1 + $0x590] sm:$0xff]  ;;  %v196_v40 = vld [vmem:[%s4679_s1 + $0x548] sm:$0xff] }
  0x24   :  { %370 = vmatprep.subr.mxu0 %v268_v4  ;;  %441 = vmatprep.subr.mxu1 %v270_v5  ;;  %v198_v41 = vld [vmem:[%s4679_s1 + $0x558] sm:$0xff]  ;;  %v195_v42 = vld [vmem:[%s4679_s1 + $0x540] sm:$0xff]  ;;  %v197_v43 = vld [vmem:[%s4679_s1 + $0x550] sm:$0xff] }
  0x25   :  { %371 = vmatpush2.msra.mxu0 %v267_v6  ;;  %442 = vmatpush2.msra.mxu1 %v269_v7  ;;  %v188_v44 = vld [vmem:[%s4679_s1 + $0x508] sm:$0xff]  ;;  %v190_v45 = vld [vmem:[%s4679_s1 + $0x518] sm:$0xff]  ;;  %v187_v46 = vld [vmem:[%s4679_s1 + $0x500] sm:$0xff] }
  0x26   :  { %372 = vmatprep.subr.mxu0 %v260_v8  ;;  %443 = vmatprep.subr.mxu1 %v262_v9  ;;  %v189_v47 = vld [vmem:[%s4679_s1 + $0x510] sm:$0xff]  ;;  %v180_v48 = vld [vmem:[%s4679_s1 + $0x4c8] sm:$0xff]  ;;  %v182_v49 = vld [vmem:[%s4679_s1 + $0x4d8] sm:$0xff] }
  0x27   :  { %373 = vmatpush2.msra.mxu0 %v259_v10  ;;  %444 = vmatpush2.msra.mxu1 %v261_v11  ;;  %v179_v50 = vld [vmem:[%s4679_s1 + $0x4c0] sm:$0xff]  ;;  %v181_v51 = vld [vmem:[%s4679_s1 + $0x4d0] sm:$0xff]  ;;  %v172_v52 = vld [vmem:[%s4679_s1 + $0x488] sm:$0xff] }
  0x28   :  { %374 = vmatprep.subr.mxu0 %v252_v12  ;;  %445 = vmatprep.subr.mxu1 %v254_v13  ;;  %v174_v53 = vld [vmem:[%s4679_s1 + $0x498] sm:$0xff]  ;;  %v171_v54 = vld [vmem:[%s4679_s1 + $0x480] sm:$0xff]  ;;  %v173_v55 = vld [vmem:[%s4679_s1 + $0x490] sm:$0xff] }
  0x29   :  { %375 = vmatpush2.msra.mxu0 %v251_v14  ;;  %446 = vmatpush2.msra.mxu1 %v253_v15  ;;  %v2425_v56 = vld.sshfl [vmem:[%s4680_s0] sm:$0x33 pattern:$0x76325410]  ;;  %v164_v57 = vld [vmem:[%s4679_s1 + $0x448] sm:$0xff]  ;;  %v166_v58 = vld [vmem:[%s4679_s1 + $0x458] sm:$0xff] }
  0x2a   :  { %376 = vmatprep.subr.mxu0 %v244_v16  ;;  %447 = vmatprep.subr.mxu1 %v246_v17  ;;  %v163_v59 = vld [vmem:[%s4679_s1 + $0x440] sm:$0xff]  ;;  %v165_v60 = vld [vmem:[%s4679_s1 + $0x450] sm:$0xff]  ;;  %v156_v61 = vld [vmem:[%s4679_s1 + $0x408] sm:$0xff]  ;;  %v2447_v63 = vcombine.high %v2425_v56, %v2425_v56 }
  0x2b   :  { %377 = vmatpush2.msra.mxu0 %v243_v18  ;;  %448 = vmatpush2.msra.mxu1 %v245_v19  ;;  %v158_v62 = vld [vmem:[%s4679_s1 + $0x418] sm:$0xff]  ;;  %v155_v0 = vld [vmem:[%s4679_s1 + $0x400] sm:$0xff]  ;;  %v157_v1 = vld [vmem:[%s4679_s1 + $0x410] sm:$0xff] }
  0x2c   :  { %378 = vmatprep.subr.mxu0 %v236_v20  ;;  %449 = vmatprep.subr.mxu1 %v238_v21  ;;  %v152_v2 = vld [vmem:[%s4679_s1 + $0x3e8] sm:$0xff]  ;;  %v154_v3 = vld [vmem:[%s4679_s1 + $0x3f8] sm:$0xff]  ;;  %v151_v4 = vld [vmem:[%s4679_s1 + $0x3e0] sm:$0xff] }
  0x2d   :  { %379 = vmatpush2.msra.mxu0 %v235_v22  ;;  %450 = vmatpush2.msra.mxu1 %v237_v23  ;;  %v153_v5 = vld [vmem:[%s4679_s1 + $0x3f0] sm:$0xff]  ;;  %v144_v6 = vld [vmem:[%s4679_s1 + $0x3a8] sm:$0xff]  ;;  %v146_v7 = vld [vmem:[%s4679_s1 + $0x3b8] sm:$0xff] }
  0x2e   :  { %380 = vmatprep.subr.mxu0 %v228_v24  ;;  %451 = vmatprep.subr.mxu1 %v230_v25  ;;  %v143_v8 = vld [vmem:[%s4679_s1 + $0x3a0] sm:$0xff]  ;;  %v145_v9 = vld [vmem:[%s4679_s1 + $0x3b0] sm:$0xff]  ;;  %v136_v10 = vld [vmem:[%s4679_s1 + $0x368] sm:$0xff] }
  0x2f   :  { %381 = vmatpush2.msra.mxu0 %v227_v26  ;;  %452 = vmatpush2.msra.mxu1 %v229_v27  ;;  %v138_v11 = vld [vmem:[%s4679_s1 + $0x378] sm:$0xff]  ;;  %v135_v12 = vld [vmem:[%s4679_s1 + $0x360] sm:$0xff]  ;;  %v137_v13 = vld [vmem:[%s4679_s1 + $0x370] sm:$0xff] }
  0x30   :  { %382 = vmatprep.subr.mxu0 %v220_v28  ;;  %453 = vmatprep.subr.mxu1 %v222_v29  ;;  %v128_v14 = vld [vmem:[%s4679_s1 + $0x328] sm:$0xff]  ;;  %v130_v15 = vld [vmem:[%s4679_s1 + $0x338] sm:$0xff]  ;;  %v127_v16 = vld [vmem:[%s4679_s1 + $0x320] sm:$0xff] }
  0x31   :  { %383 = vmatpush2.msra.mxu0 %v219_v30  ;;  %454 = vmatpush2.msra.mxu1 %v221_v31  ;;  %v129_v17 = vld [vmem:[%s4679_s1 + $0x330] sm:$0xff]  ;;  %v120_v18 = vld [vmem:[%s4679_s1 + $0x2e8] sm:$0xff]  ;;  %v122_v19 = vld [vmem:[%s4679_s1 + $0x2f8] sm:$0xff] }
  0x32   :  { %384 = vmatprep.subr.mxu0 %v212_v32  ;;  %455 = vmatprep.subr.mxu1 %v214_v33  ;;  %v119_v20 = vld [vmem:[%s4679_s1 + $0x2e0] sm:$0xff]  ;;  %v121_v21 = vld [vmem:[%s4679_s1 + $0x2f0] sm:$0xff]  ;;  %v112_v22 = vld [vmem:[%s4679_s1 + $0x2a8] sm:$0xff] }
  0x33   :  { %385 = vmatpush2.msra.mxu0 %v211_v34  ;;  %456 = vmatpush2.msra.mxu1 %v213_v35  ;;  %v114_v23 = vld [vmem:[%s4679_s1 + $0x2b8] sm:$0xff]  ;;  %v111_v24 = vld [vmem:[%s4679_s1 + $0x2a0] sm:$0xff]  ;;  %v113_v25 = vld [vmem:[%s4679_s1 + $0x2b0] sm:$0xff] }
  0x34   :  { %386 = vmatprep.subr.mxu0 %v204_v36  ;;  %457 = vmatprep.subr.mxu1 %v206_v37  ;;  %v104_v26 = vld [vmem:[%s4679_s1 + $0x268] sm:$0xff]  ;;  %v106_v27 = vld [vmem:[%s4679_s1 + $0x278] sm:$0xff]  ;;  %v103_v28 = vld [vmem:[%s4679_s1 + $0x260] sm:$0xff] }
  0x35   :  { %387 = vmatpush2.msra.mxu0 %v203_v38  ;;  %458 = vmatpush2.msra.mxu1 %v205_v39  ;;  %v105_v29 = vld [vmem:[%s4679_s1 + $0x270] sm:$0xff]  ;;  %v96_v30 = vld [vmem:[%s4679_s1 + $0x228] sm:$0xff]  ;;  %v98_v31 = vld [vmem:[%s4679_s1 + $0x238] sm:$0xff] }
  0x36   :  { %388 = vmatprep.subr.mxu0 %v196_v40  ;;  %459 = vmatprep.subr.mxu1 %v198_v41  ;;  %v95_v32 = vld [vmem:[%s4679_s1 + $0x220] sm:$0xff]  ;;  %v97_v33 = vld [vmem:[%s4679_s1 + $0x230] sm:$0xff]  ;;  %v88_v34 = vld [vmem:[%s4679_s1 + $0x1e8] sm:$0xff] }
  0x37   :  { %389 = vmatpush2.msra.mxu0 %v195_v42  ;;  %460 = vmatpush2.msra.mxu1 %v197_v43  ;;  %v90_v35 = vld [vmem:[%s4679_s1 + $0x1f8] sm:$0xff]  ;;  %v87_v36 = vld [vmem:[%s4679_s1 + $0x1e0] sm:$0xff]  ;;  %v89_v37 = vld [vmem:[%s4679_s1 + $0x1f0] sm:$0xff] }
  0x38   :  { %390 = vmatprep.subr.mxu0 %v188_v44  ;;  %461 = vmatprep.subr.mxu1 %v190_v45  ;;  %v80_v38 = vld [vmem:[%s4679_s1 + $0x1a8] sm:$0xff]  ;;  %v82_v39 = vld [vmem:[%s4679_s1 + $0x1b8] sm:$0xff]  ;;  %v79_v40 = vld [vmem:[%s4679_s1 + $0x1a0] sm:$0xff] }
  0x39   :  { %391 = vmatpush2.msra.mxu0 %v187_v46  ;;  %462 = vmatpush2.msra.mxu1 %v189_v47  ;;  %v81_v41 = vld [vmem:[%s4679_s1 + $0x1b0] sm:$0xff]  ;;  %v72_v42 = vld [vmem:[%s4679_s1 + $0x168] sm:$0xff]  ;;  %v74_v43 = vld [vmem:[%s4679_s1 + $0x178] sm:$0xff] }
  0x3a   :  { %392 = vmatprep.subr.mxu0 %v180_v48  ;;  %463 = vmatprep.subr.mxu1 %v182_v49  ;;  %v71_v44 = vld [vmem:[%s4679_s1 + $0x160] sm:$0xff]  ;;  %v73_v45 = vld [vmem:[%s4679_s1 + $0x170] sm:$0xff]  ;;  %v64_v46 = vld [vmem:[%s4679_s1 + $0x128] sm:$0xff] }
  0x3b   :  { %393 = vmatpush2.msra.mxu0 %v179_v50  ;;  %464 = vmatpush2.msra.mxu1 %v181_v51  ;;  %v66_v47 = vld [vmem:[%s4679_s1 + $0x138] sm:$0xff]  ;;  %v63_v48 = vld [vmem:[%s4679_s1 + $0x120] sm:$0xff]  ;;  %v65_v49 = vld [vmem:[%s4679_s1 + $0x130] sm:$0xff] }
  0x3c   :  { %394 = vmatprep.subr.mxu0 %v172_v52  ;;  %465 = vmatprep.subr.mxu1 %v174_v53  ;;  %v56_v50 = vld [vmem:[%s4679_s1 + $0xe8] sm:$0xff]  ;;  %v58_v51 = vld [vmem:[%s4679_s1 + $0xf8] sm:$0xff]  ;;  %v55_v52 = vld [vmem:[%s4679_s1 + $0xe0] sm:$0xff] }
  0x3d   :  { %395 = vmatpush2.msra.mxu0 %v171_v54  ;;  %466 = vmatpush2.msra.mxu1 %v173_v55  ;;  %v57_v53 = vld [vmem:[%s4679_s1 + $0xf0] sm:$0xff]  ;;  %v48_v54 = vld [vmem:[%s4679_s1 + $0xa8] sm:$0xff]  ;;  %v50_v55 = vld [vmem:[%s4679_s1 + $0xb8] sm:$0xff] }
  0x3e   :  { %396 = vmatprep.subr.mxu0 %v164_v57  ;;  %467 = vmatprep.subr.mxu1 %v166_v58  ;;  %v47_v57 = vld [vmem:[%s4679_s1 + $0xa0] sm:$0xff]  ;;  %v49_v58 = vld [vmem:[%s4679_s1 + $0xb0] sm:$0xff] }
  0x3f   :  { %397 = vmatpush2.msra.mxu0 %v163_v59  ;;  %468 = vmatpush2.msra.mxu1 %v165_v60  ;;  %v40_v59 = vld [vmem:[%s4679_s1 + $0x68] sm:$0xff]  ;;  %v42_v60 = vld [vmem:[%s4679_s1 + $0x78] sm:$0xff] }
  0x40   :  { %398 = vmatprep.subr.mxu0 %v156_v61  ;;  %469 = vmatprep.subr.mxu1 %v158_v62  ;;  %v39_v61 = vld [vmem:[%s4679_s1 + $0x60] sm:$0xff]  ;;  %v41_v62 = vld [vmem:[%s4679_s1 + $0x70] sm:$0xff] }
  0x41   :  { %399 = vmatpush2.msra.mxu0 %v155_v0  ;;  %400 = vmatprep.mubr.f32.mxu0 %v2447_v63  ;;  %v32_v0 = vld [vmem:[%s4679_s1 + $0x28] sm:$0xff] }
  0x42   :  { %470 = vmatpush2.msra.mxu1 %v157_v1  ;;  %471 = vmatprep.mubr.f32.mxu1 %v2447_v63  ;;  %v34_v1 = vld [vmem:[%s4679_s1 + $0x38] sm:$0xff] }
  0x43   :  { %401 = vmatmul.mubr.f32.vlgmr.msra.gmra.mxu0 %v2425_v56  ;;  %472 = vmatmul.mubr.f32.vlgmr.msra.gmra.mxu1 %v2425_v56 }
  0x44   :  { %478 = vmatprep.subr.mxu0 %v152_v2  ;;  %549 = vmatprep.subr.mxu1 %v154_v3  ;;  %v31_v2 = vld [vmem:[%s4679_s1 + $0x20] sm:$0xff]  ;;  %v33_v3 = vld [vmem:[%s4679_s1 + $0x30] sm:$0xff] }
  0x45   :  { %479 = vmatpush1.msra.mxu0 %v151_v4  ;;  %550 = vmatpush1.msra.mxu1 %v153_v5  ;;  %v280_v4 = vld [vmem:[%s4679_s1 + $0x7e8] sm:$0xff]  ;;  %v282_v5 = vld [vmem:[%s4679_s1 + $0x7f8] sm:$0xff] }
  0x46   :  { %480 = vmatprep.subr.mxu0 %v144_v6  ;;  %551 = vmatprep.subr.mxu1 %v146_v7  ;;  %v279_v6 = vld [vmem:[%s4679_s1 + $0x7e0] sm:$0xff]  ;;  %v281_v7 = vld [vmem:[%s4679_s1 + $0x7f0] sm:$0xff] }
  0x47   :  { %481 = vmatpush1.msra.mxu0 %v143_v8  ;;  %552 = vmatpush1.msra.mxu1 %v145_v9  ;;  %v272_v8 = vld [vmem:[%s4679_s1 + $0x7a8] sm:$0xff]  ;;  %v274_v9 = vld [vmem:[%s4679_s1 + $0x7b8] sm:$0xff] }
  0x48   :  { %482 = vmatprep.subr.mxu0 %v136_v10  ;;  %553 = vmatprep.subr.mxu1 %v138_v11  ;;  %v271_v10 = vld [vmem:[%s4679_s1 + $0x7a0] sm:$0xff]  ;;  %v273_v11 = vld [vmem:[%s4679_s1 + $0x7b0] sm:$0xff] }
  0x49   :  { %483 = vmatpush1.msra.mxu0 %v135_v12  ;;  %554 = vmatpush1.msra.mxu1 %v137_v13  ;;  %v264_v12 = vld [vmem:[%s4679_s1 + $0x768] sm:$0xff]  ;;  %v266_v13 = vld [vmem:[%s4679_s1 + $0x778] sm:$0xff] }
  0x4a   :  { %484 = vmatprep.subr.mxu0 %v128_v14  ;;  %555 = vmatprep.subr.mxu1 %v130_v15  ;;  %v263_v14 = vld [vmem:[%s4679_s1 + $0x760] sm:$0xff]  ;;  %v265_v15 = vld [vmem:[%s4679_s1 + $0x770] sm:$0xff] }
  0x4b   :  { %485 = vmatpush1.msra.mxu0 %v127_v16  ;;  %556 = vmatpush1.msra.mxu1 %v129_v17  ;;  %v256_v16 = vld [vmem:[%s4679_s1 + $0x728] sm:$0xff]  ;;  %v258_v17 = vld [vmem:[%s4679_s1 + $0x738] sm:$0xff] }
  0x4c   :  { %486 = vmatprep.subr.mxu0 %v120_v18  ;;  %557 = vmatprep.subr.mxu1 %v122_v19  ;;  %v255_v18 = vld [vmem:[%s4679_s1 + $0x720] sm:$0xff]  ;;  %v257_v19 = vld [vmem:[%s4679_s1 + $0x730] sm:$0xff] }
  0x4d   :  { %487 = vmatpush1.msra.mxu0 %v119_v20  ;;  %558 = vmatpush1.msra.mxu1 %v121_v21  ;;  %v248_v20 = vld [vmem:[%s4679_s1 + $0x6e8] sm:$0xff]  ;;  %v250_v21 = vld [vmem:[%s4679_s1 + $0x6f8] sm:$0xff] }
  0x4e   :  { %488 = vmatprep.subr.mxu0 %v112_v22  ;;  %559 = vmatprep.subr.mxu1 %v114_v23  ;;  %v247_v22 = vld [vmem:[%s4679_s1 + $0x6e0] sm:$0xff]  ;;  %v249_v23 = vld [vmem:[%s4679_s1 + $0x6f0] sm:$0xff] }
  0x4f   :  { %489 = vmatpush1.msra.mxu0 %v111_v24  ;;  %560 = vmatpush1.msra.mxu1 %v113_v25  ;;  %v240_v24 = vld [vmem:[%s4679_s1 + $0x6a8] sm:$0xff]  ;;  %v242_v25 = vld [vmem:[%s4679_s1 + $0x6b8] sm:$0xff] }
  0x50   :  { %490 = vmatprep.subr.mxu0 %v104_v26  ;;  %561 = vmatprep.subr.mxu1 %v106_v27  ;;  %v239_v26 = vld [vmem:[%s4679_s1 + $0x6a0] sm:$0xff]  ;;  %v241_v27 = vld [vmem:[%s4679_s1 + $0x6b0] sm:$0xff] }
  0x51   :  { %491 = vmatpush1.msra.mxu0 %v103_v28  ;;  %562 = vmatpush1.msra.mxu1 %v105_v29  ;;  %v232_v28 = vld [vmem:[%s4679_s1 + $0x668] sm:$0xff]  ;;  %v234_v29 = vld [vmem:[%s4679_s1 + $0x678] sm:$0xff] }
  0x52   :  { %492 = vmatprep.subr.mxu0 %v96_v30  ;;  %563 = vmatprep.subr.mxu1 %v98_v31  ;;  %v231_v30 = vld [vmem:[%s4679_s1 + $0x660] sm:$0xff]  ;;  %v233_v31 = vld [vmem:[%s4679_s1 + $0x670] sm:$0xff] }
  0x53   :  { %493 = vmatpush1.msra.mxu0 %v95_v32  ;;  %564 = vmatpush1.msra.mxu1 %v97_v33  ;;  %v224_v32 = vld [vmem:[%s4679_s1 + $0x628] sm:$0xff]  ;;  %v226_v33 = vld [vmem:[%s4679_s1 + $0x638] sm:$0xff] }
  0x54   :  { %494 = vmatprep.subr.mxu0 %v88_v34  ;;  %565 = vmatprep.subr.mxu1 %v90_v35  ;;  %v223_v34 = vld [vmem:[%s4679_s1 + $0x620] sm:$0xff]  ;;  %v225_v35 = vld [vmem:[%s4679_s1 + $0x630] sm:$0xff] }
  0x55   :  { %495 = vmatpush1.msra.mxu0 %v87_v36  ;;  %566 = vmatpush1.msra.mxu1 %v89_v37  ;;  %v216_v36 = vld [vmem:[%s4679_s1 + $0x5e8] sm:$0xff]  ;;  %v218_v37 = vld [vmem:[%s4679_s1 + $0x5f8] sm:$0xff] }
  0x56   :  { %496 = vmatprep.subr.mxu0 %v80_v38  ;;  %567 = vmatprep.subr.mxu1 %v82_v39  ;;  %v215_v38 = vld [vmem:[%s4679_s1 + $0x5e0] sm:$0xff]  ;;  %v217_v39 = vld [vmem:[%s4679_s1 + $0x5f0] sm:$0xff] }
  0x57   :  { %497 = vmatpush1.msra.mxu0 %v79_v40  ;;  %568 = vmatpush1.msra.mxu1 %v81_v41  ;;  %v208_v40 = vld [vmem:[%s4679_s1 + $0x5a8] sm:$0xff]  ;;  %v210_v41 = vld [vmem:[%s4679_s1 + $0x5b8] sm:$0xff] }
  0x58   :  { %498 = vmatprep.subr.mxu0 %v72_v42  ;;  %569 = vmatprep.subr.mxu1 %v74_v43  ;;  %v207_v42 = vld [vmem:[%s4679_s1 + $0x5a0] sm:$0xff]  ;;  %v209_v43 = vld [vmem:[%s4679_s1 + $0x5b0] sm:$0xff] }
  0x59   :  { %499 = vmatpush1.msra.mxu0 %v71_v44  ;;  %570 = vmatpush1.msra.mxu1 %v73_v45  ;;  %v200_v44 = vld [vmem:[%s4679_s1 + $0x568] sm:$0xff]  ;;  %v202_v45 = vld [vmem:[%s4679_s1 + $0x578] sm:$0xff] }
  0x5a   :  { %500 = vmatprep.subr.mxu0 %v64_v46  ;;  %571 = vmatprep.subr.mxu1 %v66_v47  ;;  %v199_v46 = vld [vmem:[%s4679_s1 + $0x560] sm:$0xff]  ;;  %v201_v47 = vld [vmem:[%s4679_s1 + $0x570] sm:$0xff] }
  0x5b   :  { %501 = vmatpush1.msra.mxu0 %v63_v48  ;;  %572 = vmatpush1.msra.mxu1 %v65_v49  ;;  %v192_v48 = vld [vmem:[%s4679_s1 + $0x528] sm:$0xff]  ;;  %v194_v49 = vld [vmem:[%s4679_s1 + $0x538] sm:$0xff] }
  0x5c   :  { %502 = vmatprep.subr.mxu0 %v56_v50  ;;  %573 = vmatprep.subr.mxu1 %v58_v51  ;;  %v191_v50 = vld [vmem:[%s4679_s1 + $0x520] sm:$0xff]  ;;  %v193_v51 = vld [vmem:[%s4679_s1 + $0x530] sm:$0xff] }
  0x5d   :  { %503 = vmatpush1.msra.mxu0 %v55_v52  ;;  %574 = vmatpush1.msra.mxu1 %v57_v53  ;;  %v184_v52 = vld [vmem:[%s4679_s1 + $0x4e8] sm:$0xff]  ;;  %v186_v53 = vld [vmem:[%s4679_s1 + $0x4f8] sm:$0xff] }
  0x5e   :  { %504 = vmatprep.subr.mxu0 %v48_v54  ;;  %575 = vmatprep.subr.mxu1 %v50_v55  ;;  %v183_v54 = vld [vmem:[%s4679_s1 + $0x4e0] sm:$0xff]  ;;  %v185_v55 = vld [vmem:[%s4679_s1 + $0x4f0] sm:$0xff] }
  0x5f   :  { %505 = vmatpush1.msra.mxu0 %v47_v57  ;;  %576 = vmatpush1.msra.mxu1 %v49_v58  ;;  %v176_v57 = vld [vmem:[%s4679_s1 + $0x4a8] sm:$0xff]  ;;  %v178_v58 = vld [vmem:[%s4679_s1 + $0x4b8] sm:$0xff] }
  0x60   :  { %506 = vmatprep.subr.mxu0 %v40_v59  ;;  %577 = vmatprep.subr.mxu1 %v42_v60  ;;  %v175_v59 = vld [vmem:[%s4679_s1 + $0x4a0] sm:$0xff]  ;;  %v177_v60 = vld [vmem:[%s4679_s1 + $0x4b0] sm:$0xff] }
  0x61   :  { %507 = vmatpush1.msra.mxu0 %v39_v61  ;;  %578 = vmatpush1.msra.mxu1 %v41_v62  ;;  %v168_v61 = vld [vmem:[%s4679_s1 + $0x468] sm:$0xff]  ;;  %v170_v62 = vld [vmem:[%s4679_s1 + $0x478] sm:$0xff] }
  0x62   :  { %508 = vmatprep.subr.mxu0 %v32_v0  ;;  %579 = vmatprep.subr.mxu1 %v34_v1  ;;  %v167_v0 = vld [vmem:[%s4679_s1 + $0x460] sm:$0xff]  ;;  %v169_v1 = vld [vmem:[%s4679_s1 + $0x470] sm:$0xff] }
  0x63   :  { %509 = vmatpush1.msra.mxu0 %v31_v2  ;;  %580 = vmatpush1.msra.mxu1 %v33_v3  ;;  %v160_v2 = vld [vmem:[%s4679_s1 + $0x428] sm:$0xff]  ;;  %v162_v3 = vld [vmem:[%s4679_s1 + $0x438] sm:$0xff] }
  0x64   :  { %510 = vmatprep.subr.mxu0 %v280_v4  ;;  %581 = vmatprep.subr.mxu1 %v282_v5  ;;  %v159_v4 = vld [vmem:[%s4679_s1 + $0x420] sm:$0xff]  ;;  %v161_v5 = vld [vmem:[%s4679_s1 + $0x430] sm:$0xff] }
  0x65   :  { %511 = vmatpush2.msra.mxu0 %v279_v6  ;;  %582 = vmatpush2.msra.mxu1 %v281_v7  ;;  %v689_v6 = vld [vmem:[%s4681_s3 + $0x1e8] sm:$0xff] }
  0x66   :  { %512 = vmatprep.subr.mxu0 %v272_v8  ;;  %583 = vmatprep.subr.mxu1 %v274_v9  ;;  %v817_v7 = vld [vmem:[%s4681_s3 + $0x5e8] sm:$0xff]  ;;  %v688_v8 = vld [vmem:[%s4681_s3 + $0x1e0] sm:$0xff] }
  0x67   :  { %513 = vmatpush2.msra.mxu0 %v271_v10  ;;  %584 = vmatpush2.msra.mxu1 %v273_v11  ;;  %v816_v9 = vld [vmem:[%s4681_s3 + $0x5e0] sm:$0xff]  ;;  %v685_v10 = vld [vmem:[%s4681_s3 + $0x1c8] sm:$0xff] }
  0x68   :  { %514 = vmatprep.subr.mxu0 %v264_v12  ;;  %585 = vmatprep.subr.mxu1 %v266_v13  ;;  %v684_v11 = vld [vmem:[%s4681_s3 + $0x1c0] sm:$0xff]  ;;  %v809_v13 = vld [vmem:[%s4681_s3 + $0x5a8] sm:$0xff] }
  0x69   :  { %515 = vmatpush2.msra.mxu0 %v263_v14  ;;  %586 = vmatpush2.msra.mxu1 %v265_v15  ;;  %v812_v12 = vld [vmem:[%s4681_s3 + $0x5c0] sm:$0xff] }
  0x6a   :  { %516 = vmatprep.subr.mxu0 %v256_v16  ;;  %587 = vmatprep.subr.mxu1 %v258_v17  ;;  %v680_v14 = vld [vmem:[%s4681_s3 + $0x1a0] sm:$0xff]  ;;  %v677_v16 = vld [vmem:[%s4681_s3 + $0x188] sm:$0xff] }
  0x6b   :  { %517 = vmatpush2.msra.mxu0 %v255_v18  ;;  %588 = vmatpush2.msra.mxu1 %v257_v19  ;;  %v808_v15 = vld [vmem:[%s4681_s3 + $0x5a0] sm:$0xff]  ;;  %v805_v17 = vld [vmem:[%s4681_s3 + $0x588] sm:$0xff] }
  0x6c   :  { %518 = vmatprep.subr.mxu0 %v248_v20  ;;  %589 = vmatprep.subr.mxu1 %v250_v21  ;;  %v676_v18 = vld [vmem:[%s4681_s3 + $0x180] sm:$0xff]  ;;  %v673_v20 = vld [vmem:[%s4681_s3 + $0x168] sm:$0xff] }
  0x6d   :  { %519 = vmatpush2.msra.mxu0 %v247_v22  ;;  %590 = vmatpush2.msra.mxu1 %v249_v23  ;;  %v804_v19 = vld [vmem:[%s4681_s3 + $0x580] sm:$0xff]  ;;  %v801_v21 = vld [vmem:[%s4681_s3 + $0x568] sm:$0xff] }
  0x6e   :  { %520 = vmatprep.subr.mxu0 %v240_v24  ;;  %591 = vmatprep.subr.mxu1 %v242_v25  ;;  %v672_v22 = vld [vmem:[%s4681_s3 + $0x160] sm:$0xff]  ;;  %v669_v24 = vld [vmem:[%s4681_s3 + $0x148] sm:$0xff] }
  0x6f   :  { %521 = vmatpush2.msra.mxu0 %v239_v26  ;;  %592 = vmatpush2.msra.mxu1 %v241_v27  ;;  %v800_v23 = vld [vmem:[%s4681_s3 + $0x560] sm:$0xff]  ;;  %v797_v25 = vld [vmem:[%s4681_s3 + $0x548] sm:$0xff] }
  0x70   :  { %522 = vmatprep.subr.mxu0 %v232_v28  ;;  %593 = vmatprep.subr.mxu1 %v234_v29  ;;  %v668_v26 = vld [vmem:[%s4681_s3 + $0x140] sm:$0xff]  ;;  %v665_v28 = vld [vmem:[%s4681_s3 + $0x128] sm:$0xff] }
  0x71   :  { %523 = vmatpush2.msra.mxu0 %v231_v30  ;;  %594 = vmatpush2.msra.mxu1 %v233_v31  ;;  %v796_v27 = vld [vmem:[%s4681_s3 + $0x540] sm:$0xff]  ;;  %v793_v29 = vld [vmem:[%s4681_s3 + $0x528] sm:$0xff] }
  0x72   :  { %524 = vmatprep.subr.mxu0 %v224_v32  ;;  %595 = vmatprep.subr.mxu1 %v226_v33  ;;  %v664_v30 = vld [vmem:[%s4681_s3 + $0x120] sm:$0xff]  ;;  %v661_v32 = vld [vmem:[%s4681_s3 + $0x108] sm:$0xff] }
  0x73   :  { %525 = vmatpush2.msra.mxu0 %v223_v34  ;;  %596 = vmatpush2.msra.mxu1 %v225_v35  ;;  %v792_v31 = vld [vmem:[%s4681_s3 + $0x520] sm:$0xff]  ;;  %v789_v33 = vld [vmem:[%s4681_s3 + $0x508] sm:$0xff] }
  0x74   :  { %526 = vmatprep.subr.mxu0 %v216_v36  ;;  %597 = vmatprep.subr.mxu1 %v218_v37  ;;  %v660_v34 = vld [vmem:[%s4681_s3 + $0x100] sm:$0xff]  ;;  %v657_v36 = vld [vmem:[%s4681_s3 + $0xe8] sm:$0xff] }
  0x75   :  { %527 = vmatpush2.msra.mxu0 %v215_v38  ;;  %598 = vmatpush2.msra.mxu1 %v217_v39  ;;  %v788_v35 = vld [vmem:[%s4681_s3 + $0x500] sm:$0xff]  ;;  %v785_v37 = vld [vmem:[%s4681_s3 + $0x4e8] sm:$0xff] }
  0x76   :  { %528 = vmatprep.subr.mxu0 %v208_v40  ;;  %599 = vmatprep.subr.mxu1 %v210_v41  ;;  %v656_v38 = vld [vmem:[%s4681_s3 + $0xe0] sm:$0xff]  ;;  %v653_v40 = vld [vmem:[%s4681_s3 + $0xc8] sm:$0xff] }
  0x77   :  { %529 = vmatpush2.msra.mxu0 %v207_v42  ;;  %600 = vmatpush2.msra.mxu1 %v209_v43  ;;  %v784_v39 = vld [vmem:[%s4681_s3 + $0x4e0] sm:$0xff]  ;;  %v781_v41 = vld [vmem:[%s4681_s3 + $0x4c8] sm:$0xff] }
  0x78   :  { %530 = vmatprep.subr.mxu0 %v200_v44  ;;  %601 = vmatprep.subr.mxu1 %v202_v45  ;;  %v652_v42 = vld [vmem:[%s4681_s3 + $0xc0] sm:$0xff]  ;;  %v649_v44 = vld [vmem:[%s4681_s3 + $0xa8] sm:$0xff] }
  0x79   :  { %531 = vmatpush2.msra.mxu0 %v199_v46  ;;  %602 = vmatpush2.msra.mxu1 %v201_v47  ;;  %v780_v43 = vld [vmem:[%s4681_s3 + $0x4c0] sm:$0xff]  ;;  %v777_v45 = vld [vmem:[%s4681_s3 + $0x4a8] sm:$0xff] }
  0x7a   :  { %532 = vmatprep.subr.mxu0 %v192_v48  ;;  %603 = vmatprep.subr.mxu1 %v194_v49  ;;  %v648_v46 = vld [vmem:[%s4681_s3 + $0xa0] sm:$0xff]  ;;  %v645_v48 = vld [vmem:[%s4681_s3 + $0x88] sm:$0xff] }
  0x7b   :  { %533 = vmatpush2.msra.mxu0 %v191_v50  ;;  %604 = vmatpush2.msra.mxu1 %v193_v51  ;;  %v776_v47 = vld [vmem:[%s4681_s3 + $0x4a0] sm:$0xff]  ;;  %v773_v49 = vld [vmem:[%s4681_s3 + $0x488] sm:$0xff] }
  0x7c   :  { %534 = vmatprep.subr.mxu0 %v184_v52  ;;  %605 = vmatprep.subr.mxu1 %v186_v53  ;;  %v644_v50 = vld [vmem:[%s4681_s3 + $0x80] sm:$0xff]  ;;  %v641_v52 = vld [vmem:[%s4681_s3 + $0x68] sm:$0xff] }
  0x7d   :  { %535 = vmatpush2.msra.mxu0 %v183_v54  ;;  %606 = vmatpush2.msra.mxu1 %v185_v55  ;;  %v772_v51 = vld [vmem:[%s4681_s3 + $0x480] sm:$0xff]  ;;  %v769_v53 = vld [vmem:[%s4681_s3 + $0x468] sm:$0xff] }
  0x7e   :  { %536 = vmatprep.subr.mxu0 %v176_v57  ;;  %607 = vmatprep.subr.mxu1 %v178_v58  ;;  %v640_v54 = vld [vmem:[%s4681_s3 + $0x60] sm:$0xff]  ;;  %v637_v57 = vld [vmem:[%s4681_s3 + $0x48] sm:$0xff] }
  0x7f   :  { %537 = vmatpush2.msra.mxu0 %v175_v59  ;;  %608 = vmatpush2.msra.mxu1 %v177_v60  ;;  %v768_v55 = vld [vmem:[%s4681_s3 + $0x460] sm:$0xff]  ;;  %v765_v58 = vld [vmem:[%s4681_s3 + $0x448] sm:$0xff] }
  0x80   :  { %538 = vmatprep.subr.mxu0 %v168_v61  ;;  %609 = vmatprep.subr.mxu1 %v170_v62  ;;  %v636_v59 = vld [vmem:[%s4681_s3 + $0x40] sm:$0xff]  ;;  %v633_v61 = vld [vmem:[%s4681_s3 + $0x28] sm:$0xff] }
  0x81   :  { %539 = vmatpush2.msra.mxu0 %v167_v0  ;;  %610 = vmatpush2.msra.mxu1 %v169_v1  ;;  %v764_v60 = vld [vmem:[%s4681_s3 + $0x440] sm:$0xff]  ;;  %v761_v62 = vld [vmem:[%s4681_s3 + $0x428] sm:$0xff] }
  0x82   :  { %540 = vmatprep.subr.mxu0 %v160_v2  ;;  %611 = vmatprep.subr.mxu1 %v162_v3  ;;  %v632_v0 = vld [vmem:[%s4681_s3 + $0x20] sm:$0xff]  ;;  %v629_v2 = vld [vmem:[%s4681_s3 + $0x8] sm:$0xff] }
  0x83   :  { %541 = vmatpush2.msra.mxu0 %v159_v4  ;;  %542 = vmatprep.mubr.f32.mxu0 %v2447_v63  ;;  %v760_v1 = vld [vmem:[%s4681_s3 + $0x420] sm:$0xff]  ;;  %v757_v3 = vld [vmem:[%s4681_s3 + $0x408] sm:$0xff] }
  0x84   :  { %612 = vmatpush2.msra.mxu1 %v161_v5  ;;  %613 = vmatprep.mubr.f32.mxu1 %v2447_v63  ;;  %v813_v63 = vld [vmem:[%s4681_s3 + $0x5c8] sm:$0xff]  ;;  %v628_v4 = vld [vmem:[%s4681_s3] sm:$0xff] }
  0x85   :  { %543 = vmatmul.mubr.f32.vlgmr.msra.gmra.mxu0 %v2425_v56  ;;  %614 = vmatmul.mubr.f32.vlgmr.msra.gmra.mxu1 %v2425_v56  ;;  %v681_v56 = vld [vmem:[%s4681_s3 + $0x1a8] sm:$0xff]  ;;  %v756_v5 = vld [vmem:[%s4681_s3 + $0x400] sm:$0xff] }
  0x86   :  { %1162 = vmatprep.subr.mxu0 %v689_v6  ;;  %1233 = vmatprep.subr.mxu1 %v817_v7  ;;  %v753_v6 = vld [vmem:[%s4681_s3 + $0x3e8] sm:$0xff] }
  0x87   :  { %1163 = vmatpush1.msra.mxu0 %v688_v8  ;;  %1234 = vmatpush1.msra.mxu1 %v816_v9  ;;  %v881_v7 = vld [vmem:[%s4681_s3 + $0x7e8] sm:$0xff]  ;;  %v752_v8 = vld [vmem:[%s4681_s3 + $0x3e0] sm:$0xff] }
  0x88   :  { %1164 = vmatprep.subr.mxu0 %v685_v10  ;;  %1235 = vmatprep.subr.mxu1 %v813_v63  ;;  %v880_v9 = vld [vmem:[%s4681_s3 + $0x7e0] sm:$0xff]  ;;  %v749_v10 = vld [vmem:[%s4681_s3 + $0x3c8] sm:$0xff] }
  0x89   :  { %1165 = vmatpush1.msra.mxu0 %v684_v11  ;;  %1236 = vmatpush1.msra.mxu1 %v812_v12  ;;  %v877_v63 = vld [vmem:[%s4681_s3 + $0x7c8] sm:$0xff]  ;;  %v748_v11 = vld [vmem:[%s4681_s3 + $0x3c0] sm:$0xff] }
  0x8a   :  { %1166 = vmatprep.subr.mxu0 %v681_v56  ;;  %1237 = vmatprep.subr.mxu1 %v809_v13  ;;  %v876_v12 = vld [vmem:[%s4681_s3 + $0x7c0] sm:$0xff]  ;;  %v745_v56 = vld [vmem:[%s4681_s3 + $0x3a8] sm:$0xff] }
  0x8b   :  { %1167 = vmatpush1.msra.mxu0 %v680_v14  ;;  %1238 = vmatpush1.msra.mxu1 %v808_v15  ;;  %v873_v13 = vld [vmem:[%s4681_s3 + $0x7a8] sm:$0xff]  ;;  %v744_v14 = vld [vmem:[%s4681_s3 + $0x3a0] sm:$0xff] }
  0x8c   :  { %1168 = vmatprep.subr.mxu0 %v677_v16  ;;  %1239 = vmatprep.subr.mxu1 %v805_v17  ;;  %v872_v15 = vld [vmem:[%s4681_s3 + $0x7a0] sm:$0xff]  ;;  %v741_v16 = vld [vmem:[%s4681_s3 + $0x388] sm:$0xff] }
  0x8d   :  { %1169 = vmatpush1.msra.mxu0 %v676_v18  ;;  %1240 = vmatpush1.msra.mxu1 %v804_v19  ;;  %v869_v17 = vld [vmem:[%s4681_s3 + $0x788] sm:$0xff]  ;;  %v740_v18 = vld [vmem:[%s4681_s3 + $0x380] sm:$0xff] }
  0x8e   :  { %1170 = vmatprep.subr.mxu0 %v673_v20  ;;  %1241 = vmatprep.subr.mxu1 %v801_v21  ;;  %v868_v19 = vld [vmem:[%s4681_s3 + $0x780] sm:$0xff]  ;;  %v737_v20 = vld [vmem:[%s4681_s3 + $0x368] sm:$0xff] }
  0x8f   :  { %1171 = vmatpush1.msra.mxu0 %v672_v22  ;;  %1242 = vmatpush1.msra.mxu1 %v800_v23  ;;  %v865_v21 = vld [vmem:[%s4681_s3 + $0x768] sm:$0xff]  ;;  %v736_v22 = vld [vmem:[%s4681_s3 + $0x360] sm:$0xff] }
  0x90   :  { %1172 = vmatprep.subr.mxu0 %v669_v24  ;;  %1243 = vmatprep.subr.mxu1 %v797_v25  ;;  %v864_v23 = vld [vmem:[%s4681_s3 + $0x760] sm:$0xff]  ;;  %v733_v24 = vld [vmem:[%s4681_s3 + $0x348] sm:$0xff] }
  0x91   :  { %1173 = vmatpush1.msra.mxu0 %v668_v26  ;;  %1244 = vmatpush1.msra.mxu1 %v796_v27  ;;  %v861_v25 = vld [vmem:[%s4681_s3 + $0x748] sm:$0xff]  ;;  %v732_v26 = vld [vmem:[%s4681_s3 + $0x340] sm:$0xff] }
  0x92   :  { %1174 = vmatprep.subr.mxu0 %v665_v28  ;;  %1245 = vmatprep.subr.mxu1 %v793_v29  ;;  %v860_v27 = vld [vmem:[%s4681_s3 + $0x740] sm:$0xff]  ;;  %v729_v28 = vld [vmem:[%s4681_s3 + $0x328] sm:$0xff] }
  0x93   :  { %1175 = vmatpush1.msra.mxu0 %v664_v30  ;;  %1246 = vmatpush1.msra.mxu1 %v792_v31  ;;  %v857_v29 = vld [vmem:[%s4681_s3 + $0x728] sm:$0xff]  ;;  %v728_v30 = vld [vmem:[%s4681_s3 + $0x320] sm:$0xff] }
  0x94   :  { %1176 = vmatprep.subr.mxu0 %v661_v32  ;;  %1247 = vmatprep.subr.mxu1 %v789_v33  ;;  %v856_v31 = vld [vmem:[%s4681_s3 + $0x720] sm:$0xff]  ;;  %v725_v32 = vld [vmem:[%s4681_s3 + $0x308] sm:$0xff] }
  0x95   :  { %1177 = vmatpush1.msra.mxu0 %v660_v34  ;;  %1248 = vmatpush1.msra.mxu1 %v788_v35  ;;  %v853_v33 = vld [vmem:[%s4681_s3 + $0x708] sm:$0xff]  ;;  %v724_v34 = vld [vmem:[%s4681_s3 + $0x300] sm:$0xff] }
  0x96   :  { %1178 = vmatprep.subr.mxu0 %v657_v36  ;;  %1249 = vmatprep.subr.mxu1 %v785_v37  ;;  %v852_v35 = vld [vmem:[%s4681_s3 + $0x700] sm:$0xff]  ;;  %v721_v36 = vld [vmem:[%s4681_s3 + $0x2e8] sm:$0xff] }
  0x97   :  { %1179 = vmatpush1.msra.mxu0 %v656_v38  ;;  %1250 = vmatpush1.msra.mxu1 %v784_v39  ;;  %v849_v37 = vld [vmem:[%s4681_s3 + $0x6e8] sm:$0xff]  ;;  %v720_v38 = vld [vmem:[%s4681_s3 + $0x2e0] sm:$0xff] }
  0x98   :  { %1180 = vmatprep.subr.mxu0 %v653_v40  ;;  %1251 = vmatprep.subr.mxu1 %v781_v41  ;;  %v848_v39 = vld [vmem:[%s4681_s3 + $0x6e0] sm:$0xff]  ;;  %v717_v40 = vld [vmem:[%s4681_s3 + $0x2c8] sm:$0xff] }
  0x99   :  { %1181 = vmatpush1.msra.mxu0 %v652_v42  ;;  %1252 = vmatpush1.msra.mxu1 %v780_v43  ;;  %v845_v41 = vld [vmem:[%s4681_s3 + $0x6c8] sm:$0xff]  ;;  %v716_v42 = vld [vmem:[%s4681_s3 + $0x2c0] sm:$0xff] }
  0x9a   :  { %1182 = vmatprep.subr.mxu0 %v649_v44  ;;  %1253 = vmatprep.subr.mxu1 %v777_v45  ;;  %v844_v43 = vld [vmem:[%s4681_s3 + $0x6c0] sm:$0xff]  ;;  %v713_v44 = vld [vmem:[%s4681_s3 + $0x2a8] sm:$0xff] }
  0x9b   :  { %1183 = vmatpush1.msra.mxu0 %v648_v46  ;;  %1254 = vmatpush1.msra.mxu1 %v776_v47  ;;  %v841_v45 = vld [vmem:[%s4681_s3 + $0x6a8] sm:$0xff]  ;;  %v712_v46 = vld [vmem:[%s4681_s3 + $0x2a0] sm:$0xff] }
  0x9c   :  { %1184 = vmatprep.subr.mxu0 %v645_v48  ;;  %1255 = vmatprep.subr.mxu1 %v773_v49  ;;  %v840_v47 = vld [vmem:[%s4681_s3 + $0x6a0] sm:$0xff]  ;;  %v709_v48 = vld [vmem:[%s4681_s3 + $0x288] sm:$0xff] }
  0x9d   :  { %1185 = vmatpush1.msra.mxu0 %v644_v50  ;;  %1256 = vmatpush1.msra.mxu1 %v772_v51  ;;  %v837_v49 = vld [vmem:[%s4681_s3 + $0x688] sm:$0xff]  ;;  %v708_v50 = vld [vmem:[%s4681_s3 + $0x280] sm:$0xff] }
  0x9e   :  { %1186 = vmatprep.subr.mxu0 %v641_v52  ;;  %1257 = vmatprep.subr.mxu1 %v769_v53  ;;  %v836_v51 = vld [vmem:[%s4681_s3 + $0x680] sm:$0xff]  ;;  %v705_v52 = vld [vmem:[%s4681_s3 + $0x268] sm:$0xff] }
  0x9f   :  { %1187 = vmatpush1.msra.mxu0 %v640_v54  ;;  %1258 = vmatpush1.msra.mxu1 %v768_v55  ;;  %v833_v53 = vld [vmem:[%s4681_s3 + $0x668] sm:$0xff]  ;;  %v704_v54 = vld [vmem:[%s4681_s3 + $0x260] sm:$0xff] }
  0xa0   :  { %1188 = vmatprep.subr.mxu0 %v637_v57  ;;  %1259 = vmatprep.subr.mxu1 %v765_v58  ;;  %v832_v55 = vld [vmem:[%s4681_s3 + $0x660] sm:$0xff]  ;;  %v701_v57 = vld [vmem:[%s4681_s3 + $0x248] sm:$0xff] }
  0xa1   :  { %1189 = vmatpush1.msra.mxu0 %v636_v59  ;;  %1260 = vmatpush1.msra.mxu1 %v764_v60  ;;  %v829_v58 = vld [vmem:[%s4681_s3 + $0x648] sm:$0xff]  ;;  %v700_v59 = vld [vmem:[%s4681_s3 + $0x240] sm:$0xff] }
  0xa2   :  { %1190 = vmatprep.subr.mxu0 %v633_v61  ;;  %1261 = vmatprep.subr.mxu1 %v761_v62  ;;  %v828_v60 = vld [vmem:[%s4681_s3 + $0x640] sm:$0xff]  ;;  %v697_v61 = vld [vmem:[%s4681_s3 + $0x228] sm:$0xff] }
  0xa3   :  { %1191 = vmatpush1.msra.mxu0 %v632_v0  ;;  %1262 = vmatpush1.msra.mxu1 %v760_v1  ;;  %v825_v62 = vld [vmem:[%s4681_s3 + $0x628] sm:$0xff]  ;;  %v696_v0 = vld [vmem:[%s4681_s3 + $0x220] sm:$0xff] }
  0xa4   :  { %1192 = vmatprep.subr.mxu0 %v629_v2  ;;  %1263 = vmatprep.subr.mxu1 %v757_v3  ;;  %v824_v1 = vld [vmem:[%s4681_s3 + $0x620] sm:$0xff]  ;;  %v693_v2 = vld [vmem:[%s4681_s3 + $0x208] sm:$0xff] }
  0xa5   :  { %1193 = vmatpush1.msra.mxu0 %v628_v4  ;;  %1264 = vmatpush1.msra.mxu1 %v756_v5  ;;  %v821_v3 = vld [vmem:[%s4681_s3 + $0x608] sm:$0xff]  ;;  %v692_v4 = vld [vmem:[%s4681_s3 + $0x200] sm:$0xff] }
  0xa6   :  { %1194 = vmatprep.subr.mxu0 %v753_v6  ;;  %1265 = vmatprep.subr.mxu1 %v881_v7  ;;  %v820_v5 = vld [vmem:[%s4681_s3 + $0x600] sm:$0xff]  ;;  %v945_v6 = vld [vmem:[%s4681_s3 + $0x9e8] sm:$0xff] }
  0xa7   :  { %1195 = vmatpush2.msra.mxu0 %v752_v8  ;;  %1266 = vmatpush2.msra.mxu1 %v880_v9  ;;  %v1073_v7 = vld [vmem:[%s4681_s3 + $0xde8] sm:$0xff]  ;;  %v285_v8 = vlaneseq }
  0xa8   :  { %1196 = vmatprep.subr.mxu0 %v749_v10  ;;  %1267 = vmatprep.subr.mxu1 %v877_v63 }
  0xa9   :  { %1197 = vmatpush2.msra.mxu0 %v748_v11  ;;  %1268 = vmatpush2.msra.mxu1 %v876_v12  ;;  %v3237_v9 = vshrl.u32 %v285_v8, 7  ;;  %v3244_v11 = vld [vmem:[%s4682_s2] sm:$0xff] }
  0xaa   :  { %1198 = vmatprep.subr.mxu0 %v745_v56  ;;  %1269 = vmatprep.subr.mxu1 %v873_v13  ;;  %v1032_v8 = vld [vmem:[%s4681_s3 + $0xca0] sm:$0xff] }
  0xab   :  { %1199 = vmatpush2.msra.mxu0 %v744_v14  ;;  %1270 = vmatpush2.msra.mxu1 %v872_v15  ;;  %v295_v10 = vsub.s32 2, %v3237_v9  ;;  %v287_v63 = vsub.s32 0, %v3237_v9  ;;  %v291_v12 = vsub.s32 1, %v3237_v9  ;;  %v299_v56 = vsub.s32 3, %v3237_v9 }
  0xac   :  { %1200 = vmatprep.subr.mxu0 %v741_v16  ;;  %1271 = vmatprep.subr.mxu1 %v869_v17 }
  0xad   :  { %1201 = vmatpush2.msra.mxu0 %v740_v18  ;;  %1272 = vmatpush2.msra.mxu1 %v868_v19  ;;  %v296_v13 = vrot.slane %v3244_v11, %v295_v10  ;;  %v288_v14 = vrot.slane %v3244_v11, %v287_v63  ;;  %v292_v15 = vrot.slane %v3244_v11, %v291_v12 }
  0xae   :  { %1202 = vmatprep.subr.mxu0 %v737_v20  ;;  %1273 = vmatprep.subr.mxu1 %v865_v21  ;;  %v300_v16 = vrot.slane %v3244_v11, %v299_v56 }
  0xaf   :  { %1203 = vmatpush2.msra.mxu0 %v736_v22  ;;  %1274 = vmatpush2.msra.mxu1 %v864_v23 }
  0xb0   :  { %1204 = vmatprep.subr.mxu0 %v733_v24  ;;  %1275 = vmatprep.subr.mxu1 %v861_v25 }
  0xb1   :  { %1205 = vmatpush2.msra.mxu0 %v732_v26  ;;  %1276 = vmatpush2.msra.mxu1 %v860_v27 }
  0xb2   :  { %1206 = vmatprep.subr.mxu0 %v729_v28  ;;  %1277 = vmatprep.subr.mxu1 %v857_v29  ;;  %v944_v29 = vld [vmem:[%s4681_s3 + $0x9e0] sm:$0xff] }
  0xb3   :  { %1207 = vmatpush2.msra.mxu0 %v728_v30  ;;  %1278 = vmatpush2.msra.mxu1 %v856_v31  ;;  %v1072_v30 = vld [vmem:[%s4681_s3 + $0xde0] sm:$0xff]  ;;  %v941_v31 = vld [vmem:[%s4681_s3 + $0x9c8] sm:$0xff] }
  0xb4   :  { %1208 = vmatprep.subr.mxu0 %v725_v32  ;;  %1279 = vmatprep.subr.mxu1 %v853_v33  ;;  %v1069_v32 = vld [vmem:[%s4681_s3 + $0xdc8] sm:$0xff]  ;;  %v940_v33 = vld [vmem:[%s4681_s3 + $0x9c0] sm:$0xff] }
  0xb5   :  { %1209 = vmatpush2.msra.mxu0 %v724_v34  ;;  %1280 = vmatpush2.msra.mxu1 %v852_v35  ;;  %v1068_v34 = vld [vmem:[%s4681_s3 + $0xdc0] sm:$0xff]  ;;  %v937_v35 = vld [vmem:[%s4681_s3 + $0x9a8] sm:$0xff] }
  0xb6   :  { %1210 = vmatprep.subr.mxu0 %v721_v36  ;;  %1281 = vmatprep.subr.mxu1 %v849_v37  ;;  %v1065_v36 = vld [vmem:[%s4681_s3 + $0xda8] sm:$0xff]  ;;  %v936_v37 = vld [vmem:[%s4681_s3 + $0x9a0] sm:$0xff] }
  0xb7   :  { %1211 = vmatpush2.msra.mxu0 %v720_v38  ;;  %1282 = vmatpush2.msra.mxu1 %v848_v39  ;;  %v1064_v38 = vld [vmem:[%s4681_s3 + $0xda0] sm:$0xff]  ;;  %v933_v39 = vld [vmem:[%s4681_s3 + $0x988] sm:$0xff] }
  0xb8   :  { %1212 = vmatprep.subr.mxu0 %v717_v40  ;;  %1283 = vmatprep.subr.mxu1 %v845_v41  ;;  %v1061_v40 = vld [vmem:[%s4681_s3 + $0xd88] sm:$0xff]  ;;  %v932_v41 = vld [vmem:[%s4681_s3 + $0x980] sm:$0xff] }
  0xb9   :  { %1213 = vmatpush2.msra.mxu0 %v716_v42  ;;  %1284 = vmatpush2.msra.mxu1 %v844_v43  ;;  %v1060_v42 = vld [vmem:[%s4681_s3 + $0xd80] sm:$0xff]  ;;  %v929_v43 = vld [vmem:[%s4681_s3 + $0x968] sm:$0xff] }
  0xba   :  { %1214 = vmatprep.subr.mxu0 %v713_v44  ;;  %1285 = vmatprep.subr.mxu1 %v841_v45  ;;  %v1057_v44 = vld [vmem:[%s4681_s3 + $0xd68] sm:$0xff]  ;;  %v928_v45 = vld [vmem:[%s4681_s3 + $0x960] sm:$0xff] }
  0xbb   :  { %1215 = vmatpush2.msra.mxu0 %v712_v46  ;;  %1286 = vmatpush2.msra.mxu1 %v840_v47  ;;  %v1056_v46 = vld [vmem:[%s4681_s3 + $0xd60] sm:$0xff]  ;;  %v925_v47 = vld [vmem:[%s4681_s3 + $0x948] sm:$0xff] }
  0xbc   :  { %1216 = vmatprep.subr.mxu0 %v709_v48  ;;  %1287 = vmatprep.subr.mxu1 %v837_v49  ;;  %v1053_v48 = vld [vmem:[%s4681_s3 + $0xd48] sm:$0xff]  ;;  %v924_v49 = vld [vmem:[%s4681_s3 + $0x940] sm:$0xff] }
  0xbd   :  { %1217 = vmatpush2.msra.mxu0 %v708_v50  ;;  %1288 = vmatpush2.msra.mxu1 %v836_v51  ;;  %v1052_v50 = vld [vmem:[%s4681_s3 + $0xd40] sm:$0xff]  ;;  %v921_v51 = vld [vmem:[%s4681_s3 + $0x928] sm:$0xff] }
  0xbe   :  { %1218 = vmatprep.subr.mxu0 %v705_v52  ;;  %1289 = vmatprep.subr.mxu1 %v833_v53  ;;  %v1049_v52 = vld [vmem:[%s4681_s3 + $0xd28] sm:$0xff]  ;;  %v920_v53 = vld [vmem:[%s4681_s3 + $0x920] sm:$0xff] }
  0xbf   :  { %1219 = vmatpush2.msra.mxu0 %v704_v54  ;;  %1290 = vmatpush2.msra.mxu1 %v832_v55  ;;  %v1048_v54 = vld [vmem:[%s4681_s3 + $0xd20] sm:$0xff]  ;;  %v917_v55 = vld [vmem:[%s4681_s3 + $0x908] sm:$0xff] }
  0xc0   :  { %1220 = vmatprep.subr.mxu0 %v701_v57  ;;  %1291 = vmatprep.subr.mxu1 %v829_v58  ;;  %v1045_v57 = vld [vmem:[%s4681_s3 + $0xd08] sm:$0xff]  ;;  %v916_v58 = vld [vmem:[%s4681_s3 + $0x900] sm:$0xff] }
  0xc1   :  { %1221 = vmatpush2.msra.mxu0 %v700_v59  ;;  %1292 = vmatpush2.msra.mxu1 %v828_v60  ;;  %v1044_v59 = vld [vmem:[%s4681_s3 + $0xd00] sm:$0xff]  ;;  %v913_v60 = vld [vmem:[%s4681_s3 + $0x8e8] sm:$0xff] }
  0xc2   :  { %1222 = vmatprep.subr.mxu0 %v697_v61  ;;  %1293 = vmatprep.subr.mxu1 %v825_v62  ;;  %v1041_v61 = vld [vmem:[%s4681_s3 + $0xce8] sm:$0xff]  ;;  %v912_v62 = vld [vmem:[%s4681_s3 + $0x8e0] sm:$0xff] }
  0xc3   :  { %1223 = vmatpush2.msra.mxu0 %v696_v0  ;;  %1294 = vmatpush2.msra.mxu1 %v824_v1  ;;  %v1040_v0 = vld [vmem:[%s4681_s3 + $0xce0] sm:$0xff]  ;;  %v909_v1 = vld [vmem:[%s4681_s3 + $0x8c8] sm:$0xff] }
  0xc4   :  { %1224 = vmatprep.subr.mxu0 %v693_v2  ;;  %1295 = vmatprep.subr.mxu1 %v821_v3  ;;  %v1037_v2 = vld [vmem:[%s4681_s3 + $0xcc8] sm:$0xff]  ;;  %v908_v3 = vld [vmem:[%s4681_s3 + $0x8c0] sm:$0xff] }
  0xc5   :  { %1225 = vmatpush2.msra.mxu0 %v692_v4  ;;  %1296 = vmatpush2.msra.mxu1 %v820_v5  ;;  %v1036_v4 = vld [vmem:[%s4681_s3 + $0xcc0] sm:$0xff]  ;;  %v905_v5 = vld [vmem:[%s4681_s3 + $0x8a8] sm:$0xff] }
  0xc6   :  { %1304 = vmatprep.subr.mxu0 %v945_v6  ;;  %1375 = vmatprep.subr.mxu1 %v1073_v7  ;;  %v1033_v6 = vld [vmem:[%s4681_s3 + $0xca8] sm:$0xff]  ;;  %v904_v7 = vld [vmem:[%s4681_s3 + $0x8a0] sm:$0xff] }
 0x103   :  { %v402_v17 = vpop.f32.mrf.mxu0  ;;  %v473_v18 = vpop.f32.mrf.mxu1 }
 0x104   :  { %v3260_v19 = vadd.f32 %v473_v18, %v296_v13  ;;  %v3262_v20 = vadd.f32 %v402_v17, %v288_v14  ;;  %v901_v13 = vld [vmem:[%s4681_s3 + $0x888] sm:$0xff] }
 0x105   :  { %v404_v21 = vpop.f32.mrf.mxu0  ;;  %v475_v22 = vpop.f32.mrf.mxu1  ;;  %v1029_v14 = vld [vmem:[%s4681_s3 + $0xc88] sm:$0xff] }
 0x106   :  { %v3264_v23 = vadd.f32 %v404_v21, %v292_v15  ;;  %v3266_v24 = vadd.f32 %v475_v22, %v300_v16  ;;  %v622_v25 = vmax.f32 %v3260_v19, 0.0  ;;  %v620_v28 = vmax.f32 %v3262_v20, 0.0  ;;  %v900_v15 = vld [vmem:[%s4681_s3 + $0x880] sm:$0xff]  ;;  %v897_v17 = vld [vmem:[%s4681_s3 + $0x868] sm:$0xff]  ;;  %v942_v19 = vld [vmem:[%s4681_s3 + $0x9d0] sm:$0xff] }
 0x107   :  { %v1028_v16 = vld [vmem:[%s4681_s3 + $0xc80] sm:$0xff]  ;;  %v1025_v18 = vld [vmem:[%s4681_s3 + $0xc68] sm:$0xff]  ;;  %v1070_v20 = vld [vmem:[%s4681_s3 + $0xdd0] sm:$0xff] }
 0x108   :  { %v621_v26 = vmax.f32 %v3264_v23, 0.0  ;;  %v623_v27 = vmax.f32 %v3266_v24, 0.0  ;;  %v896_v21 = vld [vmem:[%s4681_s3 + $0x860] sm:$0xff]  ;;  %v810_v23 = vld [vmem:[%s4681_s3 + $0x5b0] sm:$0xff] }
 0x109   :  { %v1024_v22 = vld [vmem:[%s4681_s3 + $0xc60] sm:$0xff]  ;;  %v678_v24 = vld [vmem:[%s4681_s3 + $0x190] sm:$0xff] }
 0x10a   :  { %1226 = vmatprep.mubr.f32.mxu0 %v621_v26  ;;  %1297 = vmatprep.mubr.f32.mxu1 %v623_v27 }
 0x10b   :  { %1227 = vmatmul.mubr.f32.vlgmr.msra.gmra.mxu0 %v620_v28  ;;  %1298 = vmatmul.mubr.f32.vlgmr.msra.gmra.mxu1 %v622_v25 }
 0x10c   :  { %1305 = vmatpush1.msra.mxu0 %v944_v29  ;;  %1376 = vmatpush1.msra.mxu1 %v1072_v30  ;;  %v893_v29 = vld [vmem:[%s4681_s3 + $0x848] sm:$0xff] }
 0x10d   :  { %1306 = vmatprep.subr.mxu0 %v941_v31  ;;  %1377 = vmatprep.subr.mxu1 %v1069_v32  ;;  %v1021_v30 = vld [vmem:[%s4681_s3 + $0xc48] sm:$0xff]  ;;  %v892_v31 = vld [vmem:[%s4681_s3 + $0x840] sm:$0xff] }
 0x10e   :  { %1307 = vmatpush1.msra.mxu0 %v940_v33  ;;  %1378 = vmatpush1.msra.mxu1 %v1068_v34  ;;  %v1020_v32 = vld [vmem:[%s4681_s3 + $0xc40] sm:$0xff]  ;;  %v889_v33 = vld [vmem:[%s4681_s3 + $0x828] sm:$0xff] }
 0x10f   :  { %1308 = vmatprep.subr.mxu0 %v937_v35  ;;  %1379 = vmatprep.subr.mxu1 %v1065_v36  ;;  %v1017_v34 = vld [vmem:[%s4681_s3 + $0xc28] sm:$0xff]  ;;  %v888_v35 = vld [vmem:[%s4681_s3 + $0x820] sm:$0xff] }
 0x110   :  { %1309 = vmatpush1.msra.mxu0 %v936_v37  ;;  %1380 = vmatpush1.msra.mxu1 %v1064_v38  ;;  %v1016_v36 = vld [vmem:[%s4681_s3 + $0xc20] sm:$0xff]  ;;  %v885_v37 = vld [vmem:[%s4681_s3 + $0x808] sm:$0xff] }
 0x111   :  { %1310 = vmatprep.subr.mxu0 %v933_v39  ;;  %1381 = vmatprep.subr.mxu1 %v1061_v40  ;;  %v1013_v38 = vld [vmem:[%s4681_s3 + $0xc08] sm:$0xff]  ;;  %v884_v39 = vld [vmem:[%s4681_s3 + $0x800] sm:$0xff] }
 0x112   :  { %1311 = vmatpush1.msra.mxu0 %v932_v41  ;;  %1382 = vmatpush1.msra.mxu1 %v1060_v42  ;;  %v1012_v40 = vld [vmem:[%s4681_s3 + $0xc00] sm:$0xff]  ;;  %v1009_v41 = vld [vmem:[%s4681_s3 + $0xbe8] sm:$0xff] }
 0x113   :  { %1312 = vmatprep.subr.mxu0 %v929_v43  ;;  %1383 = vmatprep.subr.mxu1 %v1057_v44  ;;  %v1137_v42 = vld [vmem:[%s4681_s3 + $0xfe8] sm:$0xff]  ;;  %v1008_v43 = vld [vmem:[%s4681_s3 + $0xbe0] sm:$0xff] }
 0x114   :  { %1313 = vmatpush1.msra.mxu0 %v928_v45  ;;  %1384 = vmatpush1.msra.mxu1 %v1056_v46  ;;  %v1136_v44 = vld [vmem:[%s4681_s3 + $0xfe0] sm:$0xff]  ;;  %v1005_v45 = vld [vmem:[%s4681_s3 + $0xbc8] sm:$0xff] }
 0x115   :  { %1314 = vmatprep.subr.mxu0 %v925_v47  ;;  %1385 = vmatprep.subr.mxu1 %v1053_v48  ;;  %v1133_v46 = vld [vmem:[%s4681_s3 + $0xfc8] sm:$0xff]  ;;  %v1004_v47 = vld [vmem:[%s4681_s3 + $0xbc0] sm:$0xff] }
 0x116   :  { %1315 = vmatpush1.msra.mxu0 %v924_v49  ;;  %1386 = vmatpush1.msra.mxu1 %v1052_v50  ;;  %v1132_v48 = vld [vmem:[%s4681_s3 + $0xfc0] sm:$0xff]  ;;  %v1001_v49 = vld [vmem:[%s4681_s3 + $0xba8] sm:$0xff] }
 0x117   :  { %1316 = vmatprep.subr.mxu0 %v921_v51  ;;  %1387 = vmatprep.subr.mxu1 %v1049_v52  ;;  %v1129_v50 = vld [vmem:[%s4681_s3 + $0xfa8] sm:$0xff]  ;;  %v1000_v51 = vld [vmem:[%s4681_s3 + $0xba0] sm:$0xff] }
 0x118   :  { %1317 = vmatpush1.msra.mxu0 %v920_v53  ;;  %1388 = vmatpush1.msra.mxu1 %v1048_v54  ;;  %v1128_v52 = vld [vmem:[%s4681_s3 + $0xfa0] sm:$0xff]  ;;  %v997_v53 = vld [vmem:[%s4681_s3 + $0xb88] sm:$0xff] }
 0x119   :  { %1318 = vmatprep.subr.mxu0 %v917_v55  ;;  %1389 = vmatprep.subr.mxu1 %v1045_v57  ;;  %v1125_v54 = vld [vmem:[%s4681_s3 + $0xf88] sm:$0xff]  ;;  %v996_v55 = vld [vmem:[%s4681_s3 + $0xb80] sm:$0xff] }
 0x11a   :  { %1319 = vmatpush1.msra.mxu0 %v916_v58  ;;  %1390 = vmatpush1.msra.mxu1 %v1044_v59  ;;  %v1124_v57 = vld [vmem:[%s4681_s3 + $0xf80] sm:$0xff]  ;;  %v993_v58 = vld [vmem:[%s4681_s3 + $0xb68] sm:$0xff] }
 0x11b   :  { %1320 = vmatprep.subr.mxu0 %v913_v60  ;;  %1391 = vmatprep.subr.mxu1 %v1041_v61  ;;  %v1121_v59 = vld [vmem:[%s4681_s3 + $0xf68] sm:$0xff]  ;;  %v992_v60 = vld [vmem:[%s4681_s3 + $0xb60] sm:$0xff] }
 0x11c   :  { %1321 = vmatpush1.msra.mxu0 %v912_v62  ;;  %1392 = vmatpush1.msra.mxu1 %v1040_v0  ;;  %v1120_v61 = vld [vmem:[%s4681_s3 + $0xf60] sm:$0xff]  ;;  %v989_v62 = vld [vmem:[%s4681_s3 + $0xb48] sm:$0xff] }
 0x11d   :  { %1322 = vmatprep.subr.mxu0 %v909_v1  ;;  %1393 = vmatprep.subr.mxu1 %v1037_v2  ;;  %v1117_v0 = vld [vmem:[%s4681_s3 + $0xf48] sm:$0xff]  ;;  %v988_v1 = vld [vmem:[%s4681_s3 + $0xb40] sm:$0xff] }
 0x11e   :  { %1323 = vmatpush1.msra.mxu0 %v908_v3  ;;  %1394 = vmatpush1.msra.mxu1 %v1036_v4  ;;  %v1116_v2 = vld [vmem:[%s4681_s3 + $0xf40] sm:$0xff]  ;;  %v985_v3 = vld [vmem:[%s4681_s3 + $0xb28] sm:$0xff] }
 0x11f   :  { %1324 = vmatprep.subr.mxu0 %v905_v5  ;;  %1395 = vmatprep.subr.mxu1 %v1033_v6  ;;  %v1113_v4 = vld [vmem:[%s4681_s3 + $0xf28] sm:$0xff]  ;;  %v984_v5 = vld [vmem:[%s4681_s3 + $0xb20] sm:$0xff] }
 0x120   :  { %1325 = vmatpush1.msra.mxu0 %v904_v7  ;;  %1396 = vmatpush1.msra.mxu1 %v1032_v8  ;;  %v1112_v6 = vld [vmem:[%s4681_s3 + $0xf20] sm:$0xff]  ;;  %v981_v7 = vld [vmem:[%s4681_s3 + $0xb08] sm:$0xff] }
 0x121   :  { %1326 = vmatprep.subr.mxu0 %v901_v13  ;;  %1397 = vmatprep.subr.mxu1 %v1029_v14  ;;  %v1109_v8 = vld [vmem:[%s4681_s3 + $0xf08] sm:$0xff]  ;;  %v980_v13 = vld [vmem:[%s4681_s3 + $0xb00] sm:$0xff] }
 0x122   :  { %1327 = vmatpush1.msra.mxu0 %v900_v15  ;;  %1398 = vmatpush1.msra.mxu1 %v1028_v16  ;;  %v1108_v14 = vld [vmem:[%s4681_s3 + $0xf00] sm:$0xff]  ;;  %v977_v15 = vld [vmem:[%s4681_s3 + $0xae8] sm:$0xff] }
 0x123   :  { %1328 = vmatprep.subr.mxu0 %v897_v17  ;;  %1399 = vmatprep.subr.mxu1 %v1025_v18  ;;  %v1105_v16 = vld [vmem:[%s4681_s3 + $0xee8] sm:$0xff]  ;;  %v976_v17 = vld [vmem:[%s4681_s3 + $0xae0] sm:$0xff] }
 0x124   :  { %1329 = vmatpush1.msra.mxu0 %v896_v21  ;;  %1400 = vmatpush1.msra.mxu1 %v1024_v22  ;;  %v1104_v18 = vld [vmem:[%s4681_s3 + $0xee0] sm:$0xff]  ;;  %v973_v21 = vld [vmem:[%s4681_s3 + $0xac8] sm:$0xff] }
 0x125   :  { %1330 = vmatprep.subr.mxu0 %v893_v29  ;;  %1401 = vmatprep.subr.mxu1 %v1021_v30  ;;  %v1101_v22 = vld [vmem:[%s4681_s3 + $0xec8] sm:$0xff]  ;;  %v972_v29 = vld [vmem:[%s4681_s3 + $0xac0] sm:$0xff] }
 0x126   :  { %1331 = vmatpush1.msra.mxu0 %v892_v31  ;;  %1402 = vmatpush1.msra.mxu1 %v1020_v32  ;;  %v1100_v30 = vld [vmem:[%s4681_s3 + $0xec0] sm:$0xff]  ;;  %v969_v31 = vld [vmem:[%s4681_s3 + $0xaa8] sm:$0xff] }
 0x127   :  { %1332 = vmatprep.subr.mxu0 %v889_v33  ;;  %1403 = vmatprep.subr.mxu1 %v1017_v34  ;;  %v1097_v32 = vld [vmem:[%s4681_s3 + $0xea8] sm:$0xff]  ;;  %v968_v33 = vld [vmem:[%s4681_s3 + $0xaa0] sm:$0xff] }
 0x128   :  { %1333 = vmatpush1.msra.mxu0 %v888_v35  ;;  %1404 = vmatpush1.msra.mxu1 %v1016_v36  ;;  %v1096_v34 = vld [vmem:[%s4681_s3 + $0xea0] sm:$0xff]  ;;  %v965_v35 = vld [vmem:[%s4681_s3 + $0xa88] sm:$0xff] }
 0x129   :  { %1334 = vmatprep.subr.mxu0 %v885_v37  ;;  %1405 = vmatprep.subr.mxu1 %v1013_v38  ;;  %v1093_v36 = vld [vmem:[%s4681_s3 + $0xe88] sm:$0xff]  ;;  %v311_v37 = vsub.s32 6, %v3237_v9  ;;  %v964_v38 = vld [vmem:[%s4681_s3 + $0xa80] sm:$0xff] }
 0x12a   :  { %1335 = vmatpush1.msra.mxu0 %v884_v39  ;;  %1406 = vmatpush1.msra.mxu1 %v1012_v40  ;;  %v1092_v39 = vld [vmem:[%s4681_s3 + $0xe80] sm:$0xff]  ;;  %v303_v40 = vsub.s32 4, %v3237_v9 }
 0x12b   :  { %1336 = vmatprep.subr.mxu0 %v1009_v41  ;;  %1407 = vmatprep.subr.mxu1 %v1137_v42  ;;  %v961_v41 = vld [vmem:[%s4681_s3 + $0xa68] sm:$0xff] }
 0x12c   :  { %1337 = vmatpush2.msra.mxu0 %v1008_v43  ;;  %1408 = vmatpush2.msra.mxu1 %v1136_v44  ;;  %v1089_v42 = vld [vmem:[%s4681_s3 + $0xe68] sm:$0xff]  ;;  %v307_v43 = vsub.s32 5, %v3237_v9  ;;  %v315_v44 = vsub.s32 7, %v3237_v9 }
 0x12d   :  { %1338 = vmatprep.subr.mxu0 %v1005_v45  ;;  %1409 = vmatprep.subr.mxu1 %v1133_v46  ;;  %v960_v45 = vld [vmem:[%s4681_s3 + $0xa60] sm:$0xff] }
 0x12e   :  { %1339 = vmatpush2.msra.mxu0 %v1004_v47  ;;  %1410 = vmatpush2.msra.mxu1 %v1132_v48  ;;  %v1088_v46 = vld [vmem:[%s4681_s3 + $0xe60] sm:$0xff]  ;;  %v312_v47 = vrot.slane %v3244_v11, %v311_v37  ;;  %v957_v48 = vld [vmem:[%s4681_s3 + $0xa48] sm:$0xff]  ;;  %v803_v37 = vld [vmem:[%s4681_s3 + $0x578] sm:$0xff] }
 0x12f   :  { %1340 = vmatprep.subr.mxu0 %v1001_v49  ;;  %1411 = vmatprep.subr.mxu1 %v1129_v50  ;;  %v1085_v49 = vld [vmem:[%s4681_s3 + $0xe48] sm:$0xff]  ;;  %v304_v50 = vrot.slane %v3244_v11, %v303_v40  ;;  %v671_v40 = vld [vmem:[%s4681_s3 + $0x158] sm:$0xff] }
 0x130   :  { %1341 = vmatpush2.msra.mxu0 %v1000_v51  ;;  %1412 = vmatpush2.msra.mxu1 %v1128_v52  ;;  %v956_v51 = vld [vmem:[%s4681_s3 + $0xa40] sm:$0xff] }
 0x131   :  { %1342 = vmatprep.subr.mxu0 %v997_v53  ;;  %1413 = vmatprep.subr.mxu1 %v1125_v54  ;;  %v1084_v52 = vld [vmem:[%s4681_s3 + $0xe40] sm:$0xff]  ;;  %v308_v53 = vrot.slane %v3244_v11, %v307_v43  ;;  %v316_v54 = vrot.slane %v3244_v11, %v315_v44  ;;  %v798_v43 = vld [vmem:[%s4681_s3 + $0x550] sm:$0xff]  ;;  %v667_v44 = vld [vmem:[%s4681_s3 + $0x138] sm:$0xff] }
 0x132   :  { %1343 = vmatpush2.msra.mxu0 %v996_v55  ;;  %1414 = vmatpush2.msra.mxu1 %v1124_v57  ;;  %v953_v55 = vld [vmem:[%s4681_s3 + $0xa28] sm:$0xff]  ;;  %v1080_v11 = vld [vmem:[%s4681_s3 + $0xe20] sm:$0xff] }
 0x133   :  { %1344 = vmatprep.subr.mxu0 %v993_v58  ;;  %1415 = vmatprep.subr.mxu1 %v1121_v59  ;;  %v1081_v57 = vld [vmem:[%s4681_s3 + $0xe28] sm:$0xff] }
 0x134   :  { %1345 = vmatpush2.msra.mxu0 %v992_v60  ;;  %1416 = vmatpush2.msra.mxu1 %v1120_v61  ;;  %v952_v60 = vld [vmem:[%s4681_s3 + $0xa20] sm:$0xff] }
 0x135   :  { %1346 = vmatprep.subr.mxu0 %v989_v62  ;;  %1417 = vmatprep.subr.mxu1 %v1117_v0  ;;  %v949_v62 = vld [vmem:[%s4681_s3 + $0xa08] sm:$0xff] }
 0x136   :  { %1347 = vmatpush2.msra.mxu0 %v988_v1  ;;  %1418 = vmatpush2.msra.mxu1 %v1116_v2  ;;  %v1077_v0 = vld [vmem:[%s4681_s3 + $0xe08] sm:$0xff] }
 0x137   :  { %1348 = vmatprep.subr.mxu0 %v985_v3  ;;  %1419 = vmatprep.subr.mxu1 %v1113_v4  ;;  %v948_v4 = vld [vmem:[%s4681_s3 + $0xa00] sm:$0xff] }
 0x138   :  { %1349 = vmatpush2.msra.mxu0 %v984_v5  ;;  %1420 = vmatpush2.msra.mxu1 %v1112_v6  ;;  %v1076_v5 = vld [vmem:[%s4681_s3 + $0xe00] sm:$0xff] }
 0x139   :  { %1350 = vmatprep.subr.mxu0 %v981_v7  ;;  %1421 = vmatprep.subr.mxu1 %v1109_v8  ;;  %v691_v8 = vld [vmem:[%s4681_s3 + $0x1f8] sm:$0xff] }
 0x13a   :  { %1351 = vmatpush2.msra.mxu0 %v980_v13  ;;  %1422 = vmatpush2.msra.mxu1 %v1108_v14  ;;  %v819_v13 = vld [vmem:[%s4681_s3 + $0x5f8] sm:$0xff] }
 0x13b   :  { %1352 = vmatprep.subr.mxu0 %v977_v15  ;;  %1423 = vmatprep.subr.mxu1 %v1105_v16 }
 0x13c   :  { %1353 = vmatpush2.msra.mxu0 %v976_v17  ;;  %1424 = vmatpush2.msra.mxu1 %v1104_v18  ;;  %v690_v18 = vld [vmem:[%s4681_s3 + $0x1f0] sm:$0xff] }
 0x13d   :  { %1354 = vmatprep.subr.mxu0 %v973_v21  ;;  %1425 = vmatprep.subr.mxu1 %v1101_v22  ;;  %v818_v21 = vld [vmem:[%s4681_s3 + $0x5f0] sm:$0xff]  ;;  %v687_v22 = vld [vmem:[%s4681_s3 + $0x1d8] sm:$0xff] }
 0x13e   :  { %1355 = vmatpush2.msra.mxu0 %v972_v29  ;;  %1426 = vmatpush2.msra.mxu1 %v1100_v30  ;;  %v815_v29 = vld [vmem:[%s4681_s3 + $0x5d8] sm:$0xff]  ;;  %v686_v30 = vld [vmem:[%s4681_s3 + $0x1d0] sm:$0xff] }
 0x13f   :  { %1356 = vmatprep.subr.mxu0 %v969_v31  ;;  %1427 = vmatprep.subr.mxu1 %v1097_v32  ;;  %v814_v31 = vld [vmem:[%s4681_s3 + $0x5d0] sm:$0xff]  ;;  %v683_v32 = vld [vmem:[%s4681_s3 + $0x1b8] sm:$0xff] }
 0x140   :  { %1357 = vmatpush2.msra.mxu0 %v968_v33  ;;  %1428 = vmatpush2.msra.mxu1 %v1096_v34  ;;  %v811_v33 = vld [vmem:[%s4681_s3 + $0x5b8] sm:$0xff]  ;;  %v682_v34 = vld [vmem:[%s4681_s3 + $0x1b0] sm:$0xff] }
 0x141   :  { %1358 = vmatprep.subr.mxu0 %v965_v35  ;;  %1429 = vmatprep.subr.mxu1 %v1093_v36  ;;  %v807_v35 = vld [vmem:[%s4681_s3 + $0x598] sm:$0xff] }
 0x142   :  { %1359 = vmatpush2.msra.mxu0 %v964_v38  ;;  %1430 = vmatpush2.msra.mxu1 %v1092_v39  ;;  %v675_v36 = vld [vmem:[%s4681_s3 + $0x178] sm:$0xff]  ;;  %v674_v38 = vld [vmem:[%s4681_s3 + $0x170] sm:$0xff] }
 0x143   :  { %1360 = vmatprep.subr.mxu0 %v961_v41  ;;  %1431 = vmatprep.subr.mxu1 %v1089_v42  ;;  %v802_v39 = vld [vmem:[%s4681_s3 + $0x570] sm:$0xff]  ;;  %v799_v41 = vld [vmem:[%s4681_s3 + $0x558] sm:$0xff] }
 0x144   :  { %1361 = vmatpush2.msra.mxu0 %v960_v45  ;;  %1432 = vmatpush2.msra.mxu1 %v1088_v46  ;;  %v670_v42 = vld [vmem:[%s4681_s3 + $0x150] sm:$0xff]  ;;  %v795_v45 = vld [vmem:[%s4681_s3 + $0x538] sm:$0xff] }
 0x145   :  { %v544_v58 = vpop.f32.mrf.mxu0  ;;  %v615_v59 = vpop.f32.mrf.mxu1  ;;  %1362 = vmatprep.subr.mxu0 %v957_v48  ;;  %1433 = vmatprep.subr.mxu1 %v1085_v49  ;;  %v666_v46 = vld [vmem:[%s4681_s3 + $0x130] sm:$0xff]  ;;  %v663_v48 = vld [vmem:[%s4681_s3 + $0x118] sm:$0xff] }
 0x146   :  { %v3654_v61 = vadd.f32 %v615_v59, %v312_v47  ;;  %1363 = vmatpush2.msra.mxu0 %v956_v51  ;;  %1434 = vmatpush2.msra.mxu1 %v1084_v52  ;;  %v3662_v1 = vadd.f32 %v544_v58, %v304_v50  ;;  %v794_v47 = vld [vmem:[%s4681_s3 + $0x530] sm:$0xff]  ;;  %v791_v49 = vld [vmem:[%s4681_s3 + $0x518] sm:$0xff] }
 0x147   :  { %v546_v2 = vpop.f32.mrf.mxu0  ;;  %v617_v3 = vpop.f32.mrf.mxu1  ;;  %1364 = vmatprep.subr.mxu0 %v953_v55  ;;  %1435 = vmatprep.subr.mxu1 %v1081_v57  ;;  %v662_v50 = vld [vmem:[%s4681_s3 + $0x110] sm:$0xff]  ;;  %v659_v52 = vld [vmem:[%s4681_s3 + $0xf8] sm:$0xff] }
 0x148   :  { %v3670_v6 = vadd.f32 %v546_v2, %v308_v53  ;;  %v3672_v7 = vadd.f32 %v617_v3, %v316_v54  ;;  %1365 = vmatpush2.msra.mxu0 %v952_v60  ;;  %1436 = vmatpush2.msra.mxu1 %v1080_v11  ;;  %v626_v14 = vmax.f32 %v3654_v61, 0.0  ;;  %v624_v17 = vmax.f32 %v3662_v1, 0.0  ;;  %v790_v51 = vld [vmem:[%s4681_s3 + $0x510] sm:$0xff]  ;;  %v787_v53 = vld [vmem:[%s4681_s3 + $0x4f8] sm:$0xff]  ;;  %v1747_v1 = vld [vmem:[%s4683_s5 + $0x68] sm:$0xff] }
 0x149   :  { %1366 = vmatprep.subr.mxu0 %v949_v62  ;;  %1437 = vmatprep.subr.mxu1 %v1077_v0  ;;  %v658_v54 = vld [vmem:[%s4681_s3 + $0xf0] sm:$0xff]  ;;  %v655_v57 = vld [vmem:[%s4681_s3 + $0xd8] sm:$0xff] }
 0x14a   :  { %v625_v15 = vmax.f32 %v3670_v6, 0.0  ;;  %v627_v16 = vmax.f32 %v3672_v7, 0.0  ;;  %1367 = vmatpush2.msra.mxu0 %v948_v4  ;;  %1438 = vmatpush2.msra.mxu1 %v1076_v5  ;;  %v786_v55 = vld [vmem:[%s4681_s3 + $0x4f0] sm:$0xff]  ;;  %v783_v58 = vld [vmem:[%s4681_s3 + $0x4d8] sm:$0xff] }
 0x14b   :  { %1446 = vmatprep.subr.mxu0 %v691_v8  ;;  %1517 = vmatprep.subr.mxu1 %v819_v13  ;;  %v654_v59 = vld [vmem:[%s4681_s3 + $0xd0] sm:$0xff]  ;;  %v651_v11 = vld [vmem:[%s4681_s3 + $0xb8] sm:$0xff] }
 0x14c   :  { %1368 = vmatprep.mubr.f32.mxu0 %v625_v15  ;;  %1439 = vmatprep.mubr.f32.mxu1 %v627_v16  ;;  %v782_v60 = vld [vmem:[%s4681_s3 + $0x4d0] sm:$0xff]  ;;  %v779_v62 = vld [vmem:[%s4681_s3 + $0x4b8] sm:$0xff] }
 0x14d   :  { %1369 = vmatmul.mubr.f32.vlgmr.msra.gmra.mxu0 %v624_v17  ;;  %1440 = vmatmul.mubr.f32.vlgmr.msra.gmra.mxu1 %v626_v14  ;;  %v650_v0 = vld [vmem:[%s4681_s3 + $0xb0] sm:$0xff]  ;;  %v647_v3 = vld [vmem:[%s4681_s3 + $0x98] sm:$0xff] }
 0x14e   :  { %1447 = vmatpush1.msra.mxu0 %v690_v18  ;;  %1518 = vmatpush1.msra.mxu1 %v818_v21  ;;  %v778_v2 = vld [vmem:[%s4681_s3 + $0x4b0] sm:$0xff]  ;;  %v775_v4 = vld [vmem:[%s4681_s3 + $0x498] sm:$0xff] }
 0x14f   :  { %1448 = vmatprep.subr.mxu0 %v687_v22  ;;  %1510 = vmatprep.mubr.f32.mxu0 %v621_v26  ;;  %v679_v26 = vld [vmem:[%s4681_s3 + $0x198] sm:$0xff]  ;;  %v646_v5 = vld [vmem:[%s4681_s3 + $0x90] sm:$0xff] }
 0x150   :  { %1519 = vmatprep.subr.mxu1 %v815_v29  ;;  %1581 = vmatprep.mubr.f32.mxu1 %v623_v27  ;;  %v806_v27 = vld [vmem:[%s4681_s3 + $0x590] sm:$0xff]  ;;  %v643_v13 = vld [vmem:[%s4681_s3 + $0x78] sm:$0xff] }
 0x151   :  { %1449 = vmatpush1.msra.mxu0 %v686_v30  ;;  %1520 = vmatpush1.msra.mxu1 %v814_v31  ;;  %v774_v8 = vld [vmem:[%s4681_s3 + $0x490] sm:$0xff]  ;;  %v771_v18 = vld [vmem:[%s4681_s3 + $0x478] sm:$0xff] }
 0x152   :  { %1450 = vmatprep.subr.mxu0 %v683_v32  ;;  %1521 = vmatprep.subr.mxu1 %v811_v33  ;;  %v642_v21 = vld [vmem:[%s4681_s3 + $0x70] sm:$0xff]  ;;  %v639_v29 = vld [vmem:[%s4681_s3 + $0x58] sm:$0xff] }
 0x153   :  { %1451 = vmatpush1.msra.mxu0 %v682_v34  ;;  %1522 = vmatpush1.msra.mxu1 %v810_v23  ;;  %v770_v22 = vld [vmem:[%s4681_s3 + $0x470] sm:$0xff]  ;;  %v767_v30 = vld [vmem:[%s4681_s3 + $0x458] sm:$0xff] }
 0x154   :  { %1452 = vmatprep.subr.mxu0 %v679_v26  ;;  %1523 = vmatprep.subr.mxu1 %v807_v35  ;;  %v638_v31 = vld [vmem:[%s4681_s3 + $0x50] sm:$0xff]  ;;  %v635_v33 = vld [vmem:[%s4681_s3 + $0x38] sm:$0xff] }
 0x155   :  { %1453 = vmatpush1.msra.mxu0 %v678_v24  ;;  %1524 = vmatpush1.msra.mxu1 %v806_v27  ;;  %v766_v32 = vld [vmem:[%s4681_s3 + $0x450] sm:$0xff]  ;;  %v763_v34 = vld [vmem:[%s4681_s3 + $0x438] sm:$0xff] }
 0x156   :  { %1454 = vmatprep.subr.mxu0 %v675_v36  ;;  %1525 = vmatprep.subr.mxu1 %v803_v37  ;;  %v634_v23 = vld [vmem:[%s4681_s3 + $0x30] sm:$0xff]  ;;  %v631_v35 = vld [vmem:[%s4681_s3 + $0x18] sm:$0xff] }
 0x157   :  { %1455 = vmatpush1.msra.mxu0 %v674_v38  ;;  %1526 = vmatpush1.msra.mxu1 %v802_v39  ;;  %v762_v26 = vld [vmem:[%s4681_s3 + $0x430] sm:$0xff]  ;;  %v759_v24 = vld [vmem:[%s4681_s3 + $0x418] sm:$0xff] }
 0x158   :  { %1456 = vmatprep.subr.mxu0 %v671_v40  ;;  %1527 = vmatprep.subr.mxu1 %v799_v41  ;;  %v630_v27 = vld [vmem:[%s4681_s3 + $0x10] sm:$0xff]  ;;  %v755_v37 = vld [vmem:[%s4681_s3 + $0x3f8] sm:$0xff] }
 0x159   :  { %1457 = vmatpush1.msra.mxu0 %v670_v42  ;;  %1528 = vmatpush1.msra.mxu1 %v798_v43  ;;  %v758_v36 = vld [vmem:[%s4681_s3 + $0x410] sm:$0xff]  ;;  %v883_v38 = vld [vmem:[%s4681_s3 + $0x7f8] sm:$0xff] }
 0x15a   :  { %1458 = vmatprep.subr.mxu0 %v667_v44  ;;  %1529 = vmatprep.subr.mxu1 %v795_v45  ;;  %v754_v39 = vld [vmem:[%s4681_s3 + $0x3f0] sm:$0xff]  ;;  %v751_v41 = vld [vmem:[%s4681_s3 + $0x3d8] sm:$0xff] }
 0x15b   :  { %1459 = vmatpush1.msra.mxu0 %v666_v46  ;;  %1530 = vmatpush1.msra.mxu1 %v794_v47  ;;  %v882_v40 = vld [vmem:[%s4681_s3 + $0x7f0] sm:$0xff]  ;;  %v879_v42 = vld [vmem:[%s4681_s3 + $0x7d8] sm:$0xff] }
 0x15c   :  { %1460 = vmatprep.subr.mxu0 %v663_v48  ;;  %1531 = vmatprep.subr.mxu1 %v791_v49  ;;  %v750_v43 = vld [vmem:[%s4681_s3 + $0x3d0] sm:$0xff]  ;;  %v747_v45 = vld [vmem:[%s4681_s3 + $0x3b8] sm:$0xff] }
 0x15d   :  { %1461 = vmatpush1.msra.mxu0 %v662_v50  ;;  %1532 = vmatpush1.msra.mxu1 %v790_v51  ;;  %v878_v44 = vld [vmem:[%s4681_s3 + $0x7d0] sm:$0xff]  ;;  %v875_v46 = vld [vmem:[%s4681_s3 + $0x7b8] sm:$0xff] }
 0x15e   :  { %1462 = vmatprep.subr.mxu0 %v659_v52  ;;  %1533 = vmatprep.subr.mxu1 %v787_v53  ;;  %v746_v47 = vld [vmem:[%s4681_s3 + $0x3b0] sm:$0xff]  ;;  %v743_v49 = vld [vmem:[%s4681_s3 + $0x398] sm:$0xff] }
 0x15f   :  { %1463 = vmatpush1.msra.mxu0 %v658_v54  ;;  %1534 = vmatpush1.msra.mxu1 %v786_v55  ;;  %v874_v48 = vld [vmem:[%s4681_s3 + $0x7b0] sm:$0xff]  ;;  %v871_v50 = vld [vmem:[%s4681_s3 + $0x798] sm:$0xff] }
 0x160   :  { %1464 = vmatprep.subr.mxu0 %v655_v57  ;;  %1535 = vmatprep.subr.mxu1 %v783_v58  ;;  %v742_v51 = vld [vmem:[%s4681_s3 + $0x390] sm:$0xff]  ;;  %v739_v53 = vld [vmem:[%s4681_s3 + $0x378] sm:$0xff] }
 0x161   :  { %1465 = vmatpush1.msra.mxu0 %v654_v59  ;;  %1536 = vmatpush1.msra.mxu1 %v782_v60  ;;  %v870_v52 = vld [vmem:[%s4681_s3 + $0x790] sm:$0xff]  ;;  %v867_v54 = vld [vmem:[%s4681_s3 + $0x778] sm:$0xff] }
 0x162   :  { %1466 = vmatprep.subr.mxu0 %v651_v11  ;;  %1537 = vmatprep.subr.mxu1 %v779_v62  ;;  %v738_v55 = vld [vmem:[%s4681_s3 + $0x370] sm:$0xff]  ;;  %v735_v58 = vld [vmem:[%s4681_s3 + $0x358] sm:$0xff] }
 0x163   :  { %1467 = vmatpush1.msra.mxu0 %v650_v0  ;;  %1538 = vmatpush1.msra.mxu1 %v778_v2  ;;  %v866_v57 = vld [vmem:[%s4681_s3 + $0x770] sm:$0xff]  ;;  %v863_v59 = vld [vmem:[%s4681_s3 + $0x758] sm:$0xff] }
 0x164   :  { %1468 = vmatprep.subr.mxu0 %v647_v3  ;;  %1539 = vmatprep.subr.mxu1 %v775_v4  ;;  %v734_v60 = vld [vmem:[%s4681_s3 + $0x350] sm:$0xff]  ;;  %v731_v62 = vld [vmem:[%s4681_s3 + $0x338] sm:$0xff] }
 0x165   :  { %1469 = vmatpush1.msra.mxu0 %v646_v5  ;;  %1540 = vmatpush1.msra.mxu1 %v774_v8  ;;  %v862_v11 = vld [vmem:[%s4681_s3 + $0x750] sm:$0xff]  ;;  %v859_v0 = vld [vmem:[%s4681_s3 + $0x738] sm:$0xff] }
 0x166   :  { %1470 = vmatprep.subr.mxu0 %v643_v13  ;;  %1541 = vmatprep.subr.mxu1 %v771_v18  ;;  %v730_v2 = vld [vmem:[%s4681_s3 + $0x330] sm:$0xff]  ;;  %v727_v4 = vld [vmem:[%s4681_s3 + $0x318] sm:$0xff] }
 0x167   :  { %1471 = vmatpush1.msra.mxu0 %v642_v21  ;;  %1542 = vmatpush1.msra.mxu1 %v770_v22  ;;  %v858_v3 = vld [vmem:[%s4681_s3 + $0x730] sm:$0xff]  ;;  %v855_v5 = vld [vmem:[%s4681_s3 + $0x718] sm:$0xff] }
 0x168   :  { %1472 = vmatprep.subr.mxu0 %v639_v29  ;;  %1543 = vmatprep.subr.mxu1 %v767_v30  ;;  %v726_v8 = vld [vmem:[%s4681_s3 + $0x310] sm:$0xff]  ;;  %v723_v18 = vld [vmem:[%s4681_s3 + $0x2f8] sm:$0xff] }
 0x169   :  { %1473 = vmatpush1.msra.mxu0 %v638_v31  ;;  %1544 = vmatpush1.msra.mxu1 %v766_v32  ;;  %v854_v13 = vld [vmem:[%s4681_s3 + $0x710] sm:$0xff]  ;;  %v851_v21 = vld [vmem:[%s4681_s3 + $0x6f8] sm:$0xff] }
 0x16a   :  { %1474 = vmatprep.subr.mxu0 %v635_v33  ;;  %1545 = vmatprep.subr.mxu1 %v763_v34  ;;  %v722_v22 = vld [vmem:[%s4681_s3 + $0x2f0] sm:$0xff]  ;;  %v719_v30 = vld [vmem:[%s4681_s3 + $0x2d8] sm:$0xff] }
 0x16b   :  { %1475 = vmatpush1.msra.mxu0 %v634_v23  ;;  %1546 = vmatpush1.msra.mxu1 %v762_v26  ;;  %v850_v29 = vld [vmem:[%s4681_s3 + $0x6f0] sm:$0xff]  ;;  %v847_v31 = vld [vmem:[%s4681_s3 + $0x6d8] sm:$0xff] }
 0x16c   :  { %1476 = vmatprep.subr.mxu0 %v631_v35  ;;  %1547 = vmatprep.subr.mxu1 %v759_v24  ;;  %v718_v32 = vld [vmem:[%s4681_s3 + $0x2d0] sm:$0xff]  ;;  %v715_v34 = vld [vmem:[%s4681_s3 + $0x2b8] sm:$0xff] }
 0x16d   :  { %1477 = vmatpush1.msra.mxu0 %v630_v27  ;;  %1548 = vmatpush1.msra.mxu1 %v758_v36  ;;  %v846_v33 = vld [vmem:[%s4681_s3 + $0x6d0] sm:$0xff]  ;;  %v843_v23 = vld [vmem:[%s4681_s3 + $0x6b8] sm:$0xff] }
 0x16e   :  { %1478 = vmatprep.subr.mxu0 %v755_v37  ;;  %1549 = vmatprep.subr.mxu1 %v883_v38  ;;  %v714_v26 = vld [vmem:[%s4681_s3 + $0x2b0] sm:$0xff]  ;;  %v711_v24 = vld [vmem:[%s4681_s3 + $0x298] sm:$0xff] }
 0x16f   :  { %1479 = vmatpush2.msra.mxu0 %v754_v39  ;;  %1550 = vmatpush2.msra.mxu1 %v882_v40  ;;  %v842_v35 = vld [vmem:[%s4681_s3 + $0x6b0] sm:$0xff]  ;;  %v839_v27 = vld [vmem:[%s4681_s3 + $0x698] sm:$0xff] }
 0x170   :  { %1480 = vmatprep.subr.mxu0 %v751_v41  ;;  %1551 = vmatprep.subr.mxu1 %v879_v42  ;;  %v710_v36 = vld [vmem:[%s4681_s3 + $0x290] sm:$0xff]  ;;  %v707_v38 = vld [vmem:[%s4681_s3 + $0x278] sm:$0xff] }
 0x171   :  { %1481 = vmatpush2.msra.mxu0 %v750_v43  ;;  %1552 = vmatpush2.msra.mxu1 %v878_v44  ;;  %v838_v37 = vld [vmem:[%s4681_s3 + $0x690] sm:$0xff]  ;;  %v835_v39 = vld [vmem:[%s4681_s3 + $0x678] sm:$0xff] }
 0x172   :  { %1482 = vmatprep.subr.mxu0 %v747_v45  ;;  %1553 = vmatprep.subr.mxu1 %v875_v46  ;;  %v706_v40 = vld [vmem:[%s4681_s3 + $0x270] sm:$0xff]  ;;  %v703_v42 = vld [vmem:[%s4681_s3 + $0x258] sm:$0xff] }
 0x173   :  { %1483 = vmatpush2.msra.mxu0 %v746_v47  ;;  %1554 = vmatpush2.msra.mxu1 %v874_v48  ;;  %v834_v41 = vld [vmem:[%s4681_s3 + $0x670] sm:$0xff]  ;;  %v831_v43 = vld [vmem:[%s4681_s3 + $0x658] sm:$0xff] }
 0x174   :  { %1484 = vmatprep.subr.mxu0 %v743_v49  ;;  %1555 = vmatprep.subr.mxu1 %v871_v50  ;;  %v702_v44 = vld [vmem:[%s4681_s3 + $0x250] sm:$0xff]  ;;  %v699_v46 = vld [vmem:[%s4681_s3 + $0x238] sm:$0xff] }
 0x175   :  { %1485 = vmatpush2.msra.mxu0 %v742_v51  ;;  %1556 = vmatpush2.msra.mxu1 %v870_v52  ;;  %v830_v45 = vld [vmem:[%s4681_s3 + $0x650] sm:$0xff]  ;;  %v827_v47 = vld [vmem:[%s4681_s3 + $0x638] sm:$0xff] }
 0x176   :  { %1486 = vmatprep.subr.mxu0 %v739_v53  ;;  %1557 = vmatprep.subr.mxu1 %v867_v54  ;;  %v698_v48 = vld [vmem:[%s4681_s3 + $0x230] sm:$0xff]  ;;  %v695_v50 = vld [vmem:[%s4681_s3 + $0x218] sm:$0xff] }
 0x177   :  { %1487 = vmatpush2.msra.mxu0 %v738_v55  ;;  %1558 = vmatpush2.msra.mxu1 %v866_v57  ;;  %v826_v49 = vld [vmem:[%s4681_s3 + $0x630] sm:$0xff]  ;;  %v823_v51 = vld [vmem:[%s4681_s3 + $0x618] sm:$0xff] }
 0x178   :  { %1488 = vmatprep.subr.mxu0 %v735_v58  ;;  %1559 = vmatprep.subr.mxu1 %v863_v59  ;;  %v694_v52 = vld [vmem:[%s4681_s3 + $0x210] sm:$0xff]  ;;  %v947_v54 = vld [vmem:[%s4681_s3 + $0x9f8] sm:$0xff] }
 0x179   :  { %1489 = vmatpush2.msra.mxu0 %v734_v60  ;;  %1560 = vmatpush2.msra.mxu1 %v862_v11  ;;  %v822_v53 = vld [vmem:[%s4681_s3 + $0x610] sm:$0xff]  ;;  %v1075_v55 = vld [vmem:[%s4681_s3 + $0xdf8] sm:$0xff] }
 0x17a   :  { %1490 = vmatprep.subr.mxu0 %v731_v62  ;;  %1561 = vmatprep.subr.mxu1 %v859_v0  ;;  %v946_v57 = vld [vmem:[%s4681_s3 + $0x9f0] sm:$0xff]  ;;  %v943_v59 = vld [vmem:[%s4681_s3 + $0x9d8] sm:$0xff] }
 0x17b   :  { %1491 = vmatpush2.msra.mxu0 %v730_v2  ;;  %1562 = vmatpush2.msra.mxu1 %v858_v3  ;;  %v1074_v58 = vld [vmem:[%s4681_s3 + $0xdf0] sm:$0xff]  ;;  %v1071_v60 = vld [vmem:[%s4681_s3 + $0xdd8] sm:$0xff] }
 0x17c   :  { %1492 = vmatprep.subr.mxu0 %v727_v4  ;;  %1563 = vmatprep.subr.mxu1 %v855_v5  ;;  %v938_v6 = vld [vmem:[%s4681_s3 + $0x9b0] sm:$0xff]  ;;  %v935_v7 = vld [vmem:[%s4681_s3 + $0x998] sm:$0xff] }
 0x17d   :  { %1493 = vmatpush2.msra.mxu0 %v726_v8  ;;  %1564 = vmatpush2.msra.mxu1 %v854_v13  ;;  %v934_v11 = vld [vmem:[%s4681_s3 + $0x990] sm:$0xff]  ;;  %v931_v0 = vld [vmem:[%s4681_s3 + $0x978] sm:$0xff] }
 0x17e   :  { %1494 = vmatprep.subr.mxu0 %v723_v18  ;;  %1565 = vmatprep.subr.mxu1 %v851_v21  ;;  %v1062_v62 = vld [vmem:[%s4681_s3 + $0xd90] sm:$0xff]  ;;  %v1059_v2 = vld [vmem:[%s4681_s3 + $0xd78] sm:$0xff] }
 0x17f   :  { %1495 = vmatpush2.msra.mxu0 %v722_v22  ;;  %1566 = vmatpush2.msra.mxu1 %v850_v29  ;;  %v930_v3 = vld [vmem:[%s4681_s3 + $0x970] sm:$0xff]  ;;  %v927_v5 = vld [vmem:[%s4681_s3 + $0x958] sm:$0xff] }
 0x180   :  { %1496 = vmatprep.subr.mxu0 %v719_v30  ;;  %1567 = vmatprep.subr.mxu1 %v847_v31  ;;  %v1058_v4 = vld [vmem:[%s4681_s3 + $0xd70] sm:$0xff]  ;;  %v1055_v8 = vld [vmem:[%s4681_s3 + $0xd58] sm:$0xff] }
 0x181   :  { %1497 = vmatpush2.msra.mxu0 %v718_v32  ;;  %1568 = vmatpush2.msra.mxu1 %v846_v33  ;;  %v926_v13 = vld [vmem:[%s4681_s3 + $0x950] sm:$0xff]  ;;  %v923_v21 = vld [vmem:[%s4681_s3 + $0x938] sm:$0xff] }
 0x182   :  { %1498 = vmatprep.subr.mxu0 %v715_v34  ;;  %1569 = vmatprep.subr.mxu1 %v843_v23  ;;  %v1054_v18 = vld [vmem:[%s4681_s3 + $0xd50] sm:$0xff]  ;;  %v1051_v22 = vld [vmem:[%s4681_s3 + $0xd38] sm:$0xff] }
 0x183   :  { %1499 = vmatpush2.msra.mxu0 %v714_v26  ;;  %1570 = vmatpush2.msra.mxu1 %v842_v35  ;;  %v922_v29 = vld [vmem:[%s4681_s3 + $0x930] sm:$0xff]  ;;  %v919_v31 = vld [vmem:[%s4681_s3 + $0x918] sm:$0xff] }
 0x184   :  { %1500 = vmatprep.subr.mxu0 %v711_v24  ;;  %1571 = vmatprep.subr.mxu1 %v839_v27  ;;  %v1050_v30 = vld [vmem:[%s4681_s3 + $0xd30] sm:$0xff]  ;;  %v1047_v32 = vld [vmem:[%s4681_s3 + $0xd18] sm:$0xff] }
 0x185   :  { %1501 = vmatpush2.msra.mxu0 %v710_v36  ;;  %1572 = vmatpush2.msra.mxu1 %v838_v37  ;;  %v918_v33 = vld [vmem:[%s4681_s3 + $0x910] sm:$0xff]  ;;  %v915_v23 = vld [vmem:[%s4681_s3 + $0x8f8] sm:$0xff] }
 0x186   :  { %1502 = vmatprep.subr.mxu0 %v707_v38  ;;  %1573 = vmatprep.subr.mxu1 %v835_v39  ;;  %v1046_v34 = vld [vmem:[%s4681_s3 + $0xd10] sm:$0xff]  ;;  %v1043_v26 = vld [vmem:[%s4681_s3 + $0xcf8] sm:$0xff] }
 0x187   :  { %1503 = vmatpush2.msra.mxu0 %v706_v40  ;;  %1574 = vmatpush2.msra.mxu1 %v834_v41  ;;  %v914_v35 = vld [vmem:[%s4681_s3 + $0x8f0] sm:$0xff]  ;;  %v911_v27 = vld [vmem:[%s4681_s3 + $0x8d8] sm:$0xff] }
 0x188   :  { %1504 = vmatprep.subr.mxu0 %v703_v42  ;;  %1575 = vmatprep.subr.mxu1 %v831_v43  ;;  %v1042_v24 = vld [vmem:[%s4681_s3 + $0xcf0] sm:$0xff]  ;;  %v1039_v36 = vld [vmem:[%s4681_s3 + $0xcd8] sm:$0xff] }
 0x189   :  { %1505 = vmatpush2.msra.mxu0 %v702_v44  ;;  %1576 = vmatpush2.msra.mxu1 %v830_v45  ;;  %v910_v37 = vld [vmem:[%s4681_s3 + $0x8d0] sm:$0xff]  ;;  %v907_v39 = vld [vmem:[%s4681_s3 + $0x8b8] sm:$0xff] }
 0x18a   :  { %1506 = vmatprep.subr.mxu0 %v699_v46  ;;  %1577 = vmatprep.subr.mxu1 %v827_v47  ;;  %v1038_v38 = vld [vmem:[%s4681_s3 + $0xcd0] sm:$0xff]  ;;  %v1035_v40 = vld [vmem:[%s4681_s3 + $0xcb8] sm:$0xff] }
 0x18b   :  { %1507 = vmatpush2.msra.mxu0 %v698_v48  ;;  %1578 = vmatpush2.msra.mxu1 %v826_v49  ;;  %v906_v41 = vld [vmem:[%s4681_s3 + $0x8b0] sm:$0xff]  ;;  %v903_v43 = vld [vmem:[%s4681_s3 + $0x898] sm:$0xff] }
 0x18c   :  { %1508 = vmatprep.subr.mxu0 %v695_v50  ;;  %1579 = vmatprep.subr.mxu1 %v823_v51  ;;  %v1034_v42 = vld [vmem:[%s4681_s3 + $0xcb0] sm:$0xff]  ;;  %v1031_v44 = vld [vmem:[%s4681_s3 + $0xc98] sm:$0xff] }
 0x18d   :  { %1509 = vmatpush2.msra.mxu0 %v694_v52  ;;  %1580 = vmatpush2.msra.mxu1 %v822_v53  ;;  %v902_v45 = vld [vmem:[%s4681_s3 + $0x890] sm:$0xff]  ;;  %v899_v47 = vld [vmem:[%s4681_s3 + $0x878] sm:$0xff] }
 0x18e   :  { %1511 = vmatmul.mubr.f32.vlgmr.msra.gmra.mxu0 %v620_v28  ;;  %1582 = vmatmul.mubr.f32.vlgmr.msra.gmra.mxu1 %v622_v25  ;;  %v939_v25 = vld [vmem:[%s4681_s3 + $0x9b8] sm:$0xff]  ;;  %v1030_v46 = vld [vmem:[%s4681_s3 + $0xc90] sm:$0xff] }
 0x18f   :  { %1588 = vmatprep.subr.mxu0 %v947_v54  ;;  %1659 = vmatprep.subr.mxu1 %v1075_v55  ;;  %v1067_v28 = vld [vmem:[%s4681_s3 + $0xdb8] sm:$0xff]  ;;  %v898_v49 = vld [vmem:[%s4681_s3 + $0x870] sm:$0xff] }
 0x190   :  { %1589 = vmatpush1.msra.mxu0 %v946_v57  ;;  %1652 = vmatprep.mubr.f32.mxu0 %v625_v15  ;;  %v1066_v15 = vld [vmem:[%s4681_s3 + $0xdb0] sm:$0xff]  ;;  %v1027_v48 = vld [vmem:[%s4681_s3 + $0xc78] sm:$0xff] }
 0x191   :  { %1660 = vmatpush1.msra.mxu1 %v1074_v58  ;;  %1723 = vmatprep.mubr.f32.mxu1 %v627_v16  ;;  %v1063_v16 = vld [vmem:[%s4681_s3 + $0xd98] sm:$0xff]  ;;  %v1026_v50 = vld [vmem:[%s4681_s3 + $0xc70] sm:$0xff] }
 0x192   :  { %1590 = vmatprep.subr.mxu0 %v943_v59  ;;  %1661 = vmatprep.subr.mxu1 %v1071_v60  ;;  %v895_v51 = vld [vmem:[%s4681_s3 + $0x858] sm:$0xff]  ;;  %v894_v53 = vld [vmem:[%s4681_s3 + $0x850] sm:$0xff] }
 0x193   :  { %1591 = vmatpush1.msra.mxu0 %v942_v19  ;;  %1662 = vmatpush1.msra.mxu1 %v1070_v20  ;;  %v1023_v52 = vld [vmem:[%s4681_s3 + $0xc58] sm:$0xff]  ;;  %v1022_v54 = vld [vmem:[%s4681_s3 + $0xc50] sm:$0xff] }
 0x194   :  { %1592 = vmatprep.subr.mxu0 %v939_v25  ;;  %1663 = vmatprep.subr.mxu1 %v1067_v28  ;;  %v891_v55 = vld [vmem:[%s4681_s3 + $0x838] sm:$0xff]  ;;  %v890_v58 = vld [vmem:[%s4681_s3 + $0x830] sm:$0xff] }
 0x195   :  { %1593 = vmatpush1.msra.mxu0 %v938_v6  ;;  %1664 = vmatpush1.msra.mxu1 %v1066_v15  ;;  %v1019_v57 = vld [vmem:[%s4681_s3 + $0xc38] sm:$0xff]  ;;  %v1018_v59 = vld [vmem:[%s4681_s3 + $0xc30] sm:$0xff] }
 0x196   :  { %1594 = vmatprep.subr.mxu0 %v935_v7  ;;  %1665 = vmatprep.subr.mxu1 %v1063_v16  ;;  %v887_v60 = vld [vmem:[%s4681_s3 + $0x818] sm:$0xff]  ;;  %v886_v20 = vld [vmem:[%s4681_s3 + $0x810] sm:$0xff] }
 0x197   :  { %1595 = vmatpush1.msra.mxu0 %v934_v11  ;;  %1666 = vmatpush1.msra.mxu1 %v1062_v62  ;;  %v1015_v19 = vld [vmem:[%s4681_s3 + $0xc18] sm:$0xff]  ;;  %v1014_v25 = vld [vmem:[%s4681_s3 + $0xc10] sm:$0xff] }
 0x198   :  { %1596 = vmatprep.subr.mxu0 %v931_v0  ;;  %1667 = vmatprep.subr.mxu1 %v1059_v2  ;;  %v1011_v28 = vld [vmem:[%s4681_s3 + $0xbf8] sm:$0xff]  ;;  %v1010_v15 = vld [vmem:[%s4681_s3 + $0xbf0] sm:$0xff] }
 0x199   :  { %1597 = vmatpush1.msra.mxu0 %v930_v3  ;;  %1668 = vmatpush1.msra.mxu1 %v1058_v4  ;;  %v1139_v6 = vld [vmem:[%s4681_s3 + $0xff8] sm:$0xff]  ;;  %v1138_v7 = vld [vmem:[%s4681_s3 + $0xff0] sm:$0xff] }
 0x19a   :  { %1598 = vmatprep.subr.mxu0 %v927_v5  ;;  %1669 = vmatprep.subr.mxu1 %v1055_v8  ;;  %v1007_v16 = vld [vmem:[%s4681_s3 + $0xbd8] sm:$0xff]  ;;  %v1006_v62 = vld [vmem:[%s4681_s3 + $0xbd0] sm:$0xff] }
 0x19b   :  { %1599 = vmatpush1.msra.mxu0 %v926_v13  ;;  %1670 = vmatpush1.msra.mxu1 %v1054_v18  ;;  %v1135_v11 = vld [vmem:[%s4681_s3 + $0xfd8] sm:$0xff]  ;;  %v1134_v0 = vld [vmem:[%s4681_s3 + $0xfd0] sm:$0xff] }
 0x19c   :  { %1600 = vmatprep.subr.mxu0 %v923_v21  ;;  %1671 = vmatprep.subr.mxu1 %v1051_v22  ;;  %v1003_v2 = vld [vmem:[%s4681_s3 + $0xbb8] sm:$0xff]  ;;  %v1002_v4 = vld [vmem:[%s4681_s3 + $0xbb0] sm:$0xff] }
 0x19d   :  { %1601 = vmatpush1.msra.mxu0 %v922_v29  ;;  %1672 = vmatpush1.msra.mxu1 %v1050_v30  ;;  %v1131_v3 = vld [vmem:[%s4681_s3 + $0xfb8] sm:$0xff]  ;;  %v1130_v5 = vld [vmem:[%s4681_s3 + $0xfb0] sm:$0xff] }
 0x19e   :  { %1602 = vmatprep.subr.mxu0 %v919_v31  ;;  %1673 = vmatprep.subr.mxu1 %v1047_v32  ;;  %v999_v8 = vld [vmem:[%s4681_s3 + $0xb98] sm:$0xff]  ;;  %v998_v18 = vld [vmem:[%s4681_s3 + $0xb90] sm:$0xff] }
 0x19f   :  { %1603 = vmatpush1.msra.mxu0 %v918_v33  ;;  %1674 = vmatpush1.msra.mxu1 %v1046_v34  ;;  %v1127_v13 = vld [vmem:[%s4681_s3 + $0xf98] sm:$0xff]  ;;  %v1126_v21 = vld [vmem:[%s4681_s3 + $0xf90] sm:$0xff] }
 0x1a0   :  { %1604 = vmatprep.subr.mxu0 %v915_v23  ;;  %1675 = vmatprep.subr.mxu1 %v1043_v26  ;;  %v995_v22 = vld [vmem:[%s4681_s3 + $0xb78] sm:$0xff]  ;;  %v994_v30 = vld [vmem:[%s4681_s3 + $0xb70] sm:$0xff] }
 0x1a1   :  { %1605 = vmatpush1.msra.mxu0 %v914_v35  ;;  %1676 = vmatpush1.msra.mxu1 %v1042_v24  ;;  %v1123_v29 = vld [vmem:[%s4681_s3 + $0xf78] sm:$0xff]  ;;  %v1122_v31 = vld [vmem:[%s4681_s3 + $0xf70] sm:$0xff] }
 0x1a2   :  { %1606 = vmatprep.subr.mxu0 %v911_v27  ;;  %1677 = vmatprep.subr.mxu1 %v1039_v36  ;;  %v991_v32 = vld [vmem:[%s4681_s3 + $0xb58] sm:$0xff]  ;;  %v990_v34 = vld [vmem:[%s4681_s3 + $0xb50] sm:$0xff] }
 0x1a3   :  { %1607 = vmatpush1.msra.mxu0 %v910_v37  ;;  %1678 = vmatpush1.msra.mxu1 %v1038_v38  ;;  %v1119_v33 = vld [vmem:[%s4681_s3 + $0xf58] sm:$0xff]  ;;  %v1118_v23 = vld [vmem:[%s4681_s3 + $0xf50] sm:$0xff] }
 0x1a4   :  { %1608 = vmatprep.subr.mxu0 %v907_v39  ;;  %1679 = vmatprep.subr.mxu1 %v1035_v40  ;;  %v987_v26 = vld [vmem:[%s4681_s3 + $0xb38] sm:$0xff]  ;;  %v986_v24 = vld [vmem:[%s4681_s3 + $0xb30] sm:$0xff] }
 0x1a5   :  { %1609 = vmatpush1.msra.mxu0 %v906_v41  ;;  %1680 = vmatpush1.msra.mxu1 %v1034_v42  ;;  %v1115_v35 = vld [vmem:[%s4681_s3 + $0xf38] sm:$0xff]  ;;  %v1114_v27 = vld [vmem:[%s4681_s3 + $0xf30] sm:$0xff] }
 0x1a6   :  { %1610 = vmatprep.subr.mxu0 %v903_v43  ;;  %1681 = vmatprep.subr.mxu1 %v1031_v44  ;;  %v983_v36 = vld [vmem:[%s4681_s3 + $0xb18] sm:$0xff]  ;;  %v982_v38 = vld [vmem:[%s4681_s3 + $0xb10] sm:$0xff] }
 0x1a7   :  { %1611 = vmatpush1.msra.mxu0 %v902_v45  ;;  %1682 = vmatpush1.msra.mxu1 %v1030_v46  ;;  %v1111_v37 = vld [vmem:[%s4681_s3 + $0xf18] sm:$0xff]  ;;  %v1110_v39 = vld [vmem:[%s4681_s3 + $0xf10] sm:$0xff] }
 0x1a8   :  { %1612 = vmatprep.subr.mxu0 %v899_v47  ;;  %1683 = vmatprep.subr.mxu1 %v1027_v48  ;;  %v979_v40 = vld [vmem:[%s4681_s3 + $0xaf8] sm:$0xff]  ;;  %v978_v42 = vld [vmem:[%s4681_s3 + $0xaf0] sm:$0xff] }
 0x1a9   :  { %1613 = vmatpush1.msra.mxu0 %v898_v49  ;;  %1684 = vmatpush1.msra.mxu1 %v1026_v50  ;;  %v1107_v41 = vld [vmem:[%s4681_s3 + $0xef8] sm:$0xff]  ;;  %v1106_v43 = vld [vmem:[%s4681_s3 + $0xef0] sm:$0xff] }
 0x1aa   :  { %1614 = vmatprep.subr.mxu0 %v895_v51  ;;  %1685 = vmatprep.subr.mxu1 %v1023_v52  ;;  %v975_v44 = vld [vmem:[%s4681_s3 + $0xad8] sm:$0xff]  ;;  %v974_v46 = vld [vmem:[%s4681_s3 + $0xad0] sm:$0xff] }
 0x1ab   :  { %1615 = vmatpush1.msra.mxu0 %v894_v53  ;;  %1686 = vmatpush1.msra.mxu1 %v1022_v54  ;;  %v1103_v45 = vld [vmem:[%s4681_s3 + $0xed8] sm:$0xff]  ;;  %v1102_v47 = vld [vmem:[%s4681_s3 + $0xed0] sm:$0xff] }
 0x1ac   :  { %1616 = vmatprep.subr.mxu0 %v891_v55  ;;  %1687 = vmatprep.subr.mxu1 %v1019_v57  ;;  %v971_v48 = vld [vmem:[%s4681_s3 + $0xab8] sm:$0xff]  ;;  %v970_v50 = vld [vmem:[%s4681_s3 + $0xab0] sm:$0xff] }
 0x1ad   :  { %1617 = vmatpush1.msra.mxu0 %v890_v58  ;;  %1688 = vmatpush1.msra.mxu1 %v1018_v59  ;;  %v1099_v49 = vld [vmem:[%s4681_s3 + $0xeb8] sm:$0xff]  ;;  %v1098_v51 = vld [vmem:[%s4681_s3 + $0xeb0] sm:$0xff] }
 0x1ae   :  { %1618 = vmatprep.subr.mxu0 %v887_v60  ;;  %1689 = vmatprep.subr.mxu1 %v1015_v19  ;;  %v967_v52 = vld [vmem:[%s4681_s3 + $0xa98] sm:$0xff]  ;;  %v966_v54 = vld [vmem:[%s4681_s3 + $0xa90] sm:$0xff] }
 0x1af   :  { %1619 = vmatpush1.msra.mxu0 %v886_v20  ;;  %1690 = vmatpush1.msra.mxu1 %v1014_v25  ;;  %v1095_v53 = vld [vmem:[%s4681_s3 + $0xe98] sm:$0xff]  ;;  %v1094_v55 = vld [vmem:[%s4681_s3 + $0xe90] sm:$0xff] }
 0x1b0   :  { %1620 = vmatprep.subr.mxu0 %v1011_v28  ;;  %1691 = vmatprep.subr.mxu1 %v1139_v6  ;;  %v963_v57 = vld [vmem:[%s4681_s3 + $0xa78] sm:$0xff]  ;;  %v962_v59 = vld [vmem:[%s4681_s3 + $0xa70] sm:$0xff] }
 0x1b1   :  { %1621 = vmatpush2.msra.mxu0 %v1010_v15  ;;  %1692 = vmatpush2.msra.mxu1 %v1138_v7  ;;  %v1091_v58 = vld [vmem:[%s4681_s3 + $0xe78] sm:$0xff]  ;;  %v1090_v60 = vld [vmem:[%s4681_s3 + $0xe70] sm:$0xff] }
 0x1b2   :  { %1622 = vmatprep.subr.mxu0 %v1007_v16  ;;  %1693 = vmatprep.subr.mxu1 %v1135_v11  ;;  %v959_v19 = vld [vmem:[%s4681_s3 + $0xa58] sm:$0xff]  ;;  %v958_v25 = vld [vmem:[%s4681_s3 + $0xa50] sm:$0xff] }
 0x1b3   :  { %1623 = vmatpush2.msra.mxu0 %v1006_v62  ;;  %1694 = vmatpush2.msra.mxu1 %v1134_v0  ;;  %v1087_v20 = vld [vmem:[%s4681_s3 + $0xe58] sm:$0xff]  ;;  %v1086_v28 = vld [vmem:[%s4681_s3 + $0xe50] sm:$0xff] }
 0x1b4   :  { %1624 = vmatprep.subr.mxu0 %v1003_v2  ;;  %1695 = vmatprep.subr.mxu1 %v1131_v3  ;;  %v955_v6 = vld [vmem:[%s4681_s3 + $0xa38] sm:$0xff]  ;;  %v954_v7 = vld [vmem:[%s4681_s3 + $0xa30] sm:$0xff] }
 0x1b5   :  { %1625 = vmatpush2.msra.mxu0 %v1002_v4  ;;  %1696 = vmatpush2.msra.mxu1 %v1130_v5  ;;  %v1083_v15 = vld [vmem:[%s4681_s3 + $0xe38] sm:$0xff]  ;;  %v1082_v16 = vld [vmem:[%s4681_s3 + $0xe30] sm:$0xff] }
 0x1b6   :  { %1626 = vmatprep.subr.mxu0 %v999_v8  ;;  %1697 = vmatprep.subr.mxu1 %v1127_v13  ;;  %v951_v11 = vld [vmem:[%s4681_s3 + $0xa18] sm:$0xff]  ;;  %v950_v0 = vld [vmem:[%s4681_s3 + $0xa10] sm:$0xff]  ;;  %v1763_v13 = vld [vmem:[%s4683_s5 + $0xe8] sm:$0xff] }
 0x1b7   :  { %1627 = vmatpush2.msra.mxu0 %v998_v18  ;;  %1698 = vmatpush2.msra.mxu1 %v1126_v21  ;;  %v1079_v62 = vld [vmem:[%s4681_s3 + $0xe18] sm:$0xff]  ;;  %v1078_v2 = vld [vmem:[%s4681_s3 + $0xe10] sm:$0xff]  ;;  %v1762_v18 = vld [vmem:[%s4683_s5 + $0xe0] sm:$0xff] }
 0x1b8   :  { %1628 = vmatprep.subr.mxu0 %v995_v22  ;;  %1699 = vmatprep.subr.mxu1 %v1123_v29  ;;  %v1765_v3 = vld [vmem:[%s4683_s5 + $0xf8] sm:$0xff]  ;;  %v1764_v5 = vld [vmem:[%s4683_s5 + $0xf0] sm:$0xff]  ;;  %v1746_v22 = vld [vmem:[%s4683_s5 + $0x60] sm:$0xff] }
 0x1b9   :  { %1629 = vmatpush2.msra.mxu0 %v994_v30  ;;  %1700 = vmatpush2.msra.mxu1 %v1122_v31  ;;  %v1749_v4 = vld [vmem:[%s4683_s5 + $0x78] sm:$0xff]  ;;  %v1748_v8 = vld [vmem:[%s4683_s5 + $0x70] sm:$0xff]  ;;  %v1795_v29 = vld [vmem:[%s4683_s5 + $0x1e8] sm:$0xff] }
 0x1ba   :  { %1630 = vmatprep.subr.mxu0 %v991_v32  ;;  %1701 = vmatprep.subr.mxu1 %v1119_v33  ;;  %v1797_v61 = vld [vmem:[%s4683_s5 + $0x1f8] sm:$0xff]  ;;  %v1780_v21 = vld [vmem:[%s4683_s5 + $0x170] sm:$0xff]  ;;  %v1779_v31 = vld [vmem:[%s4683_s5 + $0x168] sm:$0xff] }
 0x1bb   :  { %1631 = vmatpush2.msra.mxu0 %v990_v34  ;;  %1702 = vmatpush2.msra.mxu1 %v1118_v23  ;;  %v1761_v30 = vld [vmem:[%s4683_s5 + $0xd8] sm:$0xff]  ;;  %v1794_v33 = vld [vmem:[%s4683_s5 + $0x1e0] sm:$0xff]  ;;  %v1760_v34 = vld [vmem:[%s4683_s5 + $0xd0] sm:$0xff] }
 0x1bc   :  { %1632 = vmatprep.subr.mxu0 %v987_v26  ;;  %1703 = vmatprep.subr.mxu1 %v1115_v35  ;;  %v1745_v32 = vld [vmem:[%s4683_s5 + $0x58] sm:$0xff]  ;;  %v1778_v23 = vld [vmem:[%s4683_s5 + $0x160] sm:$0xff]  ;;  %v1744_v26 = vld [vmem:[%s4683_s5 + $0x50] sm:$0xff] }
 0x1bd   :  { %1633 = vmatpush2.msra.mxu0 %v986_v24  ;;  %1704 = vmatpush2.msra.mxu1 %v1114_v27  ;;  %v1793_v35 = vld [vmem:[%s4683_s5 + $0x1d8] sm:$0xff]  ;;  %v1759_v24 = vld [vmem:[%s4683_s5 + $0xc8] sm:$0xff] }
 0x1be   :  { %1634 = vmatprep.subr.mxu0 %v983_v36  ;;  %1705 = vmatprep.subr.mxu1 %v1111_v37  ;;  %v1777_v27 = vld [vmem:[%s4683_s5 + $0x158] sm:$0xff]  ;;  %v1743_v36 = vld [vmem:[%s4683_s5 + $0x48] sm:$0xff]  ;;  %v1792_v37 = vld [vmem:[%s4683_s5 + $0x1d0] sm:$0xff] }
 0x1bf   :  { %1635 = vmatpush2.msra.mxu0 %v982_v38  ;;  %1706 = vmatpush2.msra.mxu1 %v1110_v39  ;;  %v1758_v38 = vld [vmem:[%s4683_s5 + $0xc0] sm:$0xff]  ;;  %v1776_v39 = vld [vmem:[%s4683_s5 + $0x150] sm:$0xff] }
 0x1c0   :  { %1636 = vmatprep.subr.mxu0 %v979_v40  ;;  %1707 = vmatprep.subr.mxu1 %v1107_v41  ;;  %v1742_v40 = vld [vmem:[%s4683_s5 + $0x40] sm:$0xff]  ;;  %v1791_v41 = vld [vmem:[%s4683_s5 + $0x1c8] sm:$0xff] }
 0x1c1   :  { %1637 = vmatpush2.msra.mxu0 %v978_v42  ;;  %1708 = vmatpush2.msra.mxu1 %v1106_v43  ;;  %v1757_v42 = vld [vmem:[%s4683_s5 + $0xb8] sm:$0xff]  ;;  %v1775_v43 = vld [vmem:[%s4683_s5 + $0x148] sm:$0xff] }
 0x1c2   :  { %1638 = vmatprep.subr.mxu0 %v975_v44  ;;  %1709 = vmatprep.subr.mxu1 %v1103_v45  ;;  %v1741_v44 = vld [vmem:[%s4683_s5 + $0x38] sm:$0xff]  ;;  %v1790_v45 = vld [vmem:[%s4683_s5 + $0x1c0] sm:$0xff] }
 0x1c3   :  { %1639 = vmatpush2.msra.mxu0 %v974_v46  ;;  %1710 = vmatpush2.msra.mxu1 %v1102_v47  ;;  %v1756_v46 = vld [vmem:[%s4683_s5 + $0xb0] sm:$0xff]  ;;  %v1774_v47 = vld [vmem:[%s4683_s5 + $0x140] sm:$0xff] }
 0x1c4   :  { %1640 = vmatprep.subr.mxu0 %v971_v48  ;;  %1711 = vmatprep.subr.mxu1 %v1099_v49  ;;  %v1740_v48 = vld [vmem:[%s4683_s5 + $0x30] sm:$0xff]  ;;  %v1789_v49 = vld [vmem:[%s4683_s5 + $0x1b8] sm:$0xff] }
 0x1c5   :  { %1641 = vmatpush2.msra.mxu0 %v970_v50  ;;  %1712 = vmatpush2.msra.mxu1 %v1098_v51  ;;  %v1755_v50 = vld [vmem:[%s4683_s5 + $0xa8] sm:$0xff]  ;;  %v1773_v51 = vld [vmem:[%s4683_s5 + $0x138] sm:$0xff] }
 0x1c6   :  { %1642 = vmatprep.subr.mxu0 %v967_v52  ;;  %1713 = vmatprep.subr.mxu1 %v1095_v53  ;;  %v1739_v52 = vld [vmem:[%s4683_s5 + $0x28] sm:$0xff]  ;;  %v1788_v53 = vld [vmem:[%s4683_s5 + $0x1b0] sm:$0xff] }
 0x1c7   :  { %1643 = vmatpush2.msra.mxu0 %v966_v54  ;;  %1714 = vmatpush2.msra.mxu1 %v1094_v55  ;;  %v1754_v54 = vld [vmem:[%s4683_s5 + $0xa0] sm:$0xff]  ;;  %v1772_v55 = vld [vmem:[%s4683_s5 + $0x130] sm:$0xff] }
 0x1c8   :  { %1644 = vmatprep.subr.mxu0 %v963_v57  ;;  %1715 = vmatprep.subr.mxu1 %v1091_v58  ;;  %v1738_v57 = vld [vmem:[%s4683_s5 + $0x20] sm:$0xff]  ;;  %v1787_v58 = vld [vmem:[%s4683_s5 + $0x1a8] sm:$0xff] }
 0x1c9   :  { %1645 = vmatpush2.msra.mxu0 %v962_v59  ;;  %1716 = vmatpush2.msra.mxu1 %v1090_v60  ;;  %v1753_v59 = vld [vmem:[%s4683_s5 + $0x98] sm:$0xff]  ;;  %v1771_v60 = vld [vmem:[%s4683_s5 + $0x128] sm:$0xff] }
 0x1ca   :  { %1646 = vmatprep.subr.mxu0 %v959_v19  ;;  %1717 = vmatprep.subr.mxu1 %v1087_v20  ;;  %v1737_v19 = vld [vmem:[%s4683_s5 + $0x18] sm:$0xff]  ;;  %v1752_v20 = vld [vmem:[%s4683_s5 + $0x90] sm:$0xff] }
 0x1cb   :  { %1647 = vmatpush2.msra.mxu0 %v958_v25  ;;  %1718 = vmatpush2.msra.mxu1 %v1086_v28  ;;  %v1736_v25 = vld [vmem:[%s4683_s5 + $0x10] sm:$0xff]  ;;  %v1751_v28 = vld [vmem:[%s4683_s5 + $0x88] sm:$0xff] }
 0x1cc   :  { %1648 = vmatprep.subr.mxu0 %v955_v6  ;;  %1719 = vmatprep.subr.mxu1 %v1083_v15  ;;  %v1735_v6 = vld [vmem:[%s4683_s5 + $0x8] sm:$0xff]  ;;  %v1750_v15 = vld [vmem:[%s4683_s5 + $0x80] sm:$0xff] }
 0x1cd   :  { %1649 = vmatpush2.msra.mxu0 %v954_v7  ;;  %1720 = vmatpush2.msra.mxu1 %v1082_v16  ;;  %v1734_v7 = vld [vmem:[%s4683_s5] sm:$0xff] }
 0x1ce   :  { %1650 = vmatprep.subr.mxu0 %v951_v11  ;;  %1721 = vmatprep.subr.mxu1 %v1079_v62  ;;  %v1140_v16 = vld [vmem:[%s4684_s4] sm:$0xf]  ;;  %v1228_v11 = vpop.f32.mrf.mxu0 }
 0x1cf   :  { %1651 = vmatpush2.msra.mxu0 %v950_v0  ;;  %1722 = vmatpush2.msra.mxu1 %v1078_v2  ;;  %v1145_v62 = vrot.slane %v1140_v16, %v287_v63  ;;  %v1149_v0 = vrot.slane %v1140_v16, %v291_v12  ;;  %v1299_v2 = vpop.f32.mrf.mxu1  ;;  %v1770_v63 = vld [vmem:[%s4683_s5 + $0x120] sm:$0xff] }
 0x1d0   :  { %1653 = vmatmul.mubr.f32.vlgmr.msra.gmra.mxu0 %v624_v17  ;;  %1724 = vmatmul.mubr.f32.vlgmr.msra.gmra.mxu1 %v626_v14  ;;  %v1781_v14 = vld [vmem:[%s4683_s5 + $0x178] sm:$0xff]  ;;  %v1796_v17 = vld [vmem:[%s4683_s5 + $0x1f0] sm:$0xff] }
 0x1d1   :  { %1952 = vmatprep.subr.mxu0 %v1765_v3  ;;  %1987 = vmatprep.subr.mxu1 %v1797_v61  ;;  %v1230_v3 = vpop.f32.mrf.mxu0 }
 0x1d2   :  { %1953 = vmatpush3.msra.mxu0 %v1749_v4  ;;  %1988 = vmatpush3.msra.mxu1 %v1781_v14  ;;  %v1229_v4 = vadd.f32 %v1228_v11, %v1145_v62 }
 0x1d3   :  { %1954 = vmatprep.subr.mxu0 %v1764_v5  ;;  %1989 = vmatprep.subr.mxu1 %v1796_v17  ;;  %v1231_v5 = vadd.f32 %v1230_v3, %v1149_v0 }
 0x1d4   :  { %1955 = vmatpush3.msra.mxu0 %v1748_v8  ;;  %1990 = vmatpush3.msra.mxu1 %v1780_v21  ;;  %v1301_v8 = vpop.f32.mrf.mxu1  ;;  %v1786_v21 = vld [vmem:[%s4683_s5 + $0x1a0] sm:$0xff] }
 0x1d5   :  { %1956 = vmatprep.subr.mxu0 %v1763_v13  ;;  %1991 = vmatprep.subr.mxu1 %v1795_v29  ;;  %v1300_v13 = vadd.f32 %v1299_v2, %v1229_v4  ;;  %v1302_v14 = vadd.f32 %v1301_v8, %v1231_v5 }
 0x1d6   :  { %1957 = vmatpush3.msra.mxu0 %v1747_v1  ;;  %1992 = vmatpush3.msra.mxu1 %v1779_v31 }
 0x1d7   :  { %1958 = vmatprep.subr.mxu0 %v1762_v18  ;;  %1993 = vmatprep.subr.mxu1 %v1794_v33  ;;  %v1784_v33 = vld [vmem:[%s4683_s5 + $0x190] sm:$0xff] }
 0x1d8   :  { %1959 = vmatpush3.msra.mxu0 %v1746_v22  ;;  %1994 = vmatpush3.msra.mxu1 %v1778_v23  ;;  %v1768_v23 = vld [vmem:[%s4683_s5 + $0x110] sm:$0xff] }
 0x1d9   :  { %1960 = vmatprep.subr.mxu0 %v1761_v30  ;;  %1995 = vmatprep.subr.mxu1 %v1793_v35  ;;  %v1785_v30 = vld [vmem:[%s4683_s5 + $0x198] sm:$0xff]  ;;  %v1783_v35 = vld [vmem:[%s4683_s5 + $0x188] sm:$0xff] }
 0x1da   :  { %1961 = vmatpush3.msra.mxu0 %v1745_v32  ;;  %1996 = vmatpush3.msra.mxu1 %v1777_v27  ;;  %v1769_v32 = vld [vmem:[%s4683_s5 + $0x118] sm:$0xff]  ;;  %v1782_v27 = vld [vmem:[%s4683_s5 + $0x180] sm:$0xff] }
 0x1db   :  { %1962 = vmatprep.subr.mxu0 %v1760_v34  ;;  %1997 = vmatprep.subr.mxu1 %v1792_v37 }
 0x1dc   :  { %1963 = vmatpush3.msra.mxu0 %v1744_v26  ;;  %1998 = vmatpush3.msra.mxu1 %v1776_v39  ;;  %v1157_v39 = vrot.slane %v1140_v16, %v299_v56 }
 0x1dd   :  { %1964 = vmatprep.subr.mxu0 %v1759_v24  ;;  %1999 = vmatprep.subr.mxu1 %v1791_v41  ;;  %v1767_v24 = vld [vmem:[%s4683_s5 + $0x108] sm:$0xff] }
 0x1de   :  { %1965 = vmatpush3.msra.mxu0 %v1743_v36  ;;  %2000 = vmatpush3.msra.mxu1 %v1775_v43  ;;  %v1766_v36 = vld [vmem:[%s4683_s5 + $0x100] sm:$0xff] }
 0x1df   :  { %1966 = vmatprep.subr.mxu0 %v1758_v38  ;;  %2001 = vmatprep.subr.mxu1 %v1790_v45  ;;  %v1153_v38 = vrot.slane %v1140_v16, %v295_v10 }
 0x1e0   :  { %1967 = vmatpush3.msra.mxu0 %v1742_v40  ;;  %2002 = vmatpush3.msra.mxu1 %v1774_v47 }
 0x1e1   :  { %1968 = vmatprep.subr.mxu0 %v1757_v42  ;;  %2003 = vmatprep.subr.mxu1 %v1789_v49 }
 0x1e2   :  { %1969 = vmatpush3.msra.mxu0 %v1741_v44  ;;  %2004 = vmatpush3.msra.mxu1 %v1773_v51 }
 0x1e3   :  { %1970 = vmatprep.subr.mxu0 %v1756_v46  ;;  %2005 = vmatprep.subr.mxu1 %v1788_v53 }
 0x1e4   :  { %1971 = vmatpush3.msra.mxu0 %v1740_v48  ;;  %2006 = vmatpush3.msra.mxu1 %v1772_v55 }
 0x1e5   :  { %1972 = vmatprep.subr.mxu0 %v1755_v50  ;;  %2007 = vmatprep.subr.mxu1 %v1787_v58  ;;  %v1951_v58 = vld [vmem:[%s4685_s6] ss:$0 sm:$0xff] }
 0x1e6   :  { %1973 = vmatpush3.msra.mxu0 %v1739_v52  ;;  %2008 = vmatpush3.msra.mxu1 %v1771_v60 }
 0x1e7   :  { %1974 = vmatprep.subr.mxu0 %v1754_v54  ;;  %2009 = vmatprep.subr.mxu1 %v1786_v21 }
 0x1e8   :  { %1975 = vmatpush3.msra.mxu0 %v1738_v57  ;;  %2010 = vmatpush3.msra.mxu1 %v1770_v63 }
 0x1e9   :  { %1976 = vmatprep.subr.mxu0 %v1753_v59  ;;  %2011 = vmatprep.subr.mxu1 %v1785_v30 }
 0x1ea   :  { %1977 = vmatpush3.msra.mxu0 %v1737_v19  ;;  %2012 = vmatpush3.msra.mxu1 %v1769_v32 }
 0x1eb   :  { %1978 = vmatprep.subr.mxu0 %v1752_v20  ;;  %2013 = vmatprep.subr.mxu1 %v1784_v33 }
 0x1ec   :  { %1979 = vmatpush3.msra.mxu0 %v1736_v25  ;;  %2014 = vmatpush3.msra.mxu1 %v1768_v23 }
 0x1ed   :  { %1980 = vmatprep.subr.mxu0 %v1751_v28  ;;  %2015 = vmatprep.subr.mxu1 %v1783_v35 }
 0x1ee   :  { %1981 = vmatpush3.msra.mxu0 %v1735_v6  ;;  %2016 = vmatpush3.msra.mxu1 %v1767_v24 }
 0x1ef   :  { %1982 = vmatprep.subr.mxu0 %v1750_v15  ;;  %2017 = vmatprep.subr.mxu1 %v1782_v27 }
 0x1f0   :  { %1983 = vmatpush3.msra.mxu0 %v1734_v7  ;;  %2018 = vmatpush3.msra.mxu1 %v1766_v36 }
 0x20d   :  { %v1370_v1 = vpop.f32.mrf.mxu0  ;;  %v1441_v61 = vpop.f32.mrf.mxu1 }
 0x20e   :  { %v1371_v17 = vadd.f32 %v1370_v1, %v1300_v13 }
 0x20f   :  { %v1372_v18 = vpop.f32.mrf.mxu0  ;;  %v1443_v29 = vpop.f32.mrf.mxu1 }
 0x210   :  { %v1373_v22 = vadd.f32 %v1372_v18, %v1302_v14  ;;  %v1442_v12 = vadd.f32 %v1441_v61, %v1371_v17 }
 0x212   :  { %v1444_v31 = vadd.f32 %v1443_v29, %v1373_v22  ;;  %v1730_v26 = vmax.f32 %v1442_v12, 0.0 }
 0x214   :  { %v1731_v34 = vmax.f32 %v1444_v31, 0.0 }
 0x216   :  { %1869 = vmatprep.mubr.f32.mxu0 %v1731_v34 }
 0x217   :  { %1870 = vmatmul.mubr.f32.vlgmr.msra.gmra.mxu0 %v1730_v26 }
 0x24e   :  { %v1512_v37 = vpop.f32.mrf.mxu0  ;;  %v1583_v40 = vpop.f32.mrf.mxu1 }
 0x24f   :  { %v1513_v42 = vadd.f32 %v1512_v37, %v1153_v38 }
 0x250   :  { %v1514_v41 = vpop.f32.mrf.mxu0  ;;  %v1585_v44 = vpop.f32.mrf.mxu1 }
 0x251   :  { %v1515_v43 = vadd.f32 %v1514_v41, %v1157_v39  ;;  %v1584_v45 = vadd.f32 %v1583_v40, %v1513_v42 }
 0x253   :  { %v1586_v48 = vadd.f32 %v1585_v44, %v1515_v43 }
 0x290   :  { %v1654_v46 = vpop.f32.mrf.mxu0  ;;  %v1725_v47 = vpop.f32.mrf.mxu1 }
 0x291   :  { %v1655_v49 = vadd.f32 %v1654_v46, %v1584_v45 }
 0x292   :  { %v1656_v50 = vpop.f32.mrf.mxu0  ;;  %v1727_v53 = vpop.f32.mrf.mxu1 }
 0x293   :  { %v1657_v51 = vadd.f32 %v1656_v50, %v1586_v48  ;;  %v1726_v52 = vadd.f32 %v1725_v47, %v1655_v49 }
 0x295   :  { %v1728_v54 = vadd.f32 %v1727_v53, %v1657_v51  ;;  %v1732_v10 = vmax.f32 %v1726_v52, 0.0 }
 0x297   :  { %v1733_v55 = vmax.f32 %v1728_v54, 0.0 }
 0x299   :  { %1939 = vmatprep.mubr.f32.mxu1 %v1733_v55 }
 0x29a   :  { %1940 = vmatmul.mubr.f32.vlgmr.msra.gmra.mxu1 %v1732_v10 }
 0x2d7   :  { %v1984_v9 = vpop.f32.mrf.mxu0 }
 0x2d9   :  { %v1985_v56 = vpop.f32.mrf.mxu0 }
 0x2da   :  { %v1986_v57 = vadd.f32 %v1985_v56, %v1984_v9 }
 0x2dc   :  { %v1872_v19 = vadd.f32 %v1986_v57, %v1951_v58 }
 0x35a   :  { %v2019_v59 = vpop.f32.mrf.mxu1 }
 0x35c   :  { %v2020_v60 = vpop.f32.mrf.mxu1 }
 0x35d   :  { %v2021_v20 = vadd.f32 %v2020_v60, %v2019_v59 }
 0x35f   :  { %v1942_v25 = vadd.f32 %v2021_v20, %v1872_v19 }
 0x361   :  { %1945 = vst [vmem:[%s4686_s7] sm:$0x3] %v1942_v25 }

</bundles_post_ra>
